<compile_context>
chip_gen: v5e
topology: v5e:2x2
jax: 0.10.0
libtpu: 0.0.40
codegen_flags: <defaults>
</compile_context>

<pallas_src>
import functools
import math

import numpy as np

import jax
import jax.numpy as jnp
from jax.experimental import pallas as pl
from jax.experimental.pallas import tpu as pltpu


KW = 4            # conv kernel size used throughout the discriminator
BN_EPS = 1e-5
LRELU_SLOPE = 0.2

TM_DEFAULT = 512                       # row tile (multiple of 16)
TK_DEFAULT = 2048                      # contraction tile (multiple of 128)
TN_DEFAULT = 256                       # output-channel tile (multiple of 128)
VMEM_LIMIT_DEFAULT = 48 * 1024 * 1024  # explicit scoped-VMEM budget (<= v7x 64 MiB)


def _round_up(x, m):
    return (x + m - 1) // m * m


# ----------------------------------------------------------------------------
# Pallas kernels
# ----------------------------------------------------------------------------
def _conv_bias_act_kernel(p_ref, w_ref, b_ref, o_ref, acc_ref, *, use_relu):
    """Conv-as-matmul for the no-BatchNorm layers (first / last conv).

    grid = (cout_tiles, m_tiles, k_tiles); K is the reduction axis (last,
    'arbitrary'), accumulated into a resident f32 VMEM scratch; bias
    (+ optional LeakyReLU) and the lane-dense store happen at the last K step.
    """
    k = pl.program_id(2)

    @pl.when(k == 0)
    def _zero_acc():
        acc_ref[...] = jnp.zeros_like(acc_ref)

    acc_ref[...] += jnp.dot(p_ref[...], w_ref[...],
                            preferred_element_type=jnp.float32)

    @pl.when(k == pl.num_programs(2) - 1)
    def _emit():
        out = acc_ref[...] + b_ref[...]
        if use_relu:
            out = jnp.where(out > 0, out, LRELU_SLOPE * out)
        o_ref[...] = out.astype(o_ref.dtype)


def _conv_stats_kernel(p_ref, w_ref, b_ref, o_ref, sum_ref, ssq_ref, acc_ref):
    """Pass 1 of a Conv+BatchNorm+LeakyReLU layer, fused over timesteps.

    grid = (T, cout_tiles, m_tiles, k_tiles).  Per-(t, cout_tile) channel
    sum / sum-of-squares are accumulated across the M axis into resident
    (1, TN) outputs.  Stats are taken on the PRE-BIAS accumulator so that
    zero-padded patch rows contribute exactly zero (no row mask needed); the
    bias is folded back into the mean when scale/shift are derived outside.
    The pre-BN activation is stored in bfloat16 to halve the HBM round trip
    to pass 2.
    """
    m = pl.program_id(2)
    k = pl.program_id(3)
    last_k = k == pl.num_programs(3) - 1

    @pl.when(k == 0)
    def _zero_acc():
        acc_ref[...] = jnp.zeros_like(acc_ref)

    acc_ref[...] += jnp.dot(p_ref[...], w_ref[...],
                            preferred_element_type=jnp.float32)

    @pl.when(jnp.logical_and(last_k, m == 0))
    def _zero_stats():
        sum_ref[...] = jnp.zeros_like(sum_ref)
        ssq_ref[...] = jnp.zeros_like(ssq_ref)

    @pl.when(last_k)
    def _emit():
        acc = acc_ref[...]
        o_ref[...] = (acc + b_ref[...]).astype(o_ref.dtype)
        sum_ref[...] += jnp.sum(acc, axis=0, keepdims=True)
        ssq_ref[...] += jnp.sum(acc * acc, axis=0, keepdims=True)


def _bn_lrelu_kernel(x_ref, scale_ref, shift_ref, o_ref):
    """Pass 2: y = x*scale + shift, LeakyReLU.  scale/shift are precomputed
    once per (t, channel) outside the per-tile path."""
    y = x_ref[...].astype(jnp.float32) * scale_ref[...] + shift_ref[...]
    o_ref[...] = jnp.where(y > 0, y, LRELU_SLOPE * y).astype(o_ref.dtype)


# ----------------------------------------------------------------------------
# Glue: im2col patch extraction (data rearrangement only)
# ----------------------------------------------------------------------------
def _extract_patches(x_nhwc, stride, pad):
    """(N,H,W,C) -> (N*Hout*Wout, KW*KW*C) patch matrix, plus (Hout, Wout)."""
    # TODO(synk): replace with a direct shifted-window conv to avoid the
    # KW*KW HBM blowup (see module header).
    x = jnp.pad(x_nhwc, ((0, 0), (pad, pad), (pad, pad), (0, 0)))
    N, Hp, Wp, C = x.shape
    Hout = (Hp - KW) // stride + 1
    Wout = (Wp - KW) // stride + 1
    cols = []
    for i in range(KW):
        for j in range(KW):
            cols.append(x[:, i:i + stride * (Hout - 1) + 1:stride,
                             j:j + stride * (Wout - 1) + 1:stride, :])
    patches = jnp.stack(cols, axis=3)            # (N, Hout, Wout, KW*KW, C)
    return patches.reshape(N * Hout * Wout, KW * KW * C), Hout, Wout


def _tiles(M, K, cout_p, tm_max, tk_max, tn_max):
    TM = min(tm_max, _round_up(M, 16))
    M_p = _round_up(M, TM)
    if K <= tk_max:
        TK, K_p = K, K
    else:
        TK = tk_max
        K_p = _round_up(K, TK)
    TN = min(tn_max, cout_p)
    if cout_p % TN:
        TN = math.gcd(TN, cout_p)       # both multiples of 128 -> TN stays >=128
    return TM, M_p, TK, K_p, TN


# ----------------------------------------------------------------------------
# One conv layer (no BatchNorm): first and last conv, batched over T*B
# ----------------------------------------------------------------------------
def _conv_layer_nobn(h, p, cfg, *, use_relu, out_dtype,
                     tm_max, tk_max, tn_max, vmem_limit_bytes):
    N = h.shape[0]
    patches, Ho, Wo = _extract_patches(h, cfg['stride'], cfg['pad'])
    M, K = patches.shape
    cout = cfg['cout']
    cout_p = p['w_flat'].shape[1]        # static shape attribute (not traced)

    TM, M_p, TK, K_p, TN = _tiles(M, K, cout_p, tm_max, tk_max, tn_max)
    n_m, n_k, n_j = M_p // TM, K_p // TK, cout_p // TN

    patches = patches.astype(jnp.bfloat16)
    if (M_p, K_p) != (M, K):
        patches = jnp.pad(patches, ((0, M_p - M), (0, K_p - K)))
    w = p['w_flat']
    if K_p != K:
        w = jnp.pad(w, ((0, K_p - K), (0, 0)))

    out = pl.pallas_call(
        functools.partial(_conv_bias_act_kernel, use_relu=use_relu),
        out_shape=jax.ShapeDtypeStruct((M_p, cout_p), out_dtype),
        grid=(n_j, n_m, n_k),
        in_specs=[pl.BlockSpec((TM, TK), lambda j, m, k: (m, k)),
                  pl.BlockSpec((TK, TN), lambda j, m, k: (k, j)),
                  pl.BlockSpec((1, TN), lambda j, m, k: (0, j))],
        out_specs=pl.BlockSpec((TM, TN), lambda j, m, k: (m, j)),
        scratch_shapes=[pltpu.VMEM((TM, TN), jnp.float32)],
        compiler_params=pltpu.CompilerParams(
            dimension_semantics=("parallel", "parallel", "arbitrary"),
            vmem_limit_bytes=vmem_limit_bytes),
    )(patches, w, p['b_p'])

    return out[:M, :cout].reshape(N, Ho, Wo, cout)


# ----------------------------------------------------------------------------
# One Conv+BatchNorm+LeakyReLU layer, fused over all timesteps
# ----------------------------------------------------------------------------
def _conv_layer_bn(h, T, p, cfg, *, tm_max, tk_max, tn_max, vmem_limit_bytes):
    TB = h.shape[0]
    B = TB // T
    patches, Ho, Wo = _extract_patches(h, cfg['stride'], cfg['pad'])
    K = patches.shape[1]
    M = B * Ho * Wo                      # rows per timestep (BN stats domain)
    cout = cfg['cout']
    cout_p = p['w_flat'].shape[1]

    TM, M_p, TK, K_p, TN = _tiles(M, K, cout_p, tm_max, tk_max, tn_max)
    n_m, n_k, n_j = M_p // TM, K_p // TK, cout_p // TN

    patches = patches.astype(jnp.bfloat16).reshape(T, M, K)
    if (M_p, K_p) != (M, K):
        patches = jnp.pad(patches, ((0, 0), (0, M_p - M), (0, K_p - K)))
    w = p['w_flat']
    if K_p != K:
        w = jnp.pad(w, ((0, K_p - K), (0, 0)))

    conv_out, csum, cssq = pl.pallas_call(
        _conv_stats_kernel,
        out_shape=(jax.ShapeDtypeStruct((T, M_p, cout_p), jnp.bfloat16),
                   jax.ShapeDtypeStruct((T, 1, cout_p), jnp.float32),
                   jax.ShapeDtypeStruct((T, 1, cout_p), jnp.float32)),
        grid=(T, n_j, n_m, n_k),
        in_specs=[pl.BlockSpec((None, TM, TK), lambda t, j, m, k: (t, m, k)),
                  pl.BlockSpec((TK, TN), lambda t, j, m, k: (k, j)),
                  pl.BlockSpec((1, TN), lambda t, j, m, k: (0, j))],
        out_specs=(pl.BlockSpec((None, TM, TN), lambda t, j, m, k: (t, m, j)),
                   pl.BlockSpec((None, 1, TN), lambda t, j, m, k: (t, 0, j)),
                   pl.BlockSpec((None, 1, TN), lambda t, j, m, k: (t, 0, j))),
        scratch_shapes=[pltpu.VMEM((TM, TN), jnp.float32)],
        compiler_params=pltpu.CompilerParams(
            dimension_semantics=("parallel", "parallel", "arbitrary", "arbitrary"),
            vmem_limit_bytes=vmem_limit_bytes),
    )(patches, w, p['b_p'])

    # BN scale/shift hoisted out of the per-tile path: one tiny (T,1,cout_p)
    # computation.  Stats were taken pre-bias; fold the bias into the mean
    # here (this also keeps the bias offset out of E[x^2]-E[x]^2).
    inv_m = 1.0 / M
    mean_nob = csum * inv_m
    mean = mean_nob + p['b_p']
    var = jnp.maximum(cssq * inv_m - mean_nob * mean_nob, 0.0)
    scale = p['gamma_p'] * jax.lax.rsqrt(var + BN_EPS)
    shift = p['beta_p'] - mean * scale

    act = pl.pallas_call(
        _bn_lrelu_kernel,
        out_shape=jax.ShapeDtypeStruct((T, M_p, cout_p), jnp.bfloat16),
        grid=(T, n_m),
        in_specs=[pl.BlockSpec((None, TM, cout_p), lambda t, m: (t, m, 0)),
                  pl.BlockSpec((None, 1, cout_p), lambda t, m: (t, 0, 0)),
                  pl.BlockSpec((None, 1, cout_p), lambda t, m: (t, 0, 0))],
        out_specs=pl.BlockSpec((None, TM, cout_p), lambda t, m: (t, m, 0)),
        compiler_params=pltpu.CompilerParams(
            dimension_semantics=("parallel", "parallel"),
            vmem_limit_bytes=vmem_limit_bytes),
    )(conv_out, scale, shift)

    return act[:, :M, :cout].reshape(TB, Ho, Wo, cout)


# ----------------------------------------------------------------------------
# Module configuration / deterministic parameter init (mirrors __init__)
# ----------------------------------------------------------------------------
def build_discriminator_config(input_nc, ndf=64, n_layers=3):
    padw = int(math.ceil((KW - 1.0) / 2))        # = 2
    cfgs = [dict(cin=input_nc, cout=ndf, stride=2, pad=padw, bn=False, relu=True)]
    nf = ndf
    for _ in range(1, n_layers):
        nf_prev, nf = nf, min(nf * 2, 512)
        cfgs.append(dict(cin=nf_prev, cout=nf, stride=2, pad=padw, bn=True, relu=True))
    nf_prev, nf = nf, min(nf * 2, 512)
    cfgs.append(dict(cin=nf_prev, cout=nf, stride=1, pad=padw, bn=True, relu=True))
    cfgs.append(dict(cin=nf, cout=1, stride=1, pad=padw, bn=False, relu=False))
    # use_sigmoid=False (default) -> no Sigmoid layer.
    return cfgs


def init_params(key, cfgs):
    """Parameters hold ONLY arrays (no Python ints) so they can be traced."""
    params = []
    for cfg in cfgs:
        key, k_w, k_b, k_g, k_bt = jax.random.split(key, 5)
        cout, cin = cfg['cout'], cfg['cin']
        w = 0.02 * jax.random.normal(k_w, (cout, cin, KW, KW), jnp.float32)  # OIHW
        b = 0.01 * jax.random.normal(k_b, (cout,), jnp.float32)
        gamma = 1.0 + 0.1 * jax.random.normal(k_g, (cout,), jnp.float32)
        beta = 0.05 * jax.random.normal(k_bt, (cout,), jnp.float32)

        cout_p = _round_up(cout, 128)            # lane-dense output channels
        # Flatten OIHW -> (KW*KW*Cin, Cout) matching im2col column order
        # [(i*KW+j)*Cin + c], pad channels, cast weights to bf16 (f32 MXU acc).
        w_flat = jnp.transpose(w, (2, 3, 1, 0)).reshape(KW * KW * cin, cout)
        params.append(dict(
            w=w, b=b, gamma=gamma, beta=beta,
            w_flat=jnp.pad(w_flat, ((0, 0), (0, cout_p - cout))).astype(jnp.bfloat16),
            b_p=jnp.pad(b, (0, cout_p - cout)).reshape(1, cout_p),
            gamma_p=jnp.pad(gamma, (0, cout_p - cout)).reshape(1, cout_p),
            beta_p=jnp.pad(beta, (0, cout_p - cout)).reshape(1, cout_p),
        ))
    return params


# ----------------------------------------------------------------------------
# Forward pass (getIntermFeat=False branch)
# ----------------------------------------------------------------------------
def nlayer_discriminator_lstm_forward(x, params, cfgs,
                                      tm_max=TM_DEFAULT, tk_max=TK_DEFAULT,
                                      tn_max=TN_DEFAULT,
                                      vmem_limit_bytes=VMEM_LIMIT_DEFAULT):
    """x: (B, T, C, H, W) PyTorch layout. Returns list of length T, each
    (B, 1, Hf, Wf) in NCHW, i.e. `ress` from the reference forward."""
    # TODO(synk): the reference forward (getIntermFeat=False) calls
    # self.model(input) on the full 5-D tensor, which errors for Conv2d in
    # PyTorch; we apply the model to input[:, t] per timestep as intended.
    tm_max = max(16, _round_up(int(tm_max), 16))
    tk_max = max(128, _round_up(int(tk_max), 128))
    tn_max = max(128, _round_up(int(tn_max), 128))
    knobs = dict(tm_max=tm_max, tk_max=tk_max, tn_max=tn_max,
                 vmem_limit_bytes=int(vmem_limit_bytes))

    B, T, C, H, W = x.shape

    # First conv has no BatchNorm: batch all timesteps into one pallas_call.
    h = jnp.transpose(x, (1, 0, 3, 4, 2)).reshape(T * B, H, W, C).astype(jnp.float32)
    h = _conv_layer_nobn(h, params[0], cfgs[0], use_relu=True,
                         out_dtype=jnp.bfloat16, **knobs)

    # Middle layers (train-mode BatchNorm, stats per timestep): each layer is
    # ONE pallas_call fused over all timesteps (grid axis T).
    for cfg, p in zip(cfgs[1:-1], params[1:-1]):
        h = _conv_layer_bn(h, T, p, cfg, **knobs)

    # Final conv (no BN / no activation): batch all timesteps again.
    out = _conv_layer_nobn(h, params[-1], cfgs[-1], use_relu=False,
                           out_dtype=jnp.float32, **knobs)
    out = jnp.transpose(out, (0, 3, 1, 2))                   # (T*B, 1, Hf, Wf)
    return [out[t * B:(t + 1) * B] for t in range(T)]


# ----------------------------------------------------------------------------
# References for correctness checks
# ----------------------------------------------------------------------------
def _ref_forward_matched(x, params, cfgs):
    """Pure-JAX reference that mirrors the kernel math (bf16 operands, f32
    accumulation, pre-bias sum/sum^2 BN stats, bf16 pre-BN intermediate and
    inter-layer activations)."""
    B, T = x.shape[0], x.shape[1]
    n_layers = len(cfgs)
    outs = []
    for t in range(T):
        h = jnp.transpose(x[:, t], (0, 2, 3, 1)).astype(jnp.float32)
        for li, (cfg, p) in enumerate(zip(cfgs, params)):
            cout = cfg['cout']
            patches, Ho, Wo = _extract_patches(h, cfg['stride'], cfg['pad'])
            acc = jnp.dot(patches.astype(jnp.bfloat16), p['w_flat'],
                          preferred_element_type=jnp.float32)[:, :cout]
            b = p['b_p'][:, :cout]
            if cfg['bn']:
                mean_nob = jnp.mean(acc, axis=0, keepdims=True)
                var = jnp.maximum(jnp.mean(acc * acc, axis=0, keepdims=True)
                                  - mean_nob * mean_nob, 0.0)
                mean = mean_nob + b
                scale = p['gamma_p'][:, :cout] * jax.lax.rsqrt(var + BN_EPS)
                shift = p['beta_p'][:, :cout] - mean * scale
                xact = (acc + b).astype(jnp.bfloat16).astype(jnp.float32)
                y = xact * scale + shift
            else:
                y = acc + b
            if cfg['relu']:
                y = jnp.where(y > 0, y, LRELU_SLOPE * y)
            if li < n_layers - 1:
                y = y.astype(jnp.bfloat16)
            h = y.reshape(B, Ho, Wo, cout)
        outs.append(jnp.transpose(h.astype(jnp.float32), (0, 3, 1, 2)))
    return outs


def _ref_forward_f32(x, params, cfgs):
    """Full-f32 semantic reference (lax.conv + two-pass train-mode BN)."""
    B, T = x.shape[0], x.shape[1]
    outs = []
    for t in range(T):
        h = jnp.transpose(x[:, t], (0, 2, 3, 1)).astype(jnp.float32)
        for cfg, p in zip(cfgs, params):
            w_hwio = jnp.transpose(p['w'], (2, 3, 1, 0))
            h = jax.lax.conv_general_dilated(
                h, w_hwio, (cfg['stride'], cfg['stride']),
                [(cfg['pad'], cfg['pad']), (cfg['pad'], cfg['pad'])],
                dimension_numbers=('NHWC', 'HWIO', 'NHWC'),
                precision=jax.lax.Precision.HIGHEST)
            h = h + p['b'].reshape(1, 1, 1, -1)
            if cfg['bn']:
                mean = jnp.mean(h, axis=(0, 1, 2), keepdims=True)
                var = jnp.mean(jnp.square(h - mean), axis=(0, 1, 2), keepdims=True)
                h = (h - mean) * jax.lax.rsqrt(var + BN_EPS)
                h = h * p['gamma'].reshape(1, 1, 1, -1) + p['beta'].reshape(1, 1, 1, -1)
            if cfg['relu']:
                h = jnp.where(h > 0, h, LRELU_SLOPE * h)
        outs.append(jnp.transpose(h, (0, 3, 1, 2)))
    return outs


if __name__ == "__main__":
    # Small shapes consistent with the module: (B, T, C, H, W)
    B, T, C, H, W = 2, 2, 3, 16, 16

    key = jax.random.PRNGKey(0)
    k_x, k_p1, k_p2 = jax.random.split(key, 3)
    x = jax.random.normal(k_x, (B, T, C, H, W), jnp.float32)

    # --- Config A: ndf=8, default tiling (single tile per axis at toy sizes).
    cfgs_a = build_discriminator_config(C, ndf=8, n_layers=3)
    params_a = init_params(k_p1, cfgs_a)
    fwd_a = jax.jit(functools.partial(nlayer_discriminator_lstm_forward, cfgs=cfgs_a))
    outs_a = [jax.block_until_ready(o) for o in fwd_a(x, params_a)]

    # --- Config B: same params, tiny tiles -> exercises multi-tile M and K
    # grids, the cross-tile f32 accumulator and cross-tile BN-stat reduction.
    fwd_b = jax.jit(functools.partial(nlayer_discriminator_lstm_forward,
                                      cfgs=cfgs_a, tm_max=32, tk_max=128))
    outs_b = [jax.block_until_ready(o) for o in fwd_b(x, params_a)]

    matched_a = _ref_forward_matched(x, params_a, cfgs_a)
    f32_a = _ref_forward_f32(x, params_a, cfgs_a)
    for o_a, o_b, m, r in zip(outs_a, outs_b, matched_a, f32_a):
        assert o_a.shape == r.shape, (o_a.shape, r.shape)
        np.testing.assert_allclose(np.asarray(o_a), np.asarray(m), rtol=5e-3, atol=5e-3)
        np.testing.assert_allclose(np.asarray(o_b), np.asarray(m), rtol=5e-3, atol=5e-3)
        # Loose vs. f32 reference: the gap is the intentional bf16 quantization
        # of matmul operands / pre-BN intermediates / inter-layer activations.
        np.testing.assert_allclose(np.asarray(o_a), np.asarray(r), rtol=1e-1, atol=1e-1)

    # --- Config C: wider channels + small Cout tile -> exercises the Cout grid
    # axis (per-tile BN stats) and deeper K tiling.
    cfgs_c = build_discriminator_config(C, ndf=32, n_layers=3)
    params_c = init_params(k_p2, cfgs_c)
    fwd_c = jax.jit(functools.partial(nlayer_discriminator_lstm_forward,
                                      cfgs=cfgs_c, tm_max=64, tk_max=256, tn_max=128))
    outs_c = [jax.block_until_ready(o) for o in fwd_c(x, params_c)]
    matched_c = _ref_forward_matched(x, params_c, cfgs_c)
    f32_c = _ref_forward_f32(x, params_c, cfgs_c)
    for o_c, m, r in zip(outs_c, matched_c, f32_c):
        np.testing.assert_allclose(np.asarray(o_c), np.asarray(m), rtol=5e-3, atol=5e-3)
        np.testing.assert_allclose(np.asarray(o_c), np.asarray(r), rtol=1e-1, atol=1e-1)

    print("KERNEL_OK")
</pallas_src>

<mosaic_0001>
module attributes {stable_mosaic.version = 11 : i64} {
  func.func @_conv_bias_act_kernel(%arg0: i32, %arg1: i32, %arg2: i32, %arg3: memref<336x48xbf16, #tpu.memory_space<vmem>>, %arg4: memref<48x128xbf16, #tpu.memory_space<vmem>>, %arg5: memref<1x128xf32, #tpu.memory_space<vmem>>, %arg6: memref<336x128xbf16, #tpu.memory_space<vmem>>, %arg7: memref<336x128xf32, #tpu.memory_space<vmem>>) attributes {dimension_semantics = [#tpu.dimension_semantics<parallel>, #tpu.dimension_semantics<parallel>, #tpu.dimension_semantics<arbitrary>], iteration_bounds = array<i64: 1, 1, 1>, scalar_prefetch = 0 : i64, scratch_operands = 1 : i64, tpu.core_type = #tpu.core_type<tc>, window_params = [{transform_indices = @transform_0, window_bounds = array<i64: 336, 48>}, {transform_indices = @transform_1, window_bounds = array<i64: 48, 128>}, {transform_indices = @transform_2, window_bounds = array<i64: 1, 128>}, {transform_indices = @transform_3, window_bounds = array<i64: 336, 128>}]} {
    %c0_i32 = arith.constant 0 : i32
    %0 = arith.cmpi eq, %arg2, %c0_i32 : i32
    %1 = arith.extui %0 : i1 to i32
    %c0_i32_0 = arith.constant 0 : i32
    %2 = arith.cmpi ne, %1, %c0_i32_0 : i32
    scf.if %2 {
      %cst_10 = arith.constant 0.000000e+00 : f32
      %12 = vector.broadcast %cst_10 : f32 to vector<336x128xf32>
      %c0_11 = arith.constant 0 : index
      %c0_12 = arith.constant 0 : index
      %13 = vector.load %arg7[%c0_11, %c0_12] : memref<336x128xf32, #tpu.memory_space<vmem>>, vector<336x128xf32>
      tpu.vector_store %arg7[%c0_11, %c0_12], %12 {strides = array<i32>} : memref<336x128xf32, #tpu.memory_space<vmem>>, vector<336x128xf32>,
    } else {
    }
    %c0 = arith.constant 0 : index
    %c0_1 = arith.constant 0 : index
    %3 = vector.load %arg7[%c0, %c0_1] : memref<336x128xf32, #tpu.memory_space<vmem>>, vector<336x128xf32>
    %c0_2 = arith.constant 0 : index
    %c0_3 = arith.constant 0 : index
    %4 = vector.load %arg3[%c0_2, %c0_3] : memref<336x48xbf16, #tpu.memory_space<vmem>>, vector<336x48xbf16>
    %c0_4 = arith.constant 0 : index
    %c0_5 = arith.constant 0 : index
    %5 = vector.load %arg4[%c0_4, %c0_5] : memref<48x128xbf16, #tpu.memory_space<vmem>>, vector<48x128xbf16>
    %cst = arith.constant dense<0.000000e+00> : vector<336x128xf32>
    %6 = tpu.matmul %4, %5, %cst {dimension_numbers = #tpu.dot_dimension_numbers<[1], [0], [0], [1], [0, 0, 1, 1], [], []>} : vector<336x48xbf16>, vector<48x128xbf16>, vector<336x128xf32> -> vector<336x128xf32>
    %7 = arith.addf %3, %6 : vector<336x128xf32>
    %c0_6 = arith.constant 0 : index
    %c0_7 = arith.constant 0 : index
    %8 = vector.load %arg7[%c0_6, %c0_7] : memref<336x128xf32, #tpu.memory_space<vmem>>, vector<336x128xf32>
    tpu.vector_store %arg7[%c0_6, %c0_7], %7 {strides = array<i32>} : memref<336x128xf32, #tpu.memory_space<vmem>>, vector<336x128xf32>,
    %c0_i32_8 = arith.constant 0 : i32
    %9 = arith.cmpi eq, %arg2, %c0_i32_8 : i32
    %10 = arith.extui %9 : i1 to i32
    %c0_i32_9 = arith.constant 0 : i32
    %11 = arith.cmpi ne, %10, %c0_i32_9 : i32
    scf.if %11 {
      %c0_10 = arith.constant 0 : index
      %c0_11 = arith.constant 0 : index
      %12 = vector.load %arg7[%c0_10, %c0_11] : memref<336x128xf32, #tpu.memory_space<vmem>>, vector<336x128xf32>
      %c0_12 = arith.constant 0 : index
      %c0_13 = arith.constant 0 : index
      %13 = vector.load %arg5[%c0_12, %c0_13] : memref<1x128xf32, #tpu.memory_space<vmem>>, vector<1x128xf32>
      %14 = vector.broadcast %13 : vector<1x128xf32> to vector<336x128xf32>
      %15 = arith.addf %12, %14 : vector<336x128xf32>
      %cst_14 = arith.constant 0.000000e+00 : f32
      %16 = vector.broadcast %cst_14 : f32 to vector<336x128xf32>
      %17 = arith.cmpf ogt, %15, %16 : vector<336x128xf32>
      %cst_15 = arith.constant 2.000000e-01 : f32
      %18 = vector.broadcast %cst_15 : f32 to vector<336x128xf32>
      %19 = arith.mulf %18, %15 : vector<336x128xf32>
      %20 = arith.select %17, %15, %19 : vector<336x128xi1>, vector<336x128xf32>
      %21 = arith.truncf %20 : vector<336x128xf32> to vector<336x128xbf16>
      %c0_16 = arith.constant 0 : index
      %c0_17 = arith.constant 0 : index
      %22 = vector.load %arg6[%c0_16, %c0_17] : memref<336x128xbf16, #tpu.memory_space<vmem>>, vector<336x128xbf16>
      tpu.vector_store %arg6[%c0_16, %c0_17], %21 {strides = array<i32>} : memref<336x128xbf16, #tpu.memory_space<vmem>>, vector<336x128xbf16>,
    } else {
    }
    return
  }
  func.func @transform_0(%arg0: i32, %arg1: i32, %arg2: i32) -> (i32, i32) {
    %c0_i32 = arith.constant 0 : i32
    return %arg1, %arg2 : i32, i32
  }
  func.func @transform_1(%arg0: i32, %arg1: i32, %arg2: i32) -> (i32, i32) {
    %c0_i32 = arith.constant 0 : i32
    return %arg2, %arg0 : i32, i32
  }
  func.func @transform_2(%arg0: i32, %arg1: i32, %arg2: i32) -> (i32, i32) {
    %c0_i32 = arith.constant 0 : i32
    %c0_i32_0 = arith.constant 0 : i32
    return %c0_i32, %arg0 : i32, i32
  }
  func.func @transform_3(%arg0: i32, %arg1: i32, %arg2: i32) -> (i32, i32) {
    %c0_i32 = arith.constant 0 : i32
    return %arg1, %arg0 : i32, i32
  }
}

module attributes {stable_mosaic.version = 11 : i64} {
  func.func @_bn_lrelu_kernel(%arg0: i32, %arg1: i32, %arg2: memref<1x64x128xbf16, #tpu.memory_space<vmem>>, %arg3: memref<1x1x128xf32, #tpu.memory_space<vmem>>, %arg4: memref<1x1x128xf32, #tpu.memory_space<vmem>>, %arg5: memref<1x64x128xbf16, #tpu.memory_space<vmem>>) attributes {dimension_semantics = [#tpu.dimension_semantics<parallel>, #tpu.dimension_semantics<parallel>], iteration_bounds = array<i64: 2, 1>, scalar_prefetch = 0 : i64, scratch_operands = 0 : i64, tpu.core_type = #tpu.core_type<tc>, window_params = [{transform_indices = @transform_0, window_bounds = array<i64: 1, 64, 128>}, {transform_indices = @transform_1, window_bounds = array<i64: 1, 1, 128>}, {transform_indices = @transform_2, window_bounds = array<i64: 1, 1, 128>}, {transform_indices = @transform_3, window_bounds = array<i64: 1, 64, 128>}]} {
    %c0 = arith.constant 0 : index
    %c0_0 = arith.constant 0 : index
    %c0_1 = arith.constant 0 : index
    %0 = vector.load %arg2[%c0, %c0_0, %c0_1] : memref<1x64x128xbf16, #tpu.memory_space<vmem>>, vector<1x64x128xbf16>
    %1 = vector.shape_cast %0 : vector<1x64x128xbf16> to vector<64x128xbf16>
    %2 = arith.extf %1 : vector<64x128xbf16> to vector<64x128xf32>
    %c0_2 = arith.constant 0 : index
    %c0_3 = arith.constant 0 : index
    %c0_4 = arith.constant 0 : index
    %3 = vector.load %arg3[%c0_2, %c0_3, %c0_4] : memref<1x1x128xf32, #tpu.memory_space<vmem>>, vector<1x1x128xf32>
    %4 = vector.shape_cast %3 : vector<1x1x128xf32> to vector<1x128xf32>
    %5 = vector.broadcast %4 : vector<1x128xf32> to vector<64x128xf32>
    %6 = arith.mulf %2, %5 : vector<64x128xf32>
    %c0_5 = arith.constant 0 : index
    %c0_6 = arith.constant 0 : index
    %c0_7 = arith.constant 0 : index
    %7 = vector.load %arg4[%c0_5, %c0_6, %c0_7] : memref<1x1x128xf32, #tpu.memory_space<vmem>>, vector<1x1x128xf32>
    %8 = vector.shape_cast %7 : vector<1x1x128xf32> to vector<1x128xf32>
    %9 = vector.broadcast %8 : vector<1x128xf32> to vector<64x128xf32>
    %10 = arith.addf %6, %9 : vector<64x128xf32>
    %cst = arith.constant 0.000000e+00 : f32
    %11 = vector.broadcast %cst : f32 to vector<64x128xf32>
    %12 = arith.cmpf ogt, %10, %11 : vector<64x128xf32>
    %cst_8 = arith.constant 2.000000e-01 : f32
    %13 = vector.broadcast %cst_8 : f32 to vector<64x128xf32>
    %14 = arith.mulf %13, %10 : vector<64x128xf32>
    %15 = arith.select %12, %10, %14 : vector<64x128xi1>, vector<64x128xf32>
    %16 = arith.truncf %15 : vector<64x128xf32> to vector<64x128xbf16>
    %c0_9 = arith.constant 0 : index
    %c0_10 = arith.constant 0 : index
    %c0_11 = arith.constant 0 : index
    %17 = vector.load %arg5[%c0_9, %c0_10, %c0_11] : memref<1x64x128xbf16, #tpu.memory_space<vmem>>, vector<1x64x128xbf16>
    %18 = vector.shape_cast %17 : vector<1x64x128xbf16> to vector<64x128xbf16>
    %19 = vector.shape_cast %16 : vector<64x128xbf16> to vector<1x64x128xbf16>
    tpu.vector_store %arg5[%c0_9, %c0_10, %c0_11], %19 {strides = array<i32>} : memref<1x64x128xbf16, #tpu.memory_space<vmem>>, vector<1x64x128xbf16>,
    return
  }
  func.func @transform_0(%arg0: i32, %arg1: i32) -> (i32, i32, i32) {
    %c0_i32 = arith.constant 0 : i32
    %c0_i32_0 = arith.constant 0 : i32
    return %arg0, %arg1, %c0_i32 : i32, i32, i32
  }
  func.func @transform_1(%arg0: i32, %arg1: i32) -> (i32, i32, i32) {
    %c0_i32 = arith.constant 0 : i32
    %c0_i32_0 = arith.constant 0 : i32
    %c0_i32_1 = arith.constant 0 : i32
    return %arg0, %c0_i32, %c0_i32_0 : i32, i32, i32
  }
  func.func @transform_2(%arg0: i32, %arg1: i32) -> (i32, i32, i32) {
    %c0_i32 = arith.constant 0 : i32
    %c0_i32_0 = arith.constant 0 : i32
    %c0_i32_1 = arith.constant 0 : i32
    return %arg0, %c0_i32, %c0_i32_0 : i32, i32, i32
  }
  func.func @transform_3(%arg0: i32, %arg1: i32) -> (i32, i32, i32) {
    %c0_i32 = arith.constant 0 : i32
    %c0_i32_0 = arith.constant 0 : i32
    return %arg0, %arg1, %c0_i32 : i32, i32, i32
  }
}

module attributes {stable_mosaic.version = 11 : i64} {
  func.func @_conv_stats_kernel(%arg0: i32, %arg1: i32, %arg2: i32, %arg3: i32, %arg4: memref<1x64x128xbf16, #tpu.memory_space<vmem>>, %arg5: memref<128x128xbf16, #tpu.memory_space<vmem>>, %arg6: memref<1x128xf32, #tpu.memory_space<vmem>>, %arg7: memref<1x64x128xbf16, #tpu.memory_space<vmem>>, %arg8: memref<1x1x128xf32, #tpu.memory_space<vmem>>, %arg9: memref<1x1x128xf32, #tpu.memory_space<vmem>>, %arg10: memref<64x128xf32, #tpu.memory_space<vmem>>) attributes {dimension_semantics = [#tpu.dimension_semantics<parallel>, #tpu.dimension_semantics<parallel>, #tpu.dimension_semantics<arbitrary>, #tpu.dimension_semantics<arbitrary>], iteration_bounds = array<i64: 2, 1, 1, 1>, scalar_prefetch = 0 : i64, scratch_operands = 1 : i64, tpu.core_type = #tpu.core_type<tc>, window_params = [{transform_indices = @transform_0, window_bounds = array<i64: 1, 64, 128>}, {transform_indices = @transform_1, window_bounds = array<i64: 128, 128>}, {transform_indices = @transform_2, window_bounds = array<i64: 1, 128>}, {transform_indices = @transform_3, window_bounds = array<i64: 1, 64, 128>}, {transform_indices = @transform_4, window_bounds = array<i64: 1, 1, 128>}, {transform_indices = @transform_5, window_bounds = array<i64: 1, 1, 128>}]} {
    %c0_i32 = arith.constant 0 : i32
    %0 = arith.cmpi eq, %arg3, %c0_i32 : i32
    %c0_i32_0 = arith.constant 0 : i32
    %1 = arith.cmpi eq, %arg3, %c0_i32_0 : i32
    %2 = arith.extui %1 : i1 to i32
    %c0_i32_1 = arith.constant 0 : i32
    %3 = arith.cmpi ne, %2, %c0_i32_1 : i32
    scf.if %3 {
      %cst_13 = arith.constant 0.000000e+00 : f32
      %17 = vector.broadcast %cst_13 : f32 to vector<64x128xf32>
      %c0_14 = arith.constant 0 : index
      %c0_15 = arith.constant 0 : index
      %18 = vector.load %arg10[%c0_14, %c0_15] : memref<64x128xf32, #tpu.memory_space<vmem>>, vector<64x128xf32>
      tpu.vector_store %arg10[%c0_14, %c0_15], %17 {strides = array<i32>} : memref<64x128xf32, #tpu.memory_space<vmem>>, vector<64x128xf32>,
    } else {
    }
    %c0 = arith.constant 0 : index
    %c0_2 = arith.constant 0 : index
    %4 = vector.load %arg10[%c0, %c0_2] : memref<64x128xf32, #tpu.memory_space<vmem>>, vector<64x128xf32>
    %c0_3 = arith.constant 0 : index
    %c0_4 = arith.constant 0 : index
    %c0_5 = arith.constant 0 : index
    %5 = vector.load %arg4[%c0_3, %c0_4, %c0_5] : memref<1x64x128xbf16, #tpu.memory_space<vmem>>, vector<1x64x128xbf16>
    %6 = vector.shape_cast %5 : vector<1x64x128xbf16> to vector<64x128xbf16>
    %c0_6 = arith.constant 0 : index
    %c0_7 = arith.constant 0 : index
    %7 = vector.load %arg5[%c0_6, %c0_7] : memref<128x128xbf16, #tpu.memory_space<vmem>>, vector<128x128xbf16>
    %cst = arith.constant dense<0.000000e+00> : vector<64x128xf32>
    %8 = tpu.matmul %6, %7, %cst {dimension_numbers = #tpu.dot_dimension_numbers<[1], [0], [0], [1], [0, 0, 1, 1], [], []>} : vector<64x128xbf16>, vector<128x128xbf16>, vector<64x128xf32> -> vector<64x128xf32>
    %9 = arith.addf %4, %8 : vector<64x128xf32>
    %c0_8 = arith.constant 0 : index
    %c0_9 = arith.constant 0 : index
    %10 = vector.load %arg10[%c0_8, %c0_9] : memref<64x128xf32, #tpu.memory_space<vmem>>, vector<64x128xf32>
    tpu.vector_store %arg10[%c0_8, %c0_9], %9 {strides = array<i32>} : memref<64x128xf32, #tpu.memory_space<vmem>>, vector<64x128xf32>,
    %c0_i32_10 = arith.constant 0 : i32
    %11 = arith.cmpi eq, %arg2, %c0_i32_10 : i32
    %12 = arith.andi %0, %11 : i1
    %13 = arith.extui %12 : i1 to i32
    %c0_i32_11 = arith.constant 0 : i32
    %14 = arith.cmpi ne, %13, %c0_i32_11 : i32
    scf.if %14 {
      %cst_13 = arith.constant 0.000000e+00 : f32
      %17 = vector.broadcast %cst_13 : f32 to vector<1x128xf32>
      %c0_14 = arith.constant 0 : index
      %c0_15 = arith.constant 0 : index
      %c0_16 = arith.constant 0 : index
      %18 = vector.load %arg8[%c0_14, %c0_15, %c0_16] : memref<1x1x128xf32, #tpu.memory_space<vmem>>, vector<1x1x128xf32>
      %19 = vector.shape_cast %18 : vector<1x1x128xf32> to vector<1x128xf32>
      %20 = vector.shape_cast %17 : vector<1x128xf32> to vector<1x1x128xf32>
      tpu.vector_store %arg8[%c0_14, %c0_15, %c0_16], %20 {strides = array<i32>} : memref<1x1x128xf32, #tpu.memory_space<vmem>>, vector<1x1x128xf32>,
      %cst_17 = arith.constant 0.000000e+00 : f32
      %21 = vector.broadcast %cst_17 : f32 to vector<1x128xf32>
      %c0_18 = arith.constant 0 : index
      %c0_19 = arith.constant 0 : index
      %c0_20 = arith.constant 0 : index
      %22 = vector.load %arg9[%c0_18, %c0_19, %c0_20] : memref<1x1x128xf32, #tpu.memory_space<vmem>>, vector<1x1x128xf32>
      %23 = vector.shape_cast %22 : vector<1x1x128xf32> to vector<1x128xf32>
      %24 = vector.shape_cast %21 : vector<1x128xf32> to vector<1x1x128xf32>
      tpu.vector_store %arg9[%c0_18, %c0_19, %c0_20], %24 {strides = array<i32>} : memref<1x1x128xf32, #tpu.memory_space<vmem>>, vector<1x1x128xf32>,
    } else {
    }
    %15 = arith.extui %0 : i1 to i32
    %c0_i32_12 = arith.constant 0 : i32
    %16 = arith.cmpi ne, %15, %c0_i32_12 : i32
    scf.if %16 {
      %c0_13 = arith.constant 0 : index
      %c0_14 = arith.constant 0 : index
      %17 = vector.load %arg10[%c0_13, %c0_14] : memref<64x128xf32, #tpu.memory_space<vmem>>, vector<64x128xf32>
      %c0_15 = arith.constant 0 : index
      %c0_16 = arith.constant 0 : index
      %18 = vector.load %arg6[%c0_15, %c0_16] : memref<1x128xf32, #tpu.memory_space<vmem>>, vector<1x128xf32>
      %19 = vector.broadcast %18 : vector<1x128xf32> to vector<64x128xf32>
      %20 = arith.addf %17, %19 : vector<64x128xf32>
      %21 = arith.truncf %20 : vector<64x128xf32> to vector<64x128xbf16>
      %c0_17 = arith.constant 0 : index
      %c0_18 = arith.constant 0 : index
      %c0_19 = arith.constant 0 : index
      %22 = vector.load %arg7[%c0_17, %c0_18, %c0_19] : memref<1x64x128xbf16, #tpu.memory_space<vmem>>, vector<1x64x128xbf16>
      %23 = vector.shape_cast %22 : vector<1x64x128xbf16> to vector<64x128xbf16>
      %24 = vector.shape_cast %21 : vector<64x128xbf16> to vector<1x64x128xbf16>
      tpu.vector_store %arg7[%c0_17, %c0_18, %c0_19], %24 {strides = array<i32>} : memref<1x64x128xbf16, #tpu.memory_space<vmem>>, vector<1x64x128xbf16>,
      %c0_20 = arith.constant 0 : index
      %c0_21 = arith.constant 0 : index
      %c0_22 = arith.constant 0 : index
      %25 = vector.load %arg8[%c0_20, %c0_21, %c0_22] : memref<1x1x128xf32, #tpu.memory_space<vmem>>, vector<1x1x128xf32>
      %26 = vector.shape_cast %25 : vector<1x1x128xf32> to vector<1x128xf32>
      %cst_23 = arith.constant dense<0.000000e+00> : vector<128xf32>
      %27 = vector.multi_reduction <add>, %17, %cst_23 [0] : vector<64x128xf32> to vector<128xf32>
      %28 = vector.shape_cast %27 : vector<128xf32> to vector<1x128xf32>
      %29 = arith.addf %26, %28 : vector<1x128xf32>
      %c0_24 = arith.constant 0 : index
      %c0_25 = arith.constant 0 : index
      %c0_26 = arith.constant 0 : index
      %30 = vector.load %arg8[%c0_24, %c0_25, %c0_26] : memref<1x1x128xf32, #tpu.memory_space<vmem>>, vector<1x1x128xf32>
      %31 = vector.shape_cast %30 : vector<1x1x128xf32> to vector<1x128xf32>
      %32 = vector.shape_cast %29 : vector<1x128xf32> to vector<1x1x128xf32>
      tpu.vector_store %arg8[%c0_24, %c0_25, %c0_26], %32 {strides = array<i32>} : memref<1x1x128xf32, #tpu.memory_space<vmem>>, vector<1x1x128xf32>,
      %c0_27 = arith.constant 0 : index
      %c0_28 = arith.constant 0 : index
      %c0_29 = arith.constant 0 : index
      %33 = vector.load %arg9[%c0_27, %c0_28, %c0_29] : memref<1x1x128xf32, #tpu.memory_space<vmem>>, vector<1x1x128xf32>
      %34 = vector.shape_cast %33 : vector<1x1x128xf32> to vector<1x128xf32>
      %35 = arith.mulf %17, %17 : vector<64x128xf32>
      %cst_30 = arith.constant dense<0.000000e+00> : vector<128xf32>
      %36 = vector.multi_reduction <add>, %35, %cst_30 [0] : vector<64x128xf32> to vector<128xf32>
      %37 = vector.shape_cast %36 : vector<128xf32> to vector<1x128xf32>
      %38 = arith.addf %34, %37 : vector<1x128xf32>
      %c0_31 = arith.constant 0 : index
      %c0_32 = arith.constant 0 : index
      %c0_33 = arith.constant 0 : index
      %39 = vector.load %arg9[%c0_31, %c0_32, %c0_33] : memref<1x1x128xf32, #tpu.memory_space<vmem>>, vector<1x1x128xf32>
      %40 = vector.shape_cast %39 : vector<1x1x128xf32> to vector<1x128xf32>
      %41 = vector.shape_cast %38 : vector<1x128xf32> to vector<1x1x128xf32>
      tpu.vector_store %arg9[%c0_31, %c0_32, %c0_33], %41 {strides = array<i32>} : memref<1x1x128xf32, #tpu.memory_space<vmem>>, vector<1x1x128xf32>,
    } else {
    }
    return
  }
  func.func @transform_0(%arg0: i32, %arg1: i32, %arg2: i32, %arg3: i32) -> (i32, i32, i32) {
    %c0_i32 = arith.constant 0 : i32
    return %arg0, %arg2, %arg3 : i32, i32, i32
  }
  func.func @transform_1(%arg0: i32, %arg1: i32, %arg2: i32, %arg3: i32) -> (i32, i32) {
    %c0_i32 = arith.constant 0 : i32
    return %arg3, %arg1 : i32, i32
  }
  func.func @transform_2(%arg0: i32, %arg1: i32, %arg2: i32, %arg3: i32) -> (i32, i32) {
    %c0_i32 = arith.constant 0 : i32
    %c0_i32_0 = arith.constant 0 : i32
    return %c0_i32, %arg1 : i32, i32
  }
  func.func @transform_3(%arg0: i32, %arg1: i32, %arg2: i32, %arg3: i32) -> (i32, i32, i32) {
    %c0_i32 = arith.constant 0 : i32
    return %arg0, %arg2, %arg1 : i32, i32, i32
  }
  func.func @transform_4(%arg0: i32, %arg1: i32, %arg2: i32, %arg3: i32) -> (i32, i32, i32) {
    %c0_i32 = arith.constant 0 : i32
    %c0_i32_0 = arith.constant 0 : i32
    return %arg0, %c0_i32, %arg1 : i32, i32, i32
  }
  func.func @transform_5(%arg0: i32, %arg1: i32, %arg2: i32, %arg3: i32) -> (i32, i32, i32) {
    %c0_i32 = arith.constant 0 : i32
    %c0_i32_0 = arith.constant 0 : i32
    return %arg0, %c0_i32, %arg1 : i32, i32, i32
  }
}

module attributes {stable_mosaic.version = 11 : i64} {
  func.func @_conv_stats_kernel(%arg0: i32, %arg1: i32, %arg2: i32, %arg3: i32, %arg4: memref<1x32x256xbf16, #tpu.memory_space<vmem>>, %arg5: memref<256x128xbf16, #tpu.memory_space<vmem>>, %arg6: memref<1x128xf32, #tpu.memory_space<vmem>>, %arg7: memref<1x32x128xbf16, #tpu.memory_space<vmem>>, %arg8: memref<1x1x128xf32, #tpu.memory_space<vmem>>, %arg9: memref<1x1x128xf32, #tpu.memory_space<vmem>>, %arg10: memref<32x128xf32, #tpu.memory_space<vmem>>) attributes {dimension_semantics = [#tpu.dimension_semantics<parallel>, #tpu.dimension_semantics<parallel>, #tpu.dimension_semantics<arbitrary>, #tpu.dimension_semantics<arbitrary>], iteration_bounds = array<i64: 2, 1, 1, 1>, scalar_prefetch = 0 : i64, scratch_operands = 1 : i64, tpu.core_type = #tpu.core_type<tc>, window_params = [{transform_indices = @transform_0, window_bounds = array<i64: 1, 32, 256>}, {transform_indices = @transform_1, window_bounds = array<i64: 256, 128>}, {transform_indices = @transform_2, window_bounds = array<i64: 1, 128>}, {transform_indices = @transform_3, window_bounds = array<i64: 1, 32, 128>}, {transform_indices = @transform_4, window_bounds = array<i64: 1, 1, 128>}, {transform_indices = @transform_5, window_bounds = array<i64: 1, 1, 128>}]} {
    %c0_i32 = arith.constant 0 : i32
    %0 = arith.cmpi eq, %arg3, %c0_i32 : i32
    %c0_i32_0 = arith.constant 0 : i32
    %1 = arith.cmpi eq, %arg3, %c0_i32_0 : i32
    %2 = arith.extui %1 : i1 to i32
    %c0_i32_1 = arith.constant 0 : i32
    %3 = arith.cmpi ne, %2, %c0_i32_1 : i32
    scf.if %3 {
      %cst_13 = arith.constant 0.000000e+00 : f32
      %17 = vector.broadcast %cst_13 : f32 to vector<32x128xf32>
      %c0_14 = arith.constant 0 : index
      %c0_15 = arith.constant 0 : index
      %18 = vector.load %arg10[%c0_14, %c0_15] : memref<32x128xf32, #tpu.memory_space<vmem>>, vector<32x128xf32>
      tpu.vector_store %arg10[%c0_14, %c0_15], %17 {strides = array<i32>} : memref<32x128xf32, #tpu.memory_space<vmem>>, vector<32x128xf32>,
    } else {
    }
    %c0 = arith.constant 0 : index
    %c0_2 = arith.constant 0 : index
    %4 = vector.load %arg10[%c0, %c0_2] : memref<32x128xf32, #tpu.memory_space<vmem>>, vector<32x128xf32>
    %c0_3 = arith.constant 0 : index
    %c0_4 = arith.constant 0 : index
    %c0_5 = arith.constant 0 : index
    %5 = vector.load %arg4[%c0_3, %c0_4, %c0_5] : memref<1x32x256xbf16, #tpu.memory_space<vmem>>, vector<1x32x256xbf16>
    %6 = vector.shape_cast %5 : vector<1x32x256xbf16> to vector<32x256xbf16>
    %c0_6 = arith.constant 0 : index
    %c0_7 = arith.constant 0 : index
    %7 = vector.load %arg5[%c0_6, %c0_7] : memref<256x128xbf16, #tpu.memory_space<vmem>>, vector<256x128xbf16>
    %cst = arith.constant dense<0.000000e+00> : vector<32x128xf32>
    %8 = tpu.matmul %6, %7, %cst {dimension_numbers = #tpu.dot_dimension_numbers<[1], [0], [0], [1], [0, 0, 1, 1], [], []>} : vector<32x256xbf16>, vector<256x128xbf16>, vector<32x128xf32> -> vector<32x128xf32>
    %9 = arith.addf %4, %8 : vector<32x128xf32>
    %c0_8 = arith.constant 0 : index
    %c0_9 = arith.constant 0 : index
    %10 = vector.load %arg10[%c0_8, %c0_9] : memref<32x128xf32, #tpu.memory_space<vmem>>, vector<32x128xf32>
    tpu.vector_store %arg10[%c0_8, %c0_9], %9 {strides = array<i32>} : memref<32x128xf32, #tpu.memory_space<vmem>>, vector<32x128xf32>,
    %c0_i32_10 = arith.constant 0 : i32
    %11 = arith.cmpi eq, %arg2, %c0_i32_10 : i32
    %12 = arith.andi %0, %11 : i1
    %13 = arith.extui %12 : i1 to i32
    %c0_i32_11 = arith.constant 0 : i32
    %14 = arith.cmpi ne, %13, %c0_i32_11 : i32
    scf.if %14 {
      %cst_13 = arith.constant 0.000000e+00 : f32
      %17 = vector.broadcast %cst_13 : f32 to vector<1x128xf32>
      %c0_14 = arith.constant 0 : index
      %c0_15 = arith.constant 0 : index
      %c0_16 = arith.constant 0 : index
      %18 = vector.load %arg8[%c0_14, %c0_15, %c0_16] : memref<1x1x128xf32, #tpu.memory_space<vmem>>, vector<1x1x128xf32>
      %19 = vector.shape_cast %18 : vector<1x1x128xf32> to vector<1x128xf32>
      %20 = vector.shape_cast %17 : vector<1x128xf32> to vector<1x1x128xf32>
      tpu.vector_store %arg8[%c0_14, %c0_15, %c0_16], %20 {strides = array<i32>} : memref<1x1x128xf32, #tpu.memory_space<vmem>>, vector<1x1x128xf32>,
      %cst_17 = arith.constant 0.000000e+00 : f32
      %21 = vector.broadcast %cst_17 : f32 to vector<1x128xf32>
      %c0_18 = arith.constant 0 : index
      %c0_19 = arith.constant 0 : index
      %c0_20 = arith.constant 0 : index
      %22 = vector.load %arg9[%c0_18, %c0_19, %c0_20] : memref<1x1x128xf32, #tpu.memory_space<vmem>>, vector<1x1x128xf32>
      %23 = vector.shape_cast %22 : vector<1x1x128xf32> to vector<1x128xf32>
      %24 = vector.shape_cast %21 : vector<1x128xf32> to vector<1x1x128xf32>
      tpu.vector_store %arg9[%c0_18, %c0_19, %c0_20], %24 {strides = array<i32>} : memref<1x1x128xf32, #tpu.memory_space<vmem>>, vector<1x1x128xf32>,
    } else {
    }
    %15 = arith.extui %0 : i1 to i32
    %c0_i32_12 = arith.constant 0 : i32
    %16 = arith.cmpi ne, %15, %c0_i32_12 : i32
    scf.if %16 {
      %c0_13 = arith.constant 0 : index
      %c0_14 = arith.constant 0 : index
      %17 = vector.load %arg10[%c0_13, %c0_14] : memref<32x128xf32, #tpu.memory_space<vmem>>, vector<32x128xf32>
      %c0_15 = arith.constant 0 : index
      %c0_16 = arith.constant 0 : index
      %18 = vector.load %arg6[%c0_15, %c0_16] : memref<1x128xf32, #tpu.memory_space<vmem>>, vector<1x128xf32>
      %19 = vector.broadcast %18 : vector<1x128xf32> to vector<32x128xf32>
      %20 = arith.addf %17, %19 : vector<32x128xf32>
      %21 = arith.truncf %20 : vector<32x128xf32> to vector<32x128xbf16>
      %c0_17 = arith.constant 0 : index
      %c0_18 = arith.constant 0 : index
      %c0_19 = arith.constant 0 : index
      %22 = vector.load %arg7[%c0_17, %c0_18, %c0_19] : memref<1x32x128xbf16, #tpu.memory_space<vmem>>, vector<1x32x128xbf16>
      %23 = vector.shape_cast %22 : vector<1x32x128xbf16> to vector<32x128xbf16>
      %24 = vector.shape_cast %21 : vector<32x128xbf16> to vector<1x32x128xbf16>
      tpu.vector_store %arg7[%c0_17, %c0_18, %c0_19], %24 {strides = array<i32>} : memref<1x32x128xbf16, #tpu.memory_space<vmem>>, vector<1x32x128xbf16>,
      %c0_20 = arith.constant 0 : index
      %c0_21 = arith.constant 0 : index
      %c0_22 = arith.constant 0 : index
      %25 = vector.load %arg8[%c0_20, %c0_21, %c0_22] : memref<1x1x128xf32, #tpu.memory_space<vmem>>, vector<1x1x128xf32>
      %26 = vector.shape_cast %25 : vector<1x1x128xf32> to vector<1x128xf32>
      %cst_23 = arith.constant dense<0.000000e+00> : vector<128xf32>
      %27 = vector.multi_reduction <add>, %17, %cst_23 [0] : vector<32x128xf32> to vector<128xf32>
      %28 = vector.shape_cast %27 : vector<128xf32> to vector<1x128xf32>
      %29 = arith.addf %26, %28 : vector<1x128xf32>
      %c0_24 = arith.constant 0 : index
      %c0_25 = arith.constant 0 : index
      %c0_26 = arith.constant 0 : index
      %30 = vector.load %arg8[%c0_24, %c0_25, %c0_26] : memref<1x1x128xf32, #tpu.memory_space<vmem>>, vector<1x1x128xf32>
      %31 = vector.shape_cast %30 : vector<1x1x128xf32> to vector<1x128xf32>
      %32 = vector.shape_cast %29 : vector<1x128xf32> to vector<1x1x128xf32>
      tpu.vector_store %arg8[%c0_24, %c0_25, %c0_26], %32 {strides = array<i32>} : memref<1x1x128xf32, #tpu.memory_space<vmem>>, vector<1x1x128xf32>,
      %c0_27 = arith.constant 0 : index
      %c0_28 = arith.constant 0 : index
      %c0_29 = arith.constant 0 : index
      %33 = vector.load %arg9[%c0_27, %c0_28, %c0_29] : memref<1x1x128xf32, #tpu.memory_space<vmem>>, vector<1x1x128xf32>
      %34 = vector.shape_cast %33 : vector<1x1x128xf32> to vector<1x128xf32>
      %35 = arith.mulf %17, %17 : vector<32x128xf32>
      %cst_30 = arith.constant dense<0.000000e+00> : vector<128xf32>
      %36 = vector.multi_reduction <add>, %35, %cst_30 [0] : vector<32x128xf32> to vector<128xf32>
      %37 = vector.shape_cast %36 : vector<128xf32> to vector<1x128xf32>
      %38 = arith.addf %34, %37 : vector<1x128xf32>
      %c0_31 = arith.constant 0 : index
      %c0_32 = arith.constant 0 : index
      %c0_33 = arith.constant 0 : index
      %39 = vector.load %arg9[%c0_31, %c0_32, %c0_33] : memref<1x1x128xf32, #tpu.memory_space<vmem>>, vector<1x1x128xf32>
      %40 = vector.shape_cast %39 : vector<1x1x128xf32> to vector<1x128xf32>
      %41 = vector.shape_cast %38 : vector<1x128xf32> to vector<1x1x128xf32>
      tpu.vector_store %arg9[%c0_31, %c0_32, %c0_33], %41 {strides = array<i32>} : memref<1x1x128xf32, #tpu.memory_space<vmem>>, vector<1x1x128xf32>,
    } else {
    }
    return
  }
  func.func @transform_0(%arg0: i32, %arg1: i32, %arg2: i32, %arg3: i32) -> (i32, i32, i32) {
    %c0_i32 = arith.constant 0 : i32
    return %arg0, %arg2, %arg3 : i32, i32, i32
  }
  func.func @transform_1(%arg0: i32, %arg1: i32, %arg2: i32, %arg3: i32) -> (i32, i32) {
    %c0_i32 = arith.constant 0 : i32
    return %arg3, %arg1 : i32, i32
  }
  func.func @transform_2(%arg0: i32, %arg1: i32, %arg2: i32, %arg3: i32) -> (i32, i32) {
    %c0_i32 = arith.constant 0 : i32
    %c0_i32_0 = arith.constant 0 : i32
    return %c0_i32, %arg1 : i32, i32
  }
  func.func @transform_3(%arg0: i32, %arg1: i32, %arg2: i32, %arg3: i32) -> (i32, i32, i32) {
    %c0_i32 = arith.constant 0 : i32
    return %arg0, %arg2, %arg1 : i32, i32, i32
  }
  func.func @transform_4(%arg0: i32, %arg1: i32, %arg2: i32, %arg3: i32) -> (i32, i32, i32) {
    %c0_i32 = arith.constant 0 : i32
    %c0_i32_0 = arith.constant 0 : i32
    return %arg0, %c0_i32, %arg1 : i32, i32, i32
  }
  func.func @transform_5(%arg0: i32, %arg1: i32, %arg2: i32, %arg3: i32) -> (i32, i32, i32) {
    %c0_i32 = arith.constant 0 : i32
    %c0_i32_0 = arith.constant 0 : i32
    return %arg0, %c0_i32, %arg1 : i32, i32, i32
  }
}

module attributes {stable_mosaic.version = 11 : i64} {
  func.func @_bn_lrelu_kernel(%arg0: i32, %arg1: i32, %arg2: memref<1x32x128xbf16, #tpu.memory_space<vmem>>, %arg3: memref<1x1x128xf32, #tpu.memory_space<vmem>>, %arg4: memref<1x1x128xf32, #tpu.memory_space<vmem>>, %arg5: memref<1x32x128xbf16, #tpu.memory_space<vmem>>) attributes {dimension_semantics = [#tpu.dimension_semantics<parallel>, #tpu.dimension_semantics<parallel>], iteration_bounds = array<i64: 2, 1>, scalar_prefetch = 0 : i64, scratch_operands = 0 : i64, tpu.core_type = #tpu.core_type<tc>, window_params = [{transform_indices = @transform_0, window_bounds = array<i64: 1, 32, 128>}, {transform_indices = @transform_1, window_bounds = array<i64: 1, 1, 128>}, {transform_indices = @transform_2, window_bounds = array<i64: 1, 1, 128>}, {transform_indices = @transform_3, window_bounds = array<i64: 1, 32, 128>}]} {
    %c0 = arith.constant 0 : index
    %c0_0 = arith.constant 0 : index
    %c0_1 = arith.constant 0 : index
    %0 = vector.load %arg2[%c0, %c0_0, %c0_1] : memref<1x32x128xbf16, #tpu.memory_space<vmem>>, vector<1x32x128xbf16>
    %1 = vector.shape_cast %0 : vector<1x32x128xbf16> to vector<32x128xbf16>
    %2 = arith.extf %1 : vector<32x128xbf16> to vector<32x128xf32>
    %c0_2 = arith.constant 0 : index
    %c0_3 = arith.constant 0 : index
    %c0_4 = arith.constant 0 : index
    %3 = vector.load %arg3[%c0_2, %c0_3, %c0_4] : memref<1x1x128xf32, #tpu.memory_space<vmem>>, vector<1x1x128xf32>
    %4 = vector.shape_cast %3 : vector<1x1x128xf32> to vector<1x128xf32>
    %5 = vector.broadcast %4 : vector<1x128xf32> to vector<32x128xf32>
    %6 = arith.mulf %2, %5 : vector<32x128xf32>
    %c0_5 = arith.constant 0 : index
    %c0_6 = arith.constant 0 : index
    %c0_7 = arith.constant 0 : index
    %7 = vector.load %arg4[%c0_5, %c0_6, %c0_7] : memref<1x1x128xf32, #tpu.memory_space<vmem>>, vector<1x1x128xf32>
    %8 = vector.shape_cast %7 : vector<1x1x128xf32> to vector<1x128xf32>
    %9 = vector.broadcast %8 : vector<1x128xf32> to vector<32x128xf32>
    %10 = arith.addf %6, %9 : vector<32x128xf32>
    %cst = arith.constant 0.000000e+00 : f32
    %11 = vector.broadcast %cst : f32 to vector<32x128xf32>
    %12 = arith.cmpf ogt, %10, %11 : vector<32x128xf32>
    %cst_8 = arith.constant 2.000000e-01 : f32
    %13 = vector.broadcast %cst_8 : f32 to vector<32x128xf32>
    %14 = arith.mulf %13, %10 : vector<32x128xf32>
    %15 = arith.select %12, %10, %14 : vector<32x128xi1>, vector<32x128xf32>
    %16 = arith.truncf %15 : vector<32x128xf32> to vector<32x128xbf16>
    %c0_9 = arith.constant 0 : index
    %c0_10 = arith.constant 0 : index
    %c0_11 = arith.constant 0 : index
    %17 = vector.load %arg5[%c0_9, %c0_10, %c0_11] : memref<1x32x128xbf16, #tpu.memory_space<vmem>>, vector<1x32x128xbf16>
    %18 = vector.shape_cast %17 : vector<1x32x128xbf16> to vector<32x128xbf16>
    %19 = vector.shape_cast %16 : vector<32x128xbf16> to vector<1x32x128xbf16>
    tpu.vector_store %arg5[%c0_9, %c0_10, %c0_11], %19 {strides = array<i32>} : memref<1x32x128xbf16, #tpu.memory_space<vmem>>, vector<1x32x128xbf16>,
    return
  }
  func.func @transform_0(%arg0: i32, %arg1: i32) -> (i32, i32, i32) {
    %c0_i32 = arith.constant 0 : i32
    %c0_i32_0 = arith.constant 0 : i32
    return %arg0, %arg1, %c0_i32 : i32, i32, i32
  }
  func.func @transform_1(%arg0: i32, %arg1: i32) -> (i32, i32, i32) {
    %c0_i32 = arith.constant 0 : i32
    %c0_i32_0 = arith.constant 0 : i32
    %c0_i32_1 = arith.constant 0 : i32
    return %arg0, %c0_i32, %c0_i32_0 : i32, i32, i32
  }
  func.func @transform_2(%arg0: i32, %arg1: i32) -> (i32, i32, i32) {
    %c0_i32 = arith.constant 0 : i32
    %c0_i32_0 = arith.constant 0 : i32
    %c0_i32_1 = arith.constant 0 : i32
    return %arg0, %c0_i32, %c0_i32_0 : i32, i32, i32
  }
  func.func @transform_3(%arg0: i32, %arg1: i32) -> (i32, i32, i32) {
    %c0_i32 = arith.constant 0 : i32
    %c0_i32_0 = arith.constant 0 : i32
    return %arg0, %arg1, %c0_i32 : i32, i32, i32
  }
}

module attributes {stable_mosaic.version = 11 : i64} {
  func.func @_conv_stats_kernel(%arg0: i32, %arg1: i32, %arg2: i32, %arg3: i32, %arg4: memref<1x32x512xbf16, #tpu.memory_space<vmem>>, %arg5: memref<512x128xbf16, #tpu.memory_space<vmem>>, %arg6: memref<1x128xf32, #tpu.memory_space<vmem>>, %arg7: memref<1x32x128xbf16, #tpu.memory_space<vmem>>, %arg8: memref<1x1x128xf32, #tpu.memory_space<vmem>>, %arg9: memref<1x1x128xf32, #tpu.memory_space<vmem>>, %arg10: memref<32x128xf32, #tpu.memory_space<vmem>>) attributes {dimension_semantics = [#tpu.dimension_semantics<parallel>, #tpu.dimension_semantics<parallel>, #tpu.dimension_semantics<arbitrary>, #tpu.dimension_semantics<arbitrary>], iteration_bounds = array<i64: 2, 1, 1, 1>, scalar_prefetch = 0 : i64, scratch_operands = 1 : i64, tpu.core_type = #tpu.core_type<tc>, window_params = [{transform_indices = @transform_0, window_bounds = array<i64: 1, 32, 512>}, {transform_indices = @transform_1, window_bounds = array<i64: 512, 128>}, {transform_indices = @transform_2, window_bounds = array<i64: 1, 128>}, {transform_indices = @transform_3, window_bounds = array<i64: 1, 32, 128>}, {transform_indices = @transform_4, window_bounds = array<i64: 1, 1, 128>}, {transform_indices = @transform_5, window_bounds = array<i64: 1, 1, 128>}]} {
    %c0_i32 = arith.constant 0 : i32
    %0 = arith.cmpi eq, %arg3, %c0_i32 : i32
    %c0_i32_0 = arith.constant 0 : i32
    %1 = arith.cmpi eq, %arg3, %c0_i32_0 : i32
    %2 = arith.extui %1 : i1 to i32
    %c0_i32_1 = arith.constant 0 : i32
    %3 = arith.cmpi ne, %2, %c0_i32_1 : i32
    scf.if %3 {
      %cst_13 = arith.constant 0.000000e+00 : f32
      %17 = vector.broadcast %cst_13 : f32 to vector<32x128xf32>
      %c0_14 = arith.constant 0 : index
      %c0_15 = arith.constant 0 : index
      %18 = vector.load %arg10[%c0_14, %c0_15] : memref<32x128xf32, #tpu.memory_space<vmem>>, vector<32x128xf32>
      tpu.vector_store %arg10[%c0_14, %c0_15], %17 {strides = array<i32>} : memref<32x128xf32, #tpu.memory_space<vmem>>, vector<32x128xf32>,
    } else {
    }
    %c0 = arith.constant 0 : index
    %c0_2 = arith.constant 0 : index
    %4 = vector.load %arg10[%c0, %c0_2] : memref<32x128xf32, #tpu.memory_space<vmem>>, vector<32x128xf32>
    %c0_3 = arith.constant 0 : index
    %c0_4 = arith.constant 0 : index
    %c0_5 = arith.constant 0 : index
    %5 = vector.load %arg4[%c0_3, %c0_4, %c0_5] : memref<1x32x512xbf16, #tpu.memory_space<vmem>>, vector<1x32x512xbf16>
    %6 = vector.shape_cast %5 : vector<1x32x512xbf16> to vector<32x512xbf16>
    %c0_6 = arith.constant 0 : index
    %c0_7 = arith.constant 0 : index
    %7 = vector.load %arg5[%c0_6, %c0_7] : memref<512x128xbf16, #tpu.memory_space<vmem>>, vector<512x128xbf16>
    %cst = arith.constant dense<0.000000e+00> : vector<32x128xf32>
    %8 = tpu.matmul %6, %7, %cst {dimension_numbers = #tpu.dot_dimension_numbers<[1], [0], [0], [1], [0, 0, 1, 1], [], []>} : vector<32x512xbf16>, vector<512x128xbf16>, vector<32x128xf32> -> vector<32x128xf32>
    %9 = arith.addf %4, %8 : vector<32x128xf32>
    %c0_8 = arith.constant 0 : index
    %c0_9 = arith.constant 0 : index
    %10 = vector.load %arg10[%c0_8, %c0_9] : memref<32x128xf32, #tpu.memory_space<vmem>>, vector<32x128xf32>
    tpu.vector_store %arg10[%c0_8, %c0_9], %9 {strides = array<i32>} : memref<32x128xf32, #tpu.memory_space<vmem>>, vector<32x128xf32>,
    %c0_i32_10 = arith.constant 0 : i32
    %11 = arith.cmpi eq, %arg2, %c0_i32_10 : i32
    %12 = arith.andi %0, %11 : i1
    %13 = arith.extui %12 : i1 to i32
    %c0_i32_11 = arith.constant 0 : i32
    %14 = arith.cmpi ne, %13, %c0_i32_11 : i32
    scf.if %14 {
      %cst_13 = arith.constant 0.000000e+00 : f32
      %17 = vector.broadcast %cst_13 : f32 to vector<1x128xf32>
      %c0_14 = arith.constant 0 : index
      %c0_15 = arith.constant 0 : index
      %c0_16 = arith.constant 0 : index
      %18 = vector.load %arg8[%c0_14, %c0_15, %c0_16] : memref<1x1x128xf32, #tpu.memory_space<vmem>>, vector<1x1x128xf32>
      %19 = vector.shape_cast %18 : vector<1x1x128xf32> to vector<1x128xf32>
      %20 = vector.shape_cast %17 : vector<1x128xf32> to vector<1x1x128xf32>
      tpu.vector_store %arg8[%c0_14, %c0_15, %c0_16], %20 {strides = array<i32>} : memref<1x1x128xf32, #tpu.memory_space<vmem>>, vector<1x1x128xf32>,
      %cst_17 = arith.constant 0.000000e+00 : f32
      %21 = vector.broadcast %cst_17 : f32 to vector<1x128xf32>
      %c0_18 = arith.constant 0 : index
      %c0_19 = arith.constant 0 : index
      %c0_20 = arith.constant 0 : index
      %22 = vector.load %arg9[%c0_18, %c0_19, %c0_20] : memref<1x1x128xf32, #tpu.memory_space<vmem>>, vector<1x1x128xf32>
      %23 = vector.shape_cast %22 : vector<1x1x128xf32> to vector<1x128xf32>
      %24 = vector.shape_cast %21 : vector<1x128xf32> to vector<1x1x128xf32>
      tpu.vector_store %arg9[%c0_18, %c0_19, %c0_20], %24 {strides = array<i32>} : memref<1x1x128xf32, #tpu.memory_space<vmem>>, vector<1x1x128xf32>,
    } else {
    }
    %15 = arith.extui %0 : i1 to i32
    %c0_i32_12 = arith.constant 0 : i32
    %16 = arith.cmpi ne, %15, %c0_i32_12 : i32
    scf.if %16 {
      %c0_13 = arith.constant 0 : index
      %c0_14 = arith.constant 0 : index
      %17 = vector.load %arg10[%c0_13, %c0_14] : memref<32x128xf32, #tpu.memory_space<vmem>>, vector<32x128xf32>
      %c0_15 = arith.constant 0 : index
      %c0_16 = arith.constant 0 : index
      %18 = vector.load %arg6[%c0_15, %c0_16] : memref<1x128xf32, #tpu.memory_space<vmem>>, vector<1x128xf32>
      %19 = vector.broadcast %18 : vector<1x128xf32> to vector<32x128xf32>
      %20 = arith.addf %17, %19 : vector<32x128xf32>
      %21 = arith.truncf %20 : vector<32x128xf32> to vector<32x128xbf16>
      %c0_17 = arith.constant 0 : index
      %c0_18 = arith.constant 0 : index
      %c0_19 = arith.constant 0 : index
      %22 = vector.load %arg7[%c0_17, %c0_18, %c0_19] : memref<1x32x128xbf16, #tpu.memory_space<vmem>>, vector<1x32x128xbf16>
      %23 = vector.shape_cast %22 : vector<1x32x128xbf16> to vector<32x128xbf16>
      %24 = vector.shape_cast %21 : vector<32x128xbf16> to vector<1x32x128xbf16>
      tpu.vector_store %arg7[%c0_17, %c0_18, %c0_19], %24 {strides = array<i32>} : memref<1x32x128xbf16, #tpu.memory_space<vmem>>, vector<1x32x128xbf16>,
      %c0_20 = arith.constant 0 : index
      %c0_21 = arith.constant 0 : index
      %c0_22 = arith.constant 0 : index
      %25 = vector.load %arg8[%c0_20, %c0_21, %c0_22] : memref<1x1x128xf32, #tpu.memory_space<vmem>>, vector<1x1x128xf32>
      %26 = vector.shape_cast %25 : vector<1x1x128xf32> to vector<1x128xf32>
      %cst_23 = arith.constant dense<0.000000e+00> : vector<128xf32>
      %27 = vector.multi_reduction <add>, %17, %cst_23 [0] : vector<32x128xf32> to vector<128xf32>
      %28 = vector.shape_cast %27 : vector<128xf32> to vector<1x128xf32>
      %29 = arith.addf %26, %28 : vector<1x128xf32>
      %c0_24 = arith.constant 0 : index
      %c0_25 = arith.constant 0 : index
      %c0_26 = arith.constant 0 : index
      %30 = vector.load %arg8[%c0_24, %c0_25, %c0_26] : memref<1x1x128xf32, #tpu.memory_space<vmem>>, vector<1x1x128xf32>
      %31 = vector.shape_cast %30 : vector<1x1x128xf32> to vector<1x128xf32>
      %32 = vector.shape_cast %29 : vector<1x128xf32> to vector<1x1x128xf32>
      tpu.vector_store %arg8[%c0_24, %c0_25, %c0_26], %32 {strides = array<i32>} : memref<1x1x128xf32, #tpu.memory_space<vmem>>, vector<1x1x128xf32>,
      %c0_27 = arith.constant 0 : index
      %c0_28 = arith.constant 0 : index
      %c0_29 = arith.constant 0 : index
      %33 = vector.load %arg9[%c0_27, %c0_28, %c0_29] : memref<1x1x128xf32, #tpu.memory_space<vmem>>, vector<1x1x128xf32>
      %34 = vector.shape_cast %33 : vector<1x1x128xf32> to vector<1x128xf32>
      %35 = arith.mulf %17, %17 : vector<32x128xf32>
      %cst_30 = arith.constant dense<0.000000e+00> : vector<128xf32>
      %36 = vector.multi_reduction <add>, %35, %cst_30 [0] : vector<32x128xf32> to vector<128xf32>
      %37 = vector.shape_cast %36 : vector<128xf32> to vector<1x128xf32>
      %38 = arith.addf %34, %37 : vector<1x128xf32>
      %c0_31 = arith.constant 0 : index
      %c0_32 = arith.constant 0 : index
      %c0_33 = arith.constant 0 : index
      %39 = vector.load %arg9[%c0_31, %c0_32, %c0_33] : memref<1x1x128xf32, #tpu.memory_space<vmem>>, vector<1x1x128xf32>
      %40 = vector.shape_cast %39 : vector<1x1x128xf32> to vector<1x128xf32>
      %41 = vector.shape_cast %38 : vector<1x128xf32> to vector<1x1x128xf32>
      tpu.vector_store %arg9[%c0_31, %c0_32, %c0_33], %41 {strides = array<i32>} : memref<1x1x128xf32, #tpu.memory_space<vmem>>, vector<1x1x128xf32>,
    } else {
    }
    return
  }
  func.func @transform_0(%arg0: i32, %arg1: i32, %arg2: i32, %arg3: i32) -> (i32, i32, i32) {
    %c0_i32 = arith.constant 0 : i32
    return %arg0, %arg2, %arg3 : i32, i32, i32
  }
  func.func @transform_1(%arg0: i32, %arg1: i32, %arg2: i32, %arg3: i32) -> (i32, i32) {
    %c0_i32 = arith.constant 0 : i32
    return %arg3, %arg1 : i32, i32
  }
  func.func @transform_2(%arg0: i32, %arg1: i32, %arg2: i32, %arg3: i32) -> (i32, i32) {
    %c0_i32 = arith.constant 0 : i32
    %c0_i32_0 = arith.constant 0 : i32
    return %c0_i32, %arg1 : i32, i32
  }
  func.func @transform_3(%arg0: i32, %arg1: i32, %arg2: i32, %arg3: i32) -> (i32, i32, i32) {
    %c0_i32 = arith.constant 0 : i32
    return %arg0, %arg2, %arg1 : i32, i32, i32
  }
  func.func @transform_4(%arg0: i32, %arg1: i32, %arg2: i32, %arg3: i32) -> (i32, i32, i32) {
    %c0_i32 = arith.constant 0 : i32
    %c0_i32_0 = arith.constant 0 : i32
    return %arg0, %c0_i32, %arg1 : i32, i32, i32
  }
  func.func @transform_5(%arg0: i32, %arg1: i32, %arg2: i32, %arg3: i32) -> (i32, i32, i32) {
    %c0_i32 = arith.constant 0 : i32
    %c0_i32_0 = arith.constant 0 : i32
    return %arg0, %c0_i32, %arg1 : i32, i32, i32
  }
}

module attributes {stable_mosaic.version = 11 : i64} {
  func.func @_conv_bias_act_kernel(%arg0: i32, %arg1: i32, %arg2: i32, %arg3: memref<112x1024xbf16, #tpu.memory_space<vmem>>, %arg4: memref<1024x128xbf16, #tpu.memory_space<vmem>>, %arg5: memref<1x128xf32, #tpu.memory_space<vmem>>, %arg6: memref<112x128xf32, #tpu.memory_space<vmem>>, %arg7: memref<112x128xf32, #tpu.memory_space<vmem>>) attributes {dimension_semantics = [#tpu.dimension_semantics<parallel>, #tpu.dimension_semantics<parallel>, #tpu.dimension_semantics<arbitrary>], iteration_bounds = array<i64: 1, 1, 1>, scalar_prefetch = 0 : i64, scratch_operands = 1 : i64, tpu.core_type = #tpu.core_type<tc>, window_params = [{transform_indices = @transform_0, window_bounds = array<i64: 112, 1024>}, {transform_indices = @transform_1, window_bounds = array<i64: 1024, 128>}, {transform_indices = @transform_2, window_bounds = array<i64: 1, 128>}, {transform_indices = @transform_3, window_bounds = array<i64: 112, 128>}]} {
    %c0_i32 = arith.constant 0 : i32
    %0 = arith.cmpi eq, %arg2, %c0_i32 : i32
    %1 = arith.extui %0 : i1 to i32
    %c0_i32_0 = arith.constant 0 : i32
    %2 = arith.cmpi ne, %1, %c0_i32_0 : i32
    scf.if %2 {
      %cst_10 = arith.constant 0.000000e+00 : f32
      %12 = vector.broadcast %cst_10 : f32 to vector<112x128xf32>
      %c0_11 = arith.constant 0 : index
      %c0_12 = arith.constant 0 : index
      %13 = vector.load %arg7[%c0_11, %c0_12] : memref<112x128xf32, #tpu.memory_space<vmem>>, vector<112x128xf32>
      tpu.vector_store %arg7[%c0_11, %c0_12], %12 {strides = array<i32>} : memref<112x128xf32, #tpu.memory_space<vmem>>, vector<112x128xf32>,
    } else {
    }
    %c0 = arith.constant 0 : index
    %c0_1 = arith.constant 0 : index
    %3 = vector.load %arg7[%c0, %c0_1] : memref<112x128xf32, #tpu.memory_space<vmem>>, vector<112x128xf32>
    %c0_2 = arith.constant 0 : index
    %c0_3 = arith.constant 0 : index
    %4 = vector.load %arg3[%c0_2, %c0_3] : memref<112x1024xbf16, #tpu.memory_space<vmem>>, vector<112x1024xbf16>
    %c0_4 = arith.constant 0 : index
    %c0_5 = arith.constant 0 : index
    %5 = vector.load %arg4[%c0_4, %c0_5] : memref<1024x128xbf16, #tpu.memory_space<vmem>>, vector<1024x128xbf16>
    %cst = arith.constant dense<0.000000e+00> : vector<112x128xf32>
    %6 = tpu.matmul %4, %5, %cst {dimension_numbers = #tpu.dot_dimension_numbers<[1], [0], [0], [1], [0, 0, 1, 1], [], []>} : vector<112x1024xbf16>, vector<1024x128xbf16>, vector<112x128xf32> -> vector<112x128xf32>
    %7 = arith.addf %3, %6 : vector<112x128xf32>
    %c0_6 = arith.constant 0 : index
    %c0_7 = arith.constant 0 : index
    %8 = vector.load %arg7[%c0_6, %c0_7] : memref<112x128xf32, #tpu.memory_space<vmem>>, vector<112x128xf32>
    tpu.vector_store %arg7[%c0_6, %c0_7], %7 {strides = array<i32>} : memref<112x128xf32, #tpu.memory_space<vmem>>, vector<112x128xf32>,
    %c0_i32_8 = arith.constant 0 : i32
    %9 = arith.cmpi eq, %arg2, %c0_i32_8 : i32
    %10 = arith.extui %9 : i1 to i32
    %c0_i32_9 = arith.constant 0 : i32
    %11 = arith.cmpi ne, %10, %c0_i32_9 : i32
    scf.if %11 {
      %c0_10 = arith.constant 0 : index
      %c0_11 = arith.constant 0 : index
      %12 = vector.load %arg7[%c0_10, %c0_11] : memref<112x128xf32, #tpu.memory_space<vmem>>, vector<112x128xf32>
      %c0_12 = arith.constant 0 : index
      %c0_13 = arith.constant 0 : index
      %13 = vector.load %arg5[%c0_12, %c0_13] : memref<1x128xf32, #tpu.memory_space<vmem>>, vector<1x128xf32>
      %14 = vector.broadcast %13 : vector<1x128xf32> to vector<112x128xf32>
      %15 = arith.addf %12, %14 : vector<112x128xf32>
      %c0_14 = arith.constant 0 : index
      %c0_15 = arith.constant 0 : index
      %16 = vector.load %arg6[%c0_14, %c0_15] : memref<112x128xf32, #tpu.memory_space<vmem>>, vector<112x128xf32>
      tpu.vector_store %arg6[%c0_14, %c0_15], %15 {strides = array<i32>} : memref<112x128xf32, #tpu.memory_space<vmem>>, vector<112x128xf32>,
    } else {
    }
    return
  }
  func.func @transform_0(%arg0: i32, %arg1: i32, %arg2: i32) -> (i32, i32) {
    %c0_i32 = arith.constant 0 : i32
    return %arg1, %arg2 : i32, i32
  }
  func.func @transform_1(%arg0: i32, %arg1: i32, %arg2: i32) -> (i32, i32) {
    %c0_i32 = arith.constant 0 : i32
    return %arg2, %arg0 : i32, i32
  }
  func.func @transform_2(%arg0: i32, %arg1: i32, %arg2: i32) -> (i32, i32) {
    %c0_i32 = arith.constant 0 : i32
    %c0_i32_0 = arith.constant 0 : i32
    return %c0_i32, %arg0 : i32, i32
  }
  func.func @transform_3(%arg0: i32, %arg1: i32, %arg2: i32) -> (i32, i32) {
    %c0_i32 = arith.constant 0 : i32
    return %arg1, %arg0 : i32, i32
  }
}

</mosaic_0001>

<bundles_post_ra>
// kernel: nlayer_discriminator_lstm_forward.8
= control target key start
LH: loop header
LB: loop body
LE: loop exit
PB: predicated region body
PF: predicated region fallthrough
CT: control target
= control target key end

     0   :  { %vm274_vm0 = vcmask 392192   ;;  %s1340_s1 = inlined_call_operand.vmem [shape: bf16[48,128], index: 1, kind: input, shape index: {}]   ;;  %s1341_s2 = inlined_call_operand.vmem [shape: f32[1,128], index: 2, kind: input, shape index: {}]   ;;  %s1342_s0 = inlined_call_operand.vmem [shape: bf16[336,48], index: 0, kind: input, shape index: {}]   ;;  %s1343_s3 = inlined_call_operand.vmem [shape: bf16[336,128], index: 3, kind: output, shape index: {}]  }
   0x1   :  { %v981_v0 = vld [vmem:[%s1340_s1 + $0x10] sm:$0xff]  ;;  %v980_v1 = vld [vmem:[%s1340_s1 + $0x8] sm:$0xff]  ;;  %v979_v2 = vld [vmem:[%s1340_s1] sm:$0xff] }
   0x2   :  { %1107 = vmatpush.bf16.msra.mxu1 %v981_v0  ;;  %1108 = vmatpush.bf16.msra.mxu2 %v981_v0  ;;  %v963_v3 = vld [vmem:[%s1342_s0 + $0x28] sm:$0xff]  ;;  %v969_v4 = vld [vmem:[%s1342_s0 + $0x58] sm:$0xff]  ;;  %v958_v5 = vld [vmem:[%s1342_s0] sm:$0xff] }
   0x3   :  { %343 = vmatpush.bf16.msra.mxu0 %v981_v0  ;;  %1109 = vmatpush.bf16.msra.mxu3 %v981_v0  ;;  %v975_v6 = vld [vmem:[%s1342_s0 + $0x88] sm:$0xff]  ;;  %v964_v7 = vld [vmem:[%s1342_s0 + $0x30] sm:$0xff]  ;;  %v970_v8 = vld [vmem:[%s1342_s0 + $0x60] sm:$0xff] }
   0x4   :  { %v959_v9 = vld [vmem:[%s1342_s0 + $0x8] sm:$0xff]  ;;  %v976_v10 = vld [vmem:[%s1342_s0 + $0x90] sm:$0xff]  ;;  %v965_v11 = vld [vmem:[%s1342_s0 + $0x38] sm:$0xff] }
   0x5   :  { %v971_v12 = vld [vmem:[%s1342_s0 + $0x68] sm:$0xff]  ;;  %v960_v13 = vld [vmem:[%s1342_s0 + $0x10] sm:$0xff]  ;;  %v977_v14 = vld [vmem:[%s1342_s0 + $0x98] sm:$0xff] }
   0x6   :  { %1110 = vmatpush.bf16.msra.mxu1 %v980_v1  ;;  %1111 = vmatpush.bf16.msra.mxu2 %v980_v1  ;;  %v966_v15 = vld [vmem:[%s1342_s0 + $0x40] sm:$0xff]  ;;  %v972_v16 = vld [vmem:[%s1342_s0 + $0x70] sm:$0xff]  ;;  %v961_v17 = vld [vmem:[%s1342_s0 + $0x18] sm:$0xff] }
   0x7   :  { %344 = vmatpush.bf16.msra.mxu0 %v980_v1  ;;  %1112 = vmatpush.bf16.msra.mxu3 %v980_v1  ;;  %v978_v18 = vld [vmem:[%s1342_s0 + $0xa0] sm:$0xff]  ;;  %v967_v19 = vld [vmem:[%s1342_s0 + $0x48] sm:$0xff]  ;;  %v973_v20 = vld [vmem:[%s1342_s0 + $0x78] sm:$0xff] }
   0x8   :  { %v962_v21 = vld [vmem:[%s1342_s0 + $0x20] sm:$0xff]  ;;  %v968_v22 = vld [vmem:[%s1342_s0 + $0x50] sm:$0xff] }
   0x9   :  { %v974_v23 = vld [vmem:[%s1342_s0 + $0x80] sm:$0xff] }
   0xa   :  { %1113 = vmatpush.bf16.msra.mxu1 %v979_v2  ;;  %1114 = vmatpush.bf16.msra.mxu2 %v979_v2  ;;  %v1233_v25 = vld [vmem:[%s1341_s2] ss:$0 sm:$0xff] }
   0xb   :  { %345 = vmatpush.bf16.msra.mxu0 %v979_v2  ;;  %1115 = vmatpush.bf16.msra.mxu3 %v979_v2 }
   0xd   :  { %942 = vmatmul.msk.bf16.vlgmr.msra.gmra.mxu1 %vm274_vm0, %v963_v3  ;;  %948 = vmatmul.msk.bf16.vlgmr.msra.gmra.mxu2 %vm274_vm0, %v969_v4 }
   0xe   :  { %937 = vmatmul.msk.bf16.vlgmr.msra.gmra.mxu0 %vm274_vm0, %v958_v5  ;;  %954 = vmatmul.msk.bf16.vlgmr.msra.gmra.mxu3 %vm274_vm0, %v975_v6 }
  0x1d   :  { %943 = vmatmul.msk.bf16.gmra.mxu1 %vm274_vm0, %v964_v7  ;;  %949 = vmatmul.msk.bf16.gmra.mxu2 %vm274_vm0, %v970_v8 }
  0x1e   :  { %938 = vmatmul.msk.bf16.gmra.mxu0 %vm274_vm0, %v959_v9  ;;  %955 = vmatmul.msk.bf16.gmra.mxu3 %vm274_vm0, %v976_v10 }
  0x2d   :  { %944 = vmatmul.msk.bf16.gmra.mxu1 %vm274_vm0, %v965_v11  ;;  %950 = vmatmul.msk.bf16.gmra.mxu2 %vm274_vm0, %v971_v12 }
  0x2e   :  { %939 = vmatmul.msk.bf16.gmra.mxu0 %vm274_vm0, %v960_v13  ;;  %956 = vmatmul.msk.bf16.gmra.mxu3 %vm274_vm0, %v977_v14 }
  0x3d   :  { %945 = vmatmul.msk.bf16.gmra.mxu1 %vm274_vm0, %v966_v15  ;;  %951 = vmatmul.msk.bf16.gmra.mxu2 %vm274_vm0, %v972_v16 }
  0x3e   :  { %940 = vmatmul.msk.bf16.gmra.mxu0 %vm274_vm0, %v961_v17  ;;  %957 = vmatmul.msk.bf16.gmra.mxu3 %vm274_vm0, %v978_v18 }
  0x4d   :  { %946 = vmatmul.msk.bf16.gmra.mxu1 %vm274_vm0, %v967_v19  ;;  %952 = vmatmul.msk.bf16.gmra.mxu2 %vm274_vm0, %v973_v20 }
  0x4e   :  { %941 = vmatmul.msk.bf16.gmra.mxu0 %vm274_vm0, %v962_v21 }
  0x5d   :  { %947 = vmatmul.msk.bf16.gmra.mxu1 %vm274_vm0, %v968_v22  ;;  %953 = vmatmul.msk.bf16.gmra.mxu2 %vm274_vm0, %v974_v23 }
  0x8a   :  { %v372_v24 = vpop.f32.mrf.mxu1 }
  0x8b   :  { %v347_v26 = vpop.f32.mrf.mxu0  ;;  %v595_v28 = vadd.f32 %v1233_v25, %v372_v24 }
  0x8c   :  { %v585_v27 = vadd.f32 %v1233_v25, %v347_v26 }
  0x8d   :  { %v679_v33 = vmul.f32 0.2, %v595_v28  ;;  %vm637_vm2 = vcmp.gt.f32.partialorder %v595_v28, 0.0 }
  0x8e   :  { %v669_v32 = vmul.f32 0.2, %v585_v27  ;;  %vm627_vm1 = vcmp.gt.f32.partialorder %v585_v27, 0.0 }
  0x8f   :  { %v721_v42 = vsel %vm637_vm2, %v595_v28, %v679_v33 }
  0x90   :  { %v402_v29 = vpop.f32.mrf.mxu2  ;;  %v711_v40 = vsel %vm627_vm1, %v585_v27, %v669_v32 }
  0x91   :  { %v432_v30 = vpop.f32.mrf.mxu3  ;;  %v607_v38 = vadd.f32 %v1233_v25, %v402_v29 }
  0x92   :  { %v374_v31 = vpop.f32.mrf.mxu1  ;;  %v619_v37 = vadd.f32 %v1233_v25, %v432_v30 }
  0x93   :  { %v596_v34 = vadd.f32 %v1233_v25, %v374_v31  ;;  %v349_v35 = vpop.f32.mrf.mxu0  ;;  %v691_v48 = vmul.f32 0.2, %v607_v38  ;;  %vm649_vm6 = vcmp.gt.f32.partialorder %v607_v38, 0.0 }
  0x94   :  { %v586_v36 = vadd.f32 %v1233_v25, %v349_v35  ;;  %v703_v47 = vmul.f32 0.2, %v619_v37  ;;  %vm661_vm5 = vcmp.gt.f32.partialorder %v619_v37, 0.0 }
  0x95   :  { %vm638_vm3 = vcmp.gt.f32.partialorder %v596_v34, 0.0  ;;  %v680_v39 = vmul.f32 0.2, %v596_v34  ;;  %v733_v58 = vsel %vm649_vm6, %v607_v38, %v691_v48 }
  0x96   :  { %vm628_vm4 = vcmp.gt.f32.partialorder %v586_v36, 0.0  ;;  %v670_v41 = vmul.f32 0.2, %v586_v36  ;;  %v745_v56 = vsel %vm661_vm5, %v619_v37, %v703_v47 }
  0x97   :  { %v722_v43 = vsel %vm638_vm3, %v596_v34, %v680_v39 }
  0x98   :  { %v1010_v44 = vpack.c.bf16 %v722_v43, %v721_v42  ;;  %v404_v45 = vpop.f32.mrf.mxu2  ;;  %v712_v46 = vsel %vm628_vm4, %v586_v36, %v670_v41 }
  0x99   :  { %v608_v49 = vadd.f32 %v1233_v25, %v404_v45  ;;  %v985_v50 = vpack.c.bf16 %v712_v46, %v711_v40  ;;  %v434_v51 = vpop.f32.mrf.mxu3 }
  0x9a   :  { %1091 = vst [vmem:[%s1343_s3 + $0x28] sm:$0xff] %v1010_v44   ;;  %v377_v52 = vpop.f32.mrf.mxu1  ;;  %v620_v53 = vadd.f32 %v1233_v25, %v434_v51 }
  0x9b   :  { %vm650_vm7 = vcmp.gt.f32.partialorder %v608_v49, 0.0  ;;  %v692_v54 = vmul.f32 0.2, %v608_v49  ;;  %986 = vst [vmem:[%s1343_s3] sm:$0xff] %v985_v50   ;;  %v352_v55 = vpop.f32.mrf.mxu0  ;;  %v597_v63 = vadd.f32 %v1233_v25, %v377_v52 }
  0x9c   :  { %vm662_vm8 = vcmp.gt.f32.partialorder %v620_v53, 0.0  ;;  %v704_v57 = vmul.f32 0.2, %v620_v53  ;;  %v587_v61 = vadd.f32 %v1233_v25, %v352_v55 }
  0x9d   :  { %v734_v59 = vsel %vm650_vm7, %v608_v49, %v692_v54  ;;  %v681_v5 = vmul.f32 0.2, %v597_v63  ;;  %vm639_vm10 = vcmp.gt.f32.partialorder %v597_v63, 0.0 }
  0x9e   :  { %v1040_v60 = vpack.c.bf16 %v734_v59, %v733_v58  ;;  %v746_v62 = vsel %vm662_vm8, %v620_v53, %v704_v57  ;;  %v671_v4 = vmul.f32 0.2, %v587_v61  ;;  %vm629_vm9 = vcmp.gt.f32.partialorder %v587_v61, 0.0 }
  0x9f   :  { %v1070_v0 = vpack.c.bf16 %v746_v62, %v745_v56  ;;  %v723_v14 = vsel %vm639_vm10, %v597_v63, %v681_v5 }
  0xa0   :  { %1097 = vst [vmem:[%s1343_s3 + $0x58] sm:$0xff] %v1040_v60   ;;  %v407_v1 = vpop.f32.mrf.mxu2  ;;  %v713_v12 = vsel %vm629_vm9, %v587_v61, %v671_v4 }
  0xa1   :  { %1103 = vst [vmem:[%s1343_s3 + $0x88] sm:$0xff] %v1070_v0   ;;  %v437_v2 = vpop.f32.mrf.mxu3  ;;  %v609_v10 = vadd.f32 %v1233_v25, %v407_v1 }
  0xa2   :  { %v379_v3 = vpop.f32.mrf.mxu1  ;;  %v621_v9 = vadd.f32 %v1233_v25, %v437_v2 }
  0xa3   :  { %v598_v6 = vadd.f32 %v1233_v25, %v379_v3  ;;  %v354_v7 = vpop.f32.mrf.mxu0  ;;  %v693_v20 = vmul.f32 0.2, %v609_v10  ;;  %vm651_vm14 = vcmp.gt.f32.partialorder %v609_v10, 0.0 }
  0xa4   :  { %v588_v8 = vadd.f32 %v1233_v25, %v354_v7  ;;  %v705_v19 = vmul.f32 0.2, %v621_v9  ;;  %vm663_vm13 = vcmp.gt.f32.partialorder %v621_v9, 0.0 }
  0xa5   :  { %vm640_vm11 = vcmp.gt.f32.partialorder %v598_v6, 0.0  ;;  %v682_v11 = vmul.f32 0.2, %v598_v6  ;;  %v735_v31 = vsel %vm651_vm14, %v609_v10, %v693_v20 }
  0xa6   :  { %vm630_vm12 = vcmp.gt.f32.partialorder %v588_v8, 0.0  ;;  %v672_v13 = vmul.f32 0.2, %v588_v8  ;;  %v747_v29 = vsel %vm663_vm13, %v621_v9, %v705_v19 }
  0xa7   :  { %v724_v15 = vsel %vm640_vm11, %v598_v6, %v682_v11 }
  0xa8   :  { %v1015_v16 = vpack.c.bf16 %v724_v15, %v723_v14  ;;  %v409_v17 = vpop.f32.mrf.mxu2  ;;  %v714_v18 = vsel %vm630_vm12, %v588_v8, %v672_v13 }
  0xa9   :  { %v610_v21 = vadd.f32 %v1233_v25, %v409_v17  ;;  %v990_v22 = vpack.c.bf16 %v714_v18, %v713_v12  ;;  %v439_v23 = vpop.f32.mrf.mxu3 }
  0xaa   :  { %1092 = vst [vmem:[%s1343_s3 + $0x30] sm:$0xff] %v1015_v16   ;;  %v382_v24 = vpop.f32.mrf.mxu1  ;;  %v622_v26 = vadd.f32 %v1233_v25, %v439_v23 }
  0xab   :  { %vm652_vm15 = vcmp.gt.f32.partialorder %v610_v21, 0.0  ;;  %v694_v27 = vmul.f32 0.2, %v610_v21  ;;  %1087 = vst [vmem:[%s1343_s3 + $0x8] sm:$0xff] %v990_v22   ;;  %v357_v28 = vpop.f32.mrf.mxu0  ;;  %v599_v36 = vadd.f32 %v1233_v25, %v382_v24 }
  0xac   :  { %vm664_vm0 = vcmp.gt.f32.partialorder %v622_v26, 0.0  ;;  %v706_v30 = vmul.f32 0.2, %v622_v26  ;;  %v589_v34 = vadd.f32 %v1233_v25, %v357_v28 }
  0xad   :  { %v736_v32 = vsel %vm652_vm15, %v610_v21, %v694_v27  ;;  %v683_v42 = vmul.f32 0.2, %v599_v36  ;;  %vm641_vm2 = vcmp.gt.f32.partialorder %v599_v36, 0.0 }
  0xae   :  { %v1045_v33 = vpack.c.bf16 %v736_v32, %v735_v31  ;;  %v748_v35 = vsel %vm664_vm0, %v622_v26, %v706_v30  ;;  %v673_v41 = vmul.f32 0.2, %v589_v34  ;;  %vm631_vm1 = vcmp.gt.f32.partialorder %v589_v34, 0.0 }
  0xaf   :  { %v1075_v37 = vpack.c.bf16 %v748_v35, %v747_v29  ;;  %v725_v51 = vsel %vm641_vm2, %v599_v36, %v683_v42 }
  0xb0   :  { %1098 = vst [vmem:[%s1343_s3 + $0x60] sm:$0xff] %v1045_v33   ;;  %v412_v38 = vpop.f32.mrf.mxu2  ;;  %v715_v49 = vsel %vm631_vm1, %v589_v34, %v673_v41 }
  0xb1   :  { %1104 = vst [vmem:[%s1343_s3 + $0x90] sm:$0xff] %v1075_v37   ;;  %v442_v39 = vpop.f32.mrf.mxu3  ;;  %v611_v47 = vadd.f32 %v1233_v25, %v412_v38 }
  0xb2   :  { %v384_v40 = vpop.f32.mrf.mxu1  ;;  %v623_v46 = vadd.f32 %v1233_v25, %v442_v39 }
  0xb3   :  { %v600_v43 = vadd.f32 %v1233_v25, %v384_v40  ;;  %v359_v44 = vpop.f32.mrf.mxu0  ;;  %v695_v57 = vmul.f32 0.2, %v611_v47  ;;  %vm653_vm6 = vcmp.gt.f32.partialorder %v611_v47, 0.0 }
  0xb4   :  { %v590_v45 = vadd.f32 %v1233_v25, %v359_v44  ;;  %v707_v56 = vmul.f32 0.2, %v623_v46  ;;  %vm665_vm5 = vcmp.gt.f32.partialorder %v623_v46, 0.0 }
  0xb5   :  { %vm642_vm3 = vcmp.gt.f32.partialorder %v600_v43, 0.0  ;;  %v684_v48 = vmul.f32 0.2, %v600_v43  ;;  %v737_v3 = vsel %vm653_vm6, %v611_v47, %v695_v57 }
  0xb6   :  { %vm632_vm4 = vcmp.gt.f32.partialorder %v590_v45, 0.0  ;;  %v674_v50 = vmul.f32 0.2, %v590_v45  ;;  %v749_v1 = vsel %vm665_vm5, %v623_v46, %v707_v56 }
  0xb7   :  { %v726_v52 = vsel %vm642_vm3, %v600_v43, %v684_v48 }
  0xb8   :  { %v1020_v53 = vpack.c.bf16 %v726_v52, %v725_v51  ;;  %v414_v54 = vpop.f32.mrf.mxu2  ;;  %v716_v55 = vsel %vm632_vm4, %v590_v45, %v674_v50 }
  0xb9   :  { %v612_v58 = vadd.f32 %v1233_v25, %v414_v54  ;;  %v995_v59 = vpack.c.bf16 %v716_v55, %v715_v49  ;;  %v444_v60 = vpop.f32.mrf.mxu3 }
  0xba   :  { %1093 = vst [vmem:[%s1343_s3 + $0x38] sm:$0xff] %v1020_v53   ;;  %v387_v61 = vpop.f32.mrf.mxu1  ;;  %v624_v62 = vadd.f32 %v1233_v25, %v444_v60 }
  0xbb   :  { %vm654_vm7 = vcmp.gt.f32.partialorder %v612_v58, 0.0  ;;  %v696_v63 = vmul.f32 0.2, %v612_v58  ;;  %1088 = vst [vmem:[%s1343_s3 + $0x10] sm:$0xff] %v995_v59   ;;  %v362_v0 = vpop.f32.mrf.mxu0  ;;  %v601_v8 = vadd.f32 %v1233_v25, %v387_v61 }
  0xbc   :  { %vm666_vm8 = vcmp.gt.f32.partialorder %v624_v62, 0.0  ;;  %v708_v2 = vmul.f32 0.2, %v624_v62  ;;  %v591_v6 = vadd.f32 %v1233_v25, %v362_v0 }
  0xbd   :  { %v738_v4 = vsel %vm654_vm7, %v612_v58, %v696_v63  ;;  %v685_v14 = vmul.f32 0.2, %v601_v8  ;;  %vm643_vm10 = vcmp.gt.f32.partialorder %v601_v8, 0.0 }
  0xbe   :  { %v1050_v5 = vpack.c.bf16 %v738_v4, %v737_v3  ;;  %v750_v7 = vsel %vm666_vm8, %v624_v62, %v708_v2  ;;  %v675_v13 = vmul.f32 0.2, %v591_v6  ;;  %vm633_vm9 = vcmp.gt.f32.partialorder %v591_v6, 0.0 }
  0xbf   :  { %v1080_v9 = vpack.c.bf16 %v750_v7, %v749_v1  ;;  %v727_v23 = vsel %vm643_vm10, %v601_v8, %v685_v14 }
  0xc0   :  { %1099 = vst [vmem:[%s1343_s3 + $0x68] sm:$0xff] %v1050_v5   ;;  %v417_v10 = vpop.f32.mrf.mxu2  ;;  %v717_v21 = vsel %vm633_vm9, %v591_v6, %v675_v13 }
  0xc1   :  { %1105 = vst [vmem:[%s1343_s3 + $0x98] sm:$0xff] %v1080_v9   ;;  %v447_v11 = vpop.f32.mrf.mxu3  ;;  %v613_v19 = vadd.f32 %v1233_v25, %v417_v10 }
  0xc2   :  { %v389_v12 = vpop.f32.mrf.mxu1  ;;  %v625_v18 = vadd.f32 %v1233_v25, %v447_v11 }
  0xc3   :  { %v602_v15 = vadd.f32 %v1233_v25, %v389_v12  ;;  %v364_v16 = vpop.f32.mrf.mxu0  ;;  %v697_v30 = vmul.f32 0.2, %v613_v19  ;;  %vm655_vm14 = vcmp.gt.f32.partialorder %v613_v19, 0.0 }
  0xc4   :  { %v592_v17 = vadd.f32 %v1233_v25, %v364_v16  ;;  %v709_v29 = vmul.f32 0.2, %v625_v18  ;;  %vm667_vm13 = vcmp.gt.f32.partialorder %v625_v18, 0.0 }
  0xc5   :  { %vm644_vm11 = vcmp.gt.f32.partialorder %v602_v15, 0.0  ;;  %v686_v20 = vmul.f32 0.2, %v602_v15  ;;  %v739_v40 = vsel %vm655_vm14, %v613_v19, %v697_v30 }
  0xc6   :  { %vm634_vm12 = vcmp.gt.f32.partialorder %v592_v17, 0.0  ;;  %v676_v22 = vmul.f32 0.2, %v592_v17  ;;  %v751_v38 = vsel %vm667_vm13, %v625_v18, %v709_v29 }
  0xc7   :  { %v728_v24 = vsel %vm644_vm11, %v602_v15, %v686_v20 }
  0xc8   :  { %v1025_v26 = vpack.c.bf16 %v728_v24, %v727_v23  ;;  %v419_v27 = vpop.f32.mrf.mxu2  ;;  %v718_v28 = vsel %vm634_vm12, %v592_v17, %v676_v22 }
  0xc9   :  { %v614_v31 = vadd.f32 %v1233_v25, %v419_v27  ;;  %v1000_v32 = vpack.c.bf16 %v718_v28, %v717_v21  ;;  %v449_v33 = vpop.f32.mrf.mxu3 }
  0xca   :  { %1094 = vst [vmem:[%s1343_s3 + $0x40] sm:$0xff] %v1025_v26   ;;  %v392_v34 = vpop.f32.mrf.mxu1  ;;  %v626_v35 = vadd.f32 %v1233_v25, %v449_v33 }
  0xcb   :  { %vm656_vm15 = vcmp.gt.f32.partialorder %v614_v31, 0.0  ;;  %v698_v36 = vmul.f32 0.2, %v614_v31  ;;  %1089 = vst [vmem:[%s1343_s3 + $0x18] sm:$0xff] %v1000_v32   ;;  %v367_v37 = vpop.f32.mrf.mxu0  ;;  %v603_v45 = vadd.f32 %v1233_v25, %v392_v34 }
  0xcc   :  { %vm668_vm0 = vcmp.gt.f32.partialorder %v626_v35, 0.0  ;;  %v710_v39 = vmul.f32 0.2, %v626_v35  ;;  %v593_v43 = vadd.f32 %v1233_v25, %v367_v37 }
  0xcd   :  { %v740_v41 = vsel %vm656_vm15, %v614_v31, %v698_v36  ;;  %v687_v50 = vmul.f32 0.2, %v603_v45  ;;  %vm645_vm2 = vcmp.gt.f32.partialorder %v603_v45, 0.0 }
  0xce   :  { %v1055_v42 = vpack.c.bf16 %v740_v41, %v739_v40  ;;  %v752_v44 = vsel %vm668_vm0, %v626_v35, %v710_v39  ;;  %v677_v49 = vmul.f32 0.2, %v593_v43  ;;  %vm635_vm1 = vcmp.gt.f32.partialorder %v593_v43, 0.0 }
  0xcf   :  { %v1085_v46 = vpack.c.bf16 %v752_v44, %v751_v38  ;;  %v729_v58 = vsel %vm645_vm2, %v603_v45, %v687_v50 }
  0xd0   :  { %1100 = vst [vmem:[%s1343_s3 + $0x70] sm:$0xff] %v1055_v42   ;;  %v422_v47 = vpop.f32.mrf.mxu2  ;;  %v719_v56 = vsel %vm635_vm1, %v593_v43, %v677_v49 }
  0xd1   :  { %1106 = vst [vmem:[%s1343_s3 + $0xa0] sm:$0xff] %v1085_v46   ;;  %v615_v54 = vadd.f32 %v1233_v25, %v422_v47 }
  0xd2   :  { %v394_v48 = vpop.f32.mrf.mxu1 }
  0xd3   :  { %v604_v51 = vadd.f32 %v1233_v25, %v394_v48  ;;  %v369_v52 = vpop.f32.mrf.mxu0  ;;  %v699_v63 = vmul.f32 0.2, %v615_v54  ;;  %vm657_vm5 = vcmp.gt.f32.partialorder %v615_v54, 0.0 }
  0xd4   :  { %v594_v53 = vadd.f32 %v1233_v25, %v369_v52 }
  0xd5   :  { %vm646_vm3 = vcmp.gt.f32.partialorder %v604_v51, 0.0  ;;  %v688_v55 = vmul.f32 0.2, %v604_v51  ;;  %v741_v4 = vsel %vm657_vm5, %v615_v54, %v699_v63 }
  0xd6   :  { %vm636_vm4 = vcmp.gt.f32.partialorder %v594_v53, 0.0  ;;  %v678_v57 = vmul.f32 0.2, %v594_v53 }
  0xd7   :  { %v730_v59 = vsel %vm646_vm3, %v604_v51, %v688_v55 }
  0xd8   :  { %v1030_v60 = vpack.c.bf16 %v730_v59, %v729_v58  ;;  %v424_v61 = vpop.f32.mrf.mxu2  ;;  %v720_v62 = vsel %vm636_vm4, %v594_v53, %v678_v57 }
  0xd9   :  { %v616_v0 = vadd.f32 %v1233_v25, %v424_v61  ;;  %v1005_v1 = vpack.c.bf16 %v720_v62, %v719_v56 }
  0xda   :  { %1095 = vst [vmem:[%s1343_s3 + $0x48] sm:$0xff] %v1030_v60   ;;  %v397_v2 = vpop.f32.mrf.mxu1 }
  0xdb   :  { %vm658_vm6 = vcmp.gt.f32.partialorder %v616_v0, 0.0  ;;  %v700_v3 = vmul.f32 0.2, %v616_v0  ;;  %1090 = vst [vmem:[%s1343_s3 + $0x20] sm:$0xff] %v1005_v1   ;;  %v605_v7 = vadd.f32 %v1233_v25, %v397_v2 }
  0xdd   :  { %v742_v5 = vsel %vm658_vm6, %v616_v0, %v700_v3  ;;  %v689_v10 = vmul.f32 0.2, %v605_v7  ;;  %vm647_vm7 = vcmp.gt.f32.partialorder %v605_v7, 0.0 }
  0xde   :  { %v1060_v6 = vpack.c.bf16 %v742_v5, %v741_v4 }
  0xdf   :  { %v731_v14 = vsel %vm647_vm7, %v605_v7, %v689_v10 }
  0xe0   :  { %1101 = vst [vmem:[%s1343_s3 + $0x78] sm:$0xff] %v1060_v6   ;;  %v427_v8 = vpop.f32.mrf.mxu2 }
  0xe1   :  { %v617_v12 = vadd.f32 %v1233_v25, %v427_v8 }
  0xe2   :  { %v399_v9 = vpop.f32.mrf.mxu1 }
  0xe3   :  { %v606_v11 = vadd.f32 %v1233_v25, %v399_v9  ;;  %v701_v18 = vmul.f32 0.2, %v617_v12  ;;  %vm659_vm9 = vcmp.gt.f32.partialorder %v617_v12, 0.0 }
  0xe5   :  { %vm648_vm8 = vcmp.gt.f32.partialorder %v606_v11, 0.0  ;;  %v690_v13 = vmul.f32 0.2, %v606_v11  ;;  %v743_v21 = vsel %vm659_vm9, %v617_v12, %v701_v18 }
  0xe7   :  { %v732_v15 = vsel %vm648_vm8, %v606_v11, %v690_v13 }
  0xe8   :  { %v1035_v16 = vpack.c.bf16 %v732_v15, %v731_v14  ;;  %v429_v17 = vpop.f32.mrf.mxu2 }
  0xe9   :  { %v618_v19 = vadd.f32 %v1233_v25, %v429_v17 }
  0xea   :  { %1096 = vst [vmem:[%s1343_s3 + $0x50] sm:$0xff] %v1035_v16  }
  0xeb   :  { %vm660_vm10 = vcmp.gt.f32.partialorder %v618_v19, 0.0  ;;  %v702_v20 = vmul.f32 0.2, %v618_v19 }
  0xed   :  { %v744_v22 = vsel %vm660_vm10, %v618_v19, %v702_v20 }
  0xee   :  { %v1065_v23 = vpack.c.bf16 %v744_v22, %v743_v21 }
  0xf0   :  { %1102 = vst [vmem:[%s1343_s3 + $0x80] sm:$0xff] %v1065_v23  }

// kernel: nlayer_discriminator_lstm_forward.10
= control target key start
LH: loop header
LB: loop body
LE: loop exit
PB: predicated region body
PF: predicated region fallthrough
CT: control target
= control target key end

     0   :  { %s548_s12 = smov 0   ;;  %s550_s13 = smov 0   ;;  %s596_s0 = inlined_call_operand.vmem [shape: bf16[2,64,128], index: 0, kind: input, shape index: {}]   ;;  %s597_s1 = inlined_call_operand.vmem [shape: f32[2,1,128], index: 1, kind: input, shape index: {}]   ;;  %s598_s2 = inlined_call_operand.vmem [shape: f32[2,1,128], index: 2, kind: input, shape index: {}]   ;;  %s599_s3 = inlined_call_operand.vmem [shape: bf16[2,64,128], index: 3, kind: output, shape index: {}]  }
   0x1   :  { %s552_s14 = smov 0  }
   0x2 LB: > { %s25_s15 = sadd.s32 1, %s522_s13  ;;  %p427_p0 = scmp.ge.s32.totalorder %s526_s14, 1  ;;  %s526_s14 = sphi %s552_s14, %s13_s14   ;;  %s522_s13 = sphi %s550_s13, %s601_s13   ;;  %s518_s12 = sphi %s548_s12, %s600_s12  }
   0x3   : > { %p27_p1 = scmp.ge.s32.totalorder %s25_s15, 2  ;;  %p174_p2 = scmp.lt.s32.totalorder %s526_s14, 3 }
   0x5   : > { %s603_s15 = smov (%p27_p1, %s25_s15), 0  ;;  %p175_p3 = pnand %p427_p0, %p174_p2 }
   0x6   : > { %p213_p4 = scmp.lt.s32.totalorder (!%p175_p3), %s518_s12, 1 }
   0x7   : > { %178 = sbr.rel (%p175_p3) target bundleno = 33 (0x21), region = 32 }
   0xc   : > { %s605_s12 = smov (!%p213_p4, %s518_s12), 1 }
   0xd   : > { %s434_s16 = sshll.u32 %s605_s12, 5  ;;  %s224_s19 = scalar_lea.vmem %s597_s1, %s605_s12 }
   0xe   : > { %s220_s22 = scalar_lea.vmem %s596_s0, %s434_s16  ;;  %s227_s25 = scalar_lea.vmem %s598_s2, %s605_s12  ;;  %v502_v0 = vld [vmem:[%s224_s19] ss:$0 sm:$0xff] }
   0xf   : > { %v437_v1 = vld [vmem:[%s220_s22] sm:$0xff]   ;;  %v472_v2 = vld [vmem:[%s220_s22 + $0x8] sm:$0xff]   ;;  %v473_v3 = vld [vmem:[%s220_s22 + $0x10] sm:$0xff]   ;;  %s236_s28 = scalar_lea.vmem %s599_s3, %s434_s16 }
  0x10   : > { %v438_v4 = vunpack.c.l.bf16 %v437_v1  ;;  %v439_v5 = vunpack.c.h.bf16 %v437_v1  ;;  %v442_v6 = vunpack.c.l.bf16 %v472_v2  ;;  %v443_v7 = vunpack.c.h.bf16 %v472_v2  ;;  %v474_v8 = vld [vmem:[%s220_s22 + $0x18] sm:$0xff]   ;;  %v503_v9 = vld [vmem:[%s227_s25] ss:$0 sm:$0xff] }
  0x11   : > { %v446_v10 = vunpack.c.l.bf16 %v473_v3  ;;  %v447_v11 = vunpack.c.h.bf16 %v473_v3  ;;  %v450_v12 = vunpack.c.l.bf16 %v474_v8  ;;  %v451_v13 = vunpack.c.h.bf16 %v474_v8 }
  0x12   : > { %v258_v14 = vmul.f32 %v502_v0, %v438_v4  ;;  %v259_v15 = vmul.f32 %v502_v0, %v439_v5  ;;  %v260_v16 = vmul.f32 %v502_v0, %v442_v6  ;;  %v261_v17 = vmul.f32 %v502_v0, %v443_v7 }
  0x13   : > { %v262_v18 = vmul.f32 %v502_v0, %v446_v10  ;;  %v263_v19 = vmul.f32 %v502_v0, %v447_v11  ;;  %v264_v20 = vmul.f32 %v502_v0, %v450_v12  ;;  %v265_v21 = vmul.f32 %v502_v0, %v451_v13 }
  0x14   : > { %v270_v22 = vadd.f32 %v503_v9, %v258_v14  ;;  %v271_v23 = vadd.f32 %v503_v9, %v259_v15  ;;  %v272_v24 = vadd.f32 %v503_v9, %v260_v16  ;;  %v273_v25 = vadd.f32 %v503_v9, %v261_v17 }
  0x15   : > { %v274_v26 = vadd.f32 %v503_v9, %v262_v18  ;;  %v275_v27 = vadd.f32 %v503_v9, %v263_v19  ;;  %v276_v28 = vadd.f32 %v503_v9, %v264_v20  ;;  %v277_v29 = vadd.f32 %v503_v9, %v265_v21 }
  0x16   : > { %vm278_vm0 = vcmp.gt.f32.partialorder %v270_v22, 0.0  ;;  %vm279_vm1 = vcmp.gt.f32.partialorder %v271_v23, 0.0  ;;  %v286_v30 = vmul.f32 0.2, %v270_v22  ;;  %v287_v31 = vmul.f32 0.2, %v271_v23 }
  0x17   : > { %vm280_vm2 = vcmp.gt.f32.partialorder %v272_v24, 0.0  ;;  %vm281_vm3 = vcmp.gt.f32.partialorder %v273_v25, 0.0  ;;  %v288_v32 = vmul.f32 0.2, %v272_v24  ;;  %v289_v33 = vmul.f32 0.2, %v273_v25 }
  0x18   : > { %v294_v34 = vsel %vm278_vm0, %v270_v22, %v286_v30  ;;  %v295_v35 = vsel %vm279_vm1, %v271_v23, %v287_v31  ;;  %vm282_vm4 = vcmp.gt.f32.partialorder %v274_v26, 0.0  ;;  %vm283_vm5 = vcmp.gt.f32.partialorder %v275_v27, 0.0 }
  0x19   : > { %v455_v36 = vpack.c.bf16 %v295_v35, %v294_v34  ;;  %v296_v37 = vsel %vm280_vm2, %v272_v24, %v288_v32  ;;  %v297_v38 = vsel %vm281_vm3, %v273_v25, %v289_v33  ;;  %v290_v39 = vmul.f32 0.2, %v274_v26 }
  0x1a   : > { %v460_v40 = vpack.c.bf16 %v297_v38, %v296_v37  ;;  %v291_v41 = vmul.f32 0.2, %v275_v27  ;;  %vm284_vm6 = vcmp.gt.f32.partialorder %v276_v28, 0.0  ;;  %vm285_vm7 = vcmp.gt.f32.partialorder %v277_v29, 0.0 }
  0x1b   : > { %456 = vst [vmem:[%s236_s28] sm:$0xff] %v455_v36   ;;  %v298_v42 = vsel %vm282_vm4, %v274_v26, %v290_v39  ;;  %v292_v43 = vmul.f32 0.2, %v276_v28  ;;  %v293_v44 = vmul.f32 0.2, %v277_v29 }
  0x1c   : > { %475 = vst [vmem:[%s236_s28 + $0x8] sm:$0xff] %v460_v40   ;;  %v299_v45 = vsel %vm283_vm5, %v275_v27, %v291_v41 }
  0x1d   : > { %v465_v46 = vpack.c.bf16 %v299_v45, %v298_v42  ;;  %v300_v47 = vsel %vm284_vm6, %v276_v28, %v292_v43  ;;  %v301_v48 = vsel %vm285_vm7, %v277_v29, %v293_v44 }
  0x1e   : > { %v470_v49 = vpack.c.bf16 %v301_v48, %v300_v47 }
  0x1f   : > { %476 = vst [vmem:[%s236_s28 + $0x10] sm:$0xff] %v465_v46  }
  0x20   : > { %477 = vst [vmem:[%s236_s28 + $0x18] sm:$0xff] %v470_v49  }
  0x21 PF: > { %s13_s14 = sadd.s32 1, %s526_s14   ;;  %s600_s12 = smov %s522_s13 }
  0x22   : > { %p10_p5 = scmp.ge.s32.totalorder %s13_s14, 4   ;;  %s601_s13 = smov %s603_s15 }
  0x24   :  { %12 = sbr.rel (!%p10_p5) target bundleno = 2 (0x2), region = 68 }

// kernel: nlayer_discriminator_lstm_forward.9
= control target key start
LH: loop header
LB: loop body
LE: loop exit
PB: predicated region body
PF: predicated region fallthrough
CT: control target
= control target key end

     0   :  { %s1033_s18 = smov 0   ;;  %s1035_s19 = smov 0   ;;  %s1122_s0 = inlined_call_operand.vmem [shape: bf16[2,64,128], index: 0, kind: input, shape index: {}]   ;;  %s1123_s1 = inlined_call_operand.vmem [shape: bf16[128,128], index: 1, kind: input, shape index: {}]   ;;  %s1124_s2 = inlined_call_operand.vmem [shape: f32[1,128], index: 2, kind: input, shape index: {}]   ;;  %s1125_s3 = inlined_call_operand.vmem [shape: bf16[2,64,128], index: 3, kind: output, shape index: {0}]   ;;  %s1126_s4 = inlined_call_operand.vmem [shape: f32[2,1,128], index: 4, kind: output, shape index: {1}]   ;;  %s1127_s5 = inlined_call_operand.vmem [shape: f32[2,1,128], index: 5, kind: output, shape index: {2}]  }
   0x1   :  { %s1037_s20 = smov 0  }
   0x2 LB: > { %s42_s21 = sadd.s32 1, %s996_s19  ;;  %p836_p0 = scmp.ge.s32.totalorder %s1000_s20, 1  ;;  %s1000_s20 = sphi %s1037_s20, %s16_s20   ;;  %s996_s19 = sphi %s1035_s19, %s1129_s19   ;;  %s992_s18 = sphi %s1033_s18, %s1128_s18  }
   0x3   : > { %p44_p1 = scmp.ge.s32.totalorder %s42_s21, 2  ;;  %p262_p2 = scmp.lt.s32.totalorder %s1000_s20, 3 }
   0x5   : > { %s1131_s21 = smov (%p44_p1, %s42_s21), 0  ;;  %p263_p3 = pnand %p836_p0, %p262_p2 }
   0x6   : > { %p328_p4 = scmp.lt.s32.totalorder (!%p263_p3), %s992_s18, 1 }
   0x7   : > { %266 = sbr.rel (%p263_p3) target bundleno = 209 (0xd1), region = 32 }
   0xc   : > { %v904_v0 = vld [vmem:[%s1123_s1 + $0x38] sm:$0xff]  ;;  %v903_v1 = vld [vmem:[%s1123_s1 + $0x30] sm:$0xff]  ;;  %v902_v2 = vld [vmem:[%s1123_s1 + $0x28] sm:$0xff]  ;;  %s1133_s18 = smov (!%p328_p4, %s992_s18), 1  ;;  %v1002_v12 = vmov 0.0  }
   0xd   : > { %493 = vmatpush.bf16.msra.mxu0 %v904_v0  ;;  %928 = vmatpush.bf16.msra.mxu1 %v904_v0  ;;  %v901_v3 = vld [vmem:[%s1123_s1 + $0x20] sm:$0xff]  ;;  %v900_v4 = vld [vmem:[%s1123_s1 + $0x18] sm:$0xff]  ;;  %v899_v5 = vld [vmem:[%s1123_s1 + $0x10] sm:$0xff]  ;;  %s891_s11 = sshll.u32 %s1133_s18, 5  ;;  %s1091_s23 = scalar_lea.vmem %s1126_s4, %s1133_s18 }
   0xe   : > { %929 = vmatpush.bf16.msra.mxu2 %v904_v0  ;;  %930 = vmatpush.bf16.msra.mxu3 %v904_v0  ;;  %v898_v6 = vld [vmem:[%s1123_s1 + $0x8] sm:$0xff]  ;;  %v897_v7 = vld [vmem:[%s1123_s1] sm:$0xff]  ;;  %s338_s16 = scalar_lea.vmem %s1122_s0, %s891_s11  ;;  %s1097_s26 = scalar_lea.vmem %s1127_s5, %s1133_s18  ;;  %543 = vst [vmem:[%s1091_s23] sm:$0x1] %v1002_v12 }
   0xf   : > { %v893_v8 = vld [vmem:[%s338_s16] sm:$0xff]  ;;  %v894_v9 = vld [vmem:[%s338_s16 + $0x8] sm:$0xff]  ;;  %v895_v10 = vld [vmem:[%s338_s16 + $0x10] sm:$0xff]  ;;  %544 = vst [vmem:[%s1097_s26] sm:$0x1] %v1002_v12  ;;  %s363_s6 = scalar_lea.vmem %s1125_s3, %s891_s11 }
  0x10   : > { %v896_v11 = vld [vmem:[%s338_s16 + $0x18] sm:$0xff]  ;;  %v977_v15 = vld [vmem:[%s1124_s2] ss:$0 sm:$0xff] }
  0x11   : > { %494 = vmatpush.bf16.msra.mxu0 %v903_v1  ;;  %931 = vmatpush.bf16.msra.mxu1 %v903_v1 }
  0x12   : > { %932 = vmatpush.bf16.msra.mxu2 %v903_v1  ;;  %933 = vmatpush.bf16.msra.mxu3 %v903_v1 }
  0x15   : > { %495 = vmatpush.bf16.msra.mxu0 %v902_v2  ;;  %934 = vmatpush.bf16.msra.mxu1 %v902_v2  ;;  %v584_v1 = vld [vmem:[%s1091_s23] sm:$0x1] }
  0x16   : > { %935 = vmatpush.bf16.msra.mxu2 %v902_v2  ;;  %936 = vmatpush.bf16.msra.mxu3 %v902_v2 }
  0x19   : > { %496 = vmatpush.bf16.msra.mxu0 %v901_v3  ;;  %937 = vmatpush.bf16.msra.mxu1 %v901_v3 }
  0x1a   : > { %938 = vmatpush.bf16.msra.mxu2 %v901_v3  ;;  %939 = vmatpush.bf16.msra.mxu3 %v901_v3 }
  0x1d   : > { %497 = vmatpush.bf16.msra.mxu0 %v900_v4  ;;  %940 = vmatpush.bf16.msra.mxu1 %v900_v4 }
  0x1e   : > { %941 = vmatpush.bf16.msra.mxu2 %v900_v4  ;;  %942 = vmatpush.bf16.msra.mxu3 %v900_v4  ;;  %v600_v4 = vld [vmem:[%s1097_s26] sm:$0x1] }
  0x21   : > { %498 = vmatpush.bf16.msra.mxu0 %v899_v5  ;;  %943 = vmatpush.bf16.msra.mxu1 %v899_v5 }
  0x22   : > { %944 = vmatpush.bf16.msra.mxu2 %v899_v5  ;;  %945 = vmatpush.bf16.msra.mxu3 %v899_v5 }
  0x25   : > { %499 = vmatpush.bf16.msra.mxu0 %v898_v6  ;;  %946 = vmatpush.bf16.msra.mxu1 %v898_v6 }
  0x26   : > { %947 = vmatpush.bf16.msra.mxu2 %v898_v6  ;;  %948 = vmatpush.bf16.msra.mxu3 %v898_v6 }
  0x29   : > { %500 = vmatpush.bf16.msra.mxu0 %v897_v7  ;;  %949 = vmatpush.bf16.msra.mxu1 %v897_v7 }
  0x2a   : > { %950 = vmatpush.bf16.msra.mxu2 %v897_v7  ;;  %951 = vmatpush.bf16.msra.mxu3 %v897_v7 }
  0x2c   : > { %501 = vmatmul.bf16.vlgmr.msra.gmra.mxu0 %v893_v8  ;;  %506 = vmatmul.bf16.vlgmr.msra.gmra.mxu1 %v894_v9 }
  0x2d   : > { %511 = vmatmul.bf16.vlgmr.msra.gmra.mxu2 %v895_v10  ;;  %516 = vmatmul.bf16.vlgmr.msra.gmra.mxu3 %v896_v11 }
  0xa9   : > { %v502_v13 = vpop.f32.mrf.mxu0  ;;  %v507_v14 = vpop.f32.mrf.mxu1 }
  0xaa   : > { %v560_v18 = vadd.f32 %v977_v15, %v502_v13  ;;  %v601_v19 = vmul.f32 %v502_v13, %v502_v13  ;;  %v562_v20 = vadd.f32 %v977_v15, %v507_v14  ;;  %v603_v27 = vmul.f32 %v507_v14, %v507_v14 }
  0xb0   : > { %v512_v16 = vpop.f32.mrf.mxu2  ;;  %v517_v17 = vpop.f32.mrf.mxu3 }
  0xb1   : > { %v504_v21 = vpop.f32.mrf.mxu0  ;;  %v509_v22 = vpop.f32.mrf.mxu1  ;;  %v605_v35 = vmul.f32 %v512_v16, %v512_v16  ;;  %v564_v40 = vadd.f32 %v977_v15, %v512_v16  ;;  %v566_v41 = vadd.f32 %v977_v15, %v517_v17  ;;  %v607_v49 = vmul.f32 %v517_v17, %v517_v17 }
  0xb2   : > { %v561_v23 = vadd.f32 %v977_v15, %v504_v21  ;;  %v585_v24 = vadd.f32 %v504_v21, %v502_v13  ;;  %v602_v25 = vmul.f32 %v504_v21, %v504_v21  ;;  %v563_v26 = vadd.f32 %v977_v15, %v509_v22 }
  0xb3   : > { %v604_v33 = vmul.f32 %v509_v22, %v509_v22 }
  0xb4   : > { %v908_v28 = vpack.c.bf16 %v561_v23, %v560_v18  ;;  %v609_v29 = vadd.f32 %v602_v25, %v601_v19  ;;  %v913_v30 = vpack.c.bf16 %v563_v26, %v562_v20  ;;  %v586_v31 = vadd.f32 %v585_v24, %v507_v14 }
  0xb6   : > { %909 = vst [vmem:[%s363_s6] sm:$0xff] %v908_v28   ;;  %v587_v32 = vadd.f32 %v586_v31, %v509_v22  ;;  %v610_v34 = vadd.f32 %v609_v29, %v603_v27 }
  0xb7   : > { %925 = vst [vmem:[%s363_s6 + $0x8] sm:$0xff] %v913_v30  }
  0xb8   : > { %v611_v36 = vadd.f32 %v610_v34, %v604_v33  ;;  %v514_v37 = vpop.f32.mrf.mxu2  ;;  %v588_v38 = vadd.f32 %v587_v32, %v512_v16  ;;  %v519_v39 = vpop.f32.mrf.mxu3 }
  0xb9   : > { %v565_v42 = vadd.f32 %v977_v15, %v514_v37  ;;  %v567_v43 = vadd.f32 %v977_v15, %v519_v39  ;;  %v606_v45 = vmul.f32 %v514_v37, %v514_v37  ;;  %v608_v53 = vmul.f32 %v519_v39, %v519_v39 }
  0xba   : > { %v589_v44 = vadd.f32 %v588_v38, %v514_v37  ;;  %v612_v46 = vadd.f32 %v611_v36, %v605_v35 }
  0xbb   : > { %v918_v47 = vpack.c.bf16 %v565_v42, %v564_v40  ;;  %v923_v48 = vpack.c.bf16 %v567_v43, %v566_v41 }
  0xbc   : > { %v613_v50 = vadd.f32 %v612_v46, %v606_v45  ;;  %v590_v51 = vadd.f32 %v589_v44, %v517_v17 }
  0xbd   : > { %926 = vst [vmem:[%s363_s6 + $0x10] sm:$0xff] %v918_v47  }
  0xbe   : > { %927 = vst [vmem:[%s363_s6 + $0x18] sm:$0xff] %v923_v48   ;;  %v591_v52 = vadd.f32 %v590_v51, %v519_v39  ;;  %v614_v54 = vadd.f32 %v613_v50, %v607_v49 }
  0xc0   : > { %v592_v55 = vrot.slane %v591_v52, 4  ;;  %v615_v56 = vadd.f32 %v614_v54, %v608_v53 }
  0xc2   : > { %v593_v57 = vadd.f32 %v592_v55, %v591_v52  ;;  %v616_v58 = vrot.slane %v615_v56, 4 }
  0xc4   : > { %v594_v59 = vrot.slane %v593_v57, 2  ;;  %v617_v60 = vadd.f32 %v616_v58, %v615_v56 }
  0xc6   : > { %v595_v61 = vadd.f32 %v594_v59, %v593_v57  ;;  %v618_v62 = vrot.slane %v617_v60, 2 }
  0xc8   : > { %v596_v63 = vrot.slane %v595_v61, 1  ;;  %v619_v0 = vadd.f32 %v618_v62, %v617_v60 }
  0xca   : > { %v597_v2 = vadd.f32 %v596_v63, %v595_v61  ;;  %v620_v3 = vrot.slane %v619_v0, 1 }
  0xcc   : > { %v598_v5 = vadd.f32 %v597_v2, %v584_v1  ;;  %v621_v6 = vadd.f32 %v620_v3, %v619_v0 }
  0xce   : > { %599 = vst [vmem:[%s1091_s23] sm:$0x1] %v598_v5  ;;  %v622_v7 = vadd.f32 %v621_v6, %v600_v4 }
  0xd0   : > { %623 = vst [vmem:[%s1097_s26] sm:$0x1] %v622_v7 }
  0xd1 PF: > { %s16_s20 = sadd.s32 1, %s1000_s20   ;;  %s1128_s18 = smov %s996_s19 }
  0xd2   : > { %p13_p5 = scmp.ge.s32.totalorder %s16_s20, 4   ;;  %s1129_s19 = smov %s1131_s21 }
  0xd4   :  { %15 = sbr.rel (!%p13_p5) target bundleno = 2 (0x2), region = 104 }

// kernel: nlayer_discriminator_lstm_forward.12
= control target key start
LH: loop header
LB: loop body
LE: loop exit
PB: predicated region body
PF: predicated region fallthrough
CT: control target
= control target key end

     0   :  { %s490_s12 = smov 0   ;;  %s492_s13 = smov 0   ;;  %s534_s0 = inlined_call_operand.vmem [shape: bf16[2,32,128], index: 0, kind: input, shape index: {}]   ;;  %s535_s1 = inlined_call_operand.vmem [shape: f32[2,1,128], index: 1, kind: input, shape index: {}]   ;;  %s536_s2 = inlined_call_operand.vmem [shape: f32[2,1,128], index: 2, kind: input, shape index: {}]   ;;  %s537_s3 = inlined_call_operand.vmem [shape: bf16[2,32,128], index: 3, kind: output, shape index: {}]  }
   0x1   :  { %s494_s14 = smov 0  }
   0x2 LB: > { %s25_s15 = sadd.s32 1, %s464_s13  ;;  %p391_p0 = scmp.ge.s32.totalorder %s468_s14, 1  ;;  %s468_s14 = sphi %s494_s14, %s13_s14   ;;  %s464_s13 = sphi %s492_s13, %s539_s13   ;;  %s460_s12 = sphi %s490_s12, %s538_s12  }
   0x3   : > { %p27_p1 = scmp.ge.s32.totalorder %s25_s15, 2  ;;  %p174_p2 = scmp.lt.s32.totalorder %s468_s14, 3 }
   0x5   : > { %s541_s15 = smov (%p27_p1, %s25_s15), 0  ;;  %p175_p3 = pnand %p391_p0, %p174_p2 }
   0x6   : > { %p213_p4 = scmp.lt.s32.totalorder (!%p175_p3), %s460_s12, 1 }
   0x7   : > { %178 = sbr.rel (%p175_p3) target bundleno = 29 (0x1d), region = 32 }
   0xc   : > { %s543_s12 = smov (!%p213_p4, %s460_s12), 1 }
   0xd   : > { %s398_s16 = sshll.u32 %s543_s12, 4  ;;  %s224_s19 = scalar_lea.vmem %s535_s1, %s543_s12 }
   0xe   : > { %s220_s22 = scalar_lea.vmem %s534_s0, %s398_s16  ;;  %s227_s25 = scalar_lea.vmem %s536_s2, %s543_s12  ;;  %v444_v0 = vld [vmem:[%s224_s19] ss:$0 sm:$0xff] }
   0xf   : > { %v401_v1 = vld [vmem:[%s220_s22] sm:$0xff]   ;;  %v418_v2 = vld [vmem:[%s220_s22 + $0x8] sm:$0xff]   ;;  %s236_s28 = scalar_lea.vmem %s537_s3, %s398_s16 }
  0x10   : > { %v402_v3 = vunpack.c.l.bf16 %v401_v1  ;;  %v403_v4 = vunpack.c.h.bf16 %v401_v1  ;;  %v406_v5 = vunpack.c.l.bf16 %v418_v2  ;;  %v407_v6 = vunpack.c.h.bf16 %v418_v2  ;;  %v445_v7 = vld [vmem:[%s227_s25] ss:$0 sm:$0xff] }
  0x12   : > { %v250_v8 = vmul.f32 %v444_v0, %v402_v3  ;;  %v251_v9 = vmul.f32 %v444_v0, %v403_v4  ;;  %v252_v10 = vmul.f32 %v444_v0, %v406_v5  ;;  %v253_v11 = vmul.f32 %v444_v0, %v407_v6 }
  0x14   : > { %v258_v12 = vadd.f32 %v445_v7, %v250_v8  ;;  %v259_v13 = vadd.f32 %v445_v7, %v251_v9  ;;  %v260_v14 = vadd.f32 %v445_v7, %v252_v10  ;;  %v261_v15 = vadd.f32 %v445_v7, %v253_v11 }
  0x16   : > { %vm262_vm0 = vcmp.gt.f32.partialorder %v258_v12, 0.0  ;;  %vm263_vm1 = vcmp.gt.f32.partialorder %v259_v13, 0.0  ;;  %v266_v16 = vmul.f32 0.2, %v258_v12  ;;  %v267_v17 = vmul.f32 0.2, %v259_v13 }
  0x17   : > { %vm264_vm2 = vcmp.gt.f32.partialorder %v260_v14, 0.0  ;;  %vm265_vm3 = vcmp.gt.f32.partialorder %v261_v15, 0.0  ;;  %v268_v18 = vmul.f32 0.2, %v260_v14  ;;  %v269_v19 = vmul.f32 0.2, %v261_v15 }
  0x18   : > { %v270_v20 = vsel %vm262_vm0, %v258_v12, %v266_v16  ;;  %v271_v21 = vsel %vm263_vm1, %v259_v13, %v267_v17 }
  0x19   : > { %v411_v22 = vpack.c.bf16 %v271_v21, %v270_v20  ;;  %v272_v23 = vsel %vm264_vm2, %v260_v14, %v268_v18  ;;  %v273_v24 = vsel %vm265_vm3, %v261_v15, %v269_v19 }
  0x1a   : > { %v416_v25 = vpack.c.bf16 %v273_v24, %v272_v23 }
  0x1b   : > { %412 = vst [vmem:[%s236_s28] sm:$0xff] %v411_v22  }
  0x1c   : > { %419 = vst [vmem:[%s236_s28 + $0x8] sm:$0xff] %v416_v25  }
  0x1d PF: > { %s13_s14 = sadd.s32 1, %s468_s14   ;;  %s538_s12 = smov %s464_s13 }
  0x1e   : > { %p10_p5 = scmp.ge.s32.totalorder %s13_s14, 4   ;;  %s539_s13 = smov %s541_s15 }
  0x20   :  { %12 = sbr.rel (!%p10_p5) target bundleno = 2 (0x2), region = 68 }

// kernel: nlayer_discriminator_lstm_forward.11
= control target key start
LH: loop header
LB: loop body
LE: loop exit
PB: predicated region body
PF: predicated region fallthrough
CT: control target
= control target key end

     0   :  { %s1085_s18 = smov 0   ;;  %s1087_s19 = smov 0   ;;  %s1195_s0 = inlined_call_operand.vmem [shape: bf16[2,32,256], index: 0, kind: input, shape index: {}]   ;;  %s1196_s1 = inlined_call_operand.vmem [shape: bf16[256,128], index: 1, kind: input, shape index: {}]   ;;  %s1197_s2 = inlined_call_operand.vmem [shape: f32[1,128], index: 2, kind: input, shape index: {}]   ;;  %s1198_s3 = inlined_call_operand.vmem [shape: bf16[2,32,128], index: 3, kind: output, shape index: {0}]   ;;  %s1199_s4 = inlined_call_operand.vmem [shape: f32[2,1,128], index: 4, kind: output, shape index: {1}]   ;;  %s1200_s5 = inlined_call_operand.vmem [shape: f32[2,1,128], index: 5, kind: output, shape index: {2}]  }
   0x1   :  { %s1089_s20 = smov 0  }
   0x2 LB: > { %s42_s21 = sadd.s32 1, %s1048_s19  ;;  %p868_p0 = scmp.ge.s32.totalorder %s1052_s20, 1  ;;  %s1052_s20 = sphi %s1089_s20, %s16_s20   ;;  %s1048_s19 = sphi %s1087_s19, %s1202_s19   ;;  %s1044_s18 = sphi %s1085_s18, %s1201_s18  }
   0x3   : > { %p44_p1 = scmp.ge.s32.totalorder %s42_s21, 2  ;;  %p265_p2 = scmp.lt.s32.totalorder %s1052_s20, 3 }
   0x5   : > { %s1204_s21 = smov (%p44_p1, %s42_s21), 0  ;;  %p266_p3 = pnand %p868_p0, %p265_p2 }
   0x6   : > { %p334_p4 = scmp.lt.s32.totalorder (!%p266_p3), %s1044_s18, 1 }
   0x7   : > { %269 = sbr.rel (%p266_p3) target bundleno = 206 (0xce), region = 32 }
   0xc   : > { %v968_v0 = vld [vmem:[%s1196_s1 + $0x38] sm:$0xff]  ;;  %v967_v2 = vld [vmem:[%s1196_s1 + $0x30] sm:$0xff]  ;;  %v966_v4 = vld [vmem:[%s1196_s1 + $0x28] sm:$0xff]  ;;  %s1206_s18 = smov (!%p334_p4, %s1044_s18), 1  ;;  %v1054_v28 = vmov 0.0  }
   0xd   : > { %v976_v1 = vld [vmem:[%s1196_s1 + $0x78] sm:$0xff]  ;;  %549 = vmatpush.bf16.msra.mxu0 %v968_v0  ;;  %988 = vmatpush.bf16.msra.mxu2 %v968_v0  ;;  %v975_v3 = vld [vmem:[%s1196_s1 + $0x70] sm:$0xff]  ;;  %v974_v5 = vld [vmem:[%s1196_s1 + $0x68] sm:$0xff]  ;;  %s955_s25 = sshll.u32 %s1206_s18, 5  ;;  %s1165_s14 = scalar_lea.vmem %s1199_s4, %s1206_s18 }
   0xe   : > { %568 = vmatpush.bf16.msra.mxu1 %v976_v1  ;;  %996 = vmatpush.bf16.msra.mxu3 %v976_v1  ;;  %v965_v6 = vld [vmem:[%s1196_s1 + $0x20] sm:$0xff]  ;;  %v964_v8 = vld [vmem:[%s1196_s1 + $0x18] sm:$0xff]  ;;  %v963_v10 = vld [vmem:[%s1196_s1 + $0x10] sm:$0xff]  ;;  %s345_s30 = scalar_lea.vmem %s1195_s0, %s955_s25  ;;  %s1171_s17 = scalar_lea.vmem %s1200_s5, %s1206_s18  ;;  %600 = vst [vmem:[%s1165_s14] sm:$0x1] %v1054_v28 }
   0xf   : > { %v973_v7 = vld [vmem:[%s1196_s1 + $0x60] sm:$0xff]  ;;  %v972_v9 = vld [vmem:[%s1196_s1 + $0x58] sm:$0xff]  ;;  %v971_v11 = vld [vmem:[%s1196_s1 + $0x50] sm:$0xff]  ;;  %601 = vst [vmem:[%s1171_s17] sm:$0x1] %v1054_v28  ;;  %s956_s24 = sshll.u32 %s1206_s18, 4 }
  0x10   : > { %v962_v12 = vld [vmem:[%s1196_s1 + $0x8] sm:$0xff]  ;;  %v961_v14 = vld [vmem:[%s1196_s1] sm:$0xff]  ;;  %v883_v18 = vld [vmem:[%s345_s30 + $0x10] sm:$0xf]  ;;  %s371_s27 = scalar_lea.vmem %s1198_s3, %s956_s24 }
  0x11   : > { %550 = vmatpush.bf16.msra.mxu0 %v967_v2  ;;  %989 = vmatpush.bf16.msra.mxu2 %v967_v2  ;;  %v970_v13 = vld [vmem:[%s1196_s1 + $0x48] sm:$0xff]  ;;  %v969_v15 = vld [vmem:[%s1196_s1 + $0x40] sm:$0xff]  ;;  %v960_v19 = vld [vmem:[%s345_s30 + $0x14] sm:$0xf0] }
  0x12   : > { %569 = vmatpush.bf16.msra.mxu1 %v975_v3  ;;  %997 = vmatpush.bf16.msra.mxu3 %v975_v3  ;;  %v875_v16 = vld [vmem:[%s345_s30] sm:$0xf]  ;;  %v958_v17 = vld [vmem:[%s345_s30 + $0x4] sm:$0xf0]  ;;  %v957_v20 = vld [vmem:[%s345_s30 + $0x4] sm:$0xf]  ;;  %v884_v25 = vor.u32 %v960_v19, %v883_v18 }
  0x13   : > { %v877_v21 = vld [vmem:[%s345_s30 + $0x8] sm:$0xf0]  ;;  %v959_v22 = vld [vmem:[%s345_s30 + $0x14] sm:$0xf]  ;;  %v885_v23 = vld [vmem:[%s345_s30 + $0x18] sm:$0xf0]  ;;  %v876_v24 = vor.u32 %v958_v17, %v875_v16 }
  0x14   : > { %v880_v26 = vor.u32 %v957_v20, %v877_v21  ;;  %v888_v27 = vor.u32 %v959_v22, %v885_v23  ;;  %v1029_v33 = vld [vmem:[%s1197_s2] ss:$0 sm:$0xff] }
  0x15   : > { %551 = vmatpush.bf16.msra.mxu0 %v966_v4  ;;  %990 = vmatpush.bf16.msra.mxu2 %v966_v4  ;;  %v625_v3 = vld [vmem:[%s1165_s14] sm:$0x1] }
  0x16   : > { %570 = vmatpush.bf16.msra.mxu1 %v974_v5  ;;  %998 = vmatpush.bf16.msra.mxu3 %v974_v5 }
  0x19   : > { %552 = vmatpush.bf16.msra.mxu0 %v965_v6  ;;  %991 = vmatpush.bf16.msra.mxu2 %v965_v6  ;;  %v637_v6 = vld [vmem:[%s1171_s17] sm:$0x1] }
  0x1a   : > { %571 = vmatpush.bf16.msra.mxu1 %v973_v7  ;;  %999 = vmatpush.bf16.msra.mxu3 %v973_v7 }
  0x1d   : > { %553 = vmatpush.bf16.msra.mxu0 %v964_v8  ;;  %992 = vmatpush.bf16.msra.mxu2 %v964_v8 }
  0x1e   : > { %572 = vmatpush.bf16.msra.mxu1 %v972_v9  ;;  %1000 = vmatpush.bf16.msra.mxu3 %v972_v9 }
  0x21   : > { %554 = vmatpush.bf16.msra.mxu0 %v963_v10  ;;  %993 = vmatpush.bf16.msra.mxu2 %v963_v10 }
  0x22   : > { %573 = vmatpush.bf16.msra.mxu1 %v971_v11  ;;  %1001 = vmatpush.bf16.msra.mxu3 %v971_v11 }
  0x25   : > { %555 = vmatpush.bf16.msra.mxu0 %v962_v12  ;;  %994 = vmatpush.bf16.msra.mxu2 %v962_v12 }
  0x26   : > { %574 = vmatpush.bf16.msra.mxu1 %v970_v13  ;;  %1002 = vmatpush.bf16.msra.mxu3 %v970_v13 }
  0x29   : > { %556 = vmatpush.bf16.msra.mxu0 %v961_v14  ;;  %995 = vmatpush.bf16.msra.mxu2 %v961_v14 }
  0x2a   : > { %575 = vmatpush.bf16.msra.mxu1 %v969_v15  ;;  %1003 = vmatpush.bf16.msra.mxu3 %v969_v15 }
  0x2c   : > { %557 = vmatmul.bf16.vlgmr.msra.gmra.mxu0 %v876_v24  ;;  %562 = vmatmul.bf16.vlgmr.msra.gmra.mxu2 %v884_v25 }
  0x2d   : > { %576 = vmatmul.bf16.vlgmr.msra.gmra.mxu1 %v880_v26  ;;  %581 = vmatmul.bf16.vlgmr.msra.gmra.mxu3 %v888_v27 }
  0xa9   : > { %v558_v29 = vpop.f32.mrf.mxu0 }
  0xaa   : > { %v577_v30 = vpop.f32.mrf.mxu1 }
  0xab   : > { %v578_v32 = vadd.f32 %v577_v30, %v558_v29 }
  0xad   : > { %v613_v38 = vadd.f32 %v1029_v33, %v578_v32  ;;  %v638_v39 = vmul.f32 %v578_v32, %v578_v32 }
  0xaf   : > { %v563_v31 = vpop.f32.mrf.mxu2 }
  0xb0   : > { %v582_v34 = vpop.f32.mrf.mxu3 }
  0xb1   : > { %v560_v35 = vpop.f32.mrf.mxu0  ;;  %v583_v40 = vadd.f32 %v582_v34, %v563_v31 }
  0xb2   : > { %v579_v36 = vpop.f32.mrf.mxu1 }
  0xb3   : > { %v580_v37 = vadd.f32 %v579_v36, %v560_v35  ;;  %v640_v48 = vmul.f32 %v583_v40, %v583_v40  ;;  %v615_v51 = vadd.f32 %v1029_v33, %v583_v40 }
  0xb5   : > { %v614_v41 = vadd.f32 %v1029_v33, %v580_v37  ;;  %v626_v42 = vadd.f32 %v580_v37, %v578_v32  ;;  %v639_v43 = vmul.f32 %v580_v37, %v580_v37 }
  0xb7   : > { %v980_v44 = vpack.c.bf16 %v614_v41, %v613_v38  ;;  %v642_v45 = vadd.f32 %v639_v43, %v638_v39  ;;  %v565_v46 = vpop.f32.mrf.mxu2  ;;  %v627_v50 = vadd.f32 %v626_v42, %v583_v40 }
  0xb8   : > { %v584_v47 = vpop.f32.mrf.mxu3 }
  0xb9   : > { %981 = vst [vmem:[%s371_s27] sm:$0xff] %v980_v44   ;;  %v585_v49 = vadd.f32 %v584_v47, %v565_v46  ;;  %v643_v55 = vadd.f32 %v642_v45, %v640_v48 }
  0xbb   : > { %v616_v52 = vadd.f32 %v1029_v33, %v585_v49  ;;  %v628_v53 = vadd.f32 %v627_v50, %v585_v49  ;;  %v641_v54 = vmul.f32 %v585_v49, %v585_v49 }
  0xbd   : > { %v985_v56 = vpack.c.bf16 %v616_v52, %v615_v51  ;;  %v629_v57 = vrot.slane %v628_v53, 4  ;;  %v644_v58 = vadd.f32 %v643_v55, %v641_v54 }
  0xbf   : > { %987 = vst [vmem:[%s371_s27 + $0x8] sm:$0xff] %v985_v56   ;;  %v630_v59 = vadd.f32 %v629_v57, %v628_v53  ;;  %v645_v60 = vrot.slane %v644_v58, 4 }
  0xc1   : > { %v631_v61 = vrot.slane %v630_v59, 2  ;;  %v646_v62 = vadd.f32 %v645_v60, %v644_v58 }
  0xc3   : > { %v632_v63 = vadd.f32 %v631_v61, %v630_v59  ;;  %v647_v0 = vrot.slane %v646_v62, 2 }
  0xc5   : > { %v633_v1 = vrot.slane %v632_v63, 1  ;;  %v648_v2 = vadd.f32 %v647_v0, %v646_v62 }
  0xc7   : > { %v634_v4 = vadd.f32 %v633_v1, %v632_v63  ;;  %v649_v5 = vrot.slane %v648_v2, 1 }
  0xc9   : > { %v635_v7 = vadd.f32 %v634_v4, %v625_v3  ;;  %v650_v8 = vadd.f32 %v649_v5, %v648_v2 }
  0xcb   : > { %636 = vst [vmem:[%s1165_s14] sm:$0x1] %v635_v7  ;;  %v651_v9 = vadd.f32 %v650_v8, %v637_v6 }
  0xcd   : > { %652 = vst [vmem:[%s1171_s17] sm:$0x1] %v651_v9 }
  0xce PF: > { %s16_s20 = sadd.s32 1, %s1052_s20   ;;  %s1201_s18 = smov %s1048_s19 }
  0xcf   : > { %p13_p5 = scmp.ge.s32.totalorder %s16_s20, 4   ;;  %s1202_s19 = smov %s1204_s21 }
  0xd1   :  { %15 = sbr.rel (!%p13_p5) target bundleno = 2 (0x2), region = 104 }

// kernel: nlayer_discriminator_lstm_forward.13
= control target key start
LH: loop header
LB: loop body
LE: loop exit
PB: predicated region body
PF: predicated region fallthrough
CT: control target
= control target key end

     0   :  { %s1359_s18 = smov 0   ;;  %s1361_s19 = smov 0   ;;  %s1535_s0 = inlined_call_operand.vmem [shape: bf16[2,32,512], index: 0, kind: input, shape index: {}]   ;;  %s1536_s1 = inlined_call_operand.vmem [shape: bf16[512,128], index: 1, kind: input, shape index: {}]   ;;  %s1537_s2 = inlined_call_operand.vmem [shape: f32[1,128], index: 2, kind: input, shape index: {}]   ;;  %s1538_s3 = inlined_call_operand.vmem [shape: bf16[2,32,128], index: 3, kind: output, shape index: {0}]   ;;  %s1539_s4 = inlined_call_operand.vmem [shape: f32[2,1,128], index: 4, kind: output, shape index: {1}]   ;;  %s1540_s5 = inlined_call_operand.vmem [shape: f32[2,1,128], index: 5, kind: output, shape index: {2}]  }
   0x1   :  { %s1363_s20 = smov 0  }
   0x2 LB: > { %s42_s21 = sadd.s32 1, %s1322_s19  ;;  %p1058_p0 = scmp.ge.s32.totalorder %s1326_s20, 1  ;;  %s1326_s20 = sphi %s1363_s20, %s16_s20   ;;  %s1322_s19 = sphi %s1361_s19, %s1542_s19   ;;  %s1318_s18 = sphi %s1359_s18, %s1541_s18  }
   0x3   : > { %p44_p1 = scmp.ge.s32.totalorder %s42_s21, 2  ;;  %p265_p2 = scmp.lt.s32.totalorder %s1326_s20, 3 }
   0x5   : > { %s1544_s21 = smov (%p44_p1, %s42_s21), 0  ;;  %p266_p3 = pnand %p1058_p0, %p265_p2 }
   0x6   : > { %p334_p4 = scmp.lt.s32.totalorder (!%p266_p3), %s1318_s18, 1 }
   0x7   : > { %269 = sbr.rel (%p266_p3) target bundleno = 225 (0xe1), region = 32 }
   0xc   : > { %v1242_v0 = vld [vmem:[%s1536_s1 + $0x38] sm:$0xff]  ;;  %v1241_v4 = vld [vmem:[%s1536_s1 + $0x30] sm:$0xff]  ;;  %v1240_v8 = vld [vmem:[%s1536_s1 + $0x28] sm:$0xff]  ;;  %s1546_s18 = smov (!%p334_p4, %s1318_s18), 1  ;;  %v1328_v58 = vmov 0.0  }
   0xd   : > { %v1250_v1 = vld [vmem:[%s1536_s1 + $0x78] sm:$0xff]  ;;  %701 = vmatpush.bf16.msra.mxu0 %v1242_v0  ;;  %v1249_v5 = vld [vmem:[%s1536_s1 + $0x70] sm:$0xff]  ;;  %v1248_v9 = vld [vmem:[%s1536_s1 + $0x68] sm:$0xff]  ;;  %s1225_s28 = sshll.u32 %s1546_s18, 6  ;;  %s1505_s29 = scalar_lea.vmem %s1539_s4, %s1546_s18 }
   0xe   : > { %v1258_v2 = vld [vmem:[%s1536_s1 + $0xb8] sm:$0xff]  ;;  %720 = vmatpush.bf16.msra.mxu1 %v1250_v1  ;;  %v1257_v6 = vld [vmem:[%s1536_s1 + $0xb0] sm:$0xff]  ;;  %v1256_v10 = vld [vmem:[%s1536_s1 + $0xa8] sm:$0xff]  ;;  %s1465_s10 = scalar_lea.vmem %s1535_s0, %s1225_s28  ;;  %s1511_s7 = scalar_lea.vmem %s1540_s5, %s1546_s18  ;;  %790 = vst [vmem:[%s1505_s29] sm:$0x1] %v1328_v58 }
   0xf   : > { %v1266_v3 = vld [vmem:[%s1536_s1 + $0xf8] sm:$0xff]  ;;  %739 = vmatpush.bf16.msra.mxu2 %v1258_v2  ;;  %v1265_v7 = vld [vmem:[%s1536_s1 + $0xf0] sm:$0xff]  ;;  %v1264_v11 = vld [vmem:[%s1536_s1 + $0xe8] sm:$0xff]  ;;  %791 = vst [vmem:[%s1511_s7] sm:$0x1] %v1328_v58 }
  0x10   : > { %758 = vmatpush.bf16.msra.mxu3 %v1266_v3  ;;  %v1239_v12 = vld [vmem:[%s1536_s1 + $0x20] sm:$0xff]  ;;  %v1238_v16 = vld [vmem:[%s1536_s1 + $0x18] sm:$0xff]  ;;  %v1237_v20 = vld [vmem:[%s1536_s1 + $0x10] sm:$0xff] }
  0x11   : > { %702 = vmatpush.bf16.msra.mxu0 %v1241_v4  ;;  %v1247_v13 = vld [vmem:[%s1536_s1 + $0x60] sm:$0xff]  ;;  %v1246_v17 = vld [vmem:[%s1536_s1 + $0x58] sm:$0xff]  ;;  %v1245_v21 = vld [vmem:[%s1536_s1 + $0x50] sm:$0xff] }
  0x12   : > { %721 = vmatpush.bf16.msra.mxu1 %v1249_v5  ;;  %v1255_v14 = vld [vmem:[%s1536_s1 + $0xa0] sm:$0xff]  ;;  %v1254_v18 = vld [vmem:[%s1536_s1 + $0x98] sm:$0xff]  ;;  %v1253_v22 = vld [vmem:[%s1536_s1 + $0x90] sm:$0xff] }
  0x13   : > { %740 = vmatpush.bf16.msra.mxu2 %v1257_v6  ;;  %v1263_v15 = vld [vmem:[%s1536_s1 + $0xe0] sm:$0xff]  ;;  %v1262_v19 = vld [vmem:[%s1536_s1 + $0xd8] sm:$0xff]  ;;  %v1261_v23 = vld [vmem:[%s1536_s1 + $0xd0] sm:$0xff] }
  0x14   : > { %759 = vmatpush.bf16.msra.mxu3 %v1265_v7  ;;  %v1236_v24 = vld [vmem:[%s1536_s1 + $0x8] sm:$0xff]  ;;  %v1235_v28 = vld [vmem:[%s1536_s1] sm:$0xff]  ;;  %v1229_v33 = vld [vmem:[%s1465_s10 + $0xc] sm:$0xf0] }
  0x15   : > { %703 = vmatpush.bf16.msra.mxu0 %v1240_v8  ;;  %v1244_v25 = vld [vmem:[%s1536_s1 + $0x48] sm:$0xff]  ;;  %v1243_v29 = vld [vmem:[%s1536_s1 + $0x40] sm:$0xff]  ;;  %v1067_v35 = vld [vmem:[%s1465_s10 + $0x10] sm:$0xf0] }
  0x16   : > { %722 = vmatpush.bf16.msra.mxu1 %v1248_v9  ;;  %v1252_v26 = vld [vmem:[%s1536_s1 + $0x88] sm:$0xff]  ;;  %v1251_v30 = vld [vmem:[%s1536_s1 + $0x80] sm:$0xff]  ;;  %v1230_v37 = vld [vmem:[%s1465_s10 + $0x14] sm:$0xf0] }
  0x17   : > { %741 = vmatpush.bf16.msra.mxu2 %v1256_v10  ;;  %v1260_v27 = vld [vmem:[%s1536_s1 + $0xc8] sm:$0xff]  ;;  %v1259_v31 = vld [vmem:[%s1536_s1 + $0xc0] sm:$0xff]  ;;  %v1075_v39 = vld [vmem:[%s1465_s10 + $0x18] sm:$0xf0] }
  0x18   : > { %760 = vmatpush.bf16.msra.mxu3 %v1264_v11  ;;  %v1065_v32 = vld [vmem:[%s1465_s10] sm:$0xf]  ;;  %v1227_v34 = vld [vmem:[%s1465_s10 + $0x4] sm:$0xf]  ;;  %v1073_v36 = vld [vmem:[%s1465_s10 + $0x8] sm:$0xf] }
  0x19   : > { %704 = vmatpush.bf16.msra.mxu0 %v1239_v12  ;;  %v1228_v38 = vld [vmem:[%s1465_s10 + $0xc] sm:$0xf]  ;;  %v1066_v40 = vor.u32 %v1229_v33, %v1065_v32  ;;  %v1070_v41 = vor.u32 %v1227_v34, %v1067_v35  ;;  %v1074_v42 = vor.u32 %v1230_v37, %v1073_v36  ;;  %v1081_v44 = vld [vmem:[%s1465_s10 + $0x20] sm:$0xf]  ;;  %v1233_v45 = vld [vmem:[%s1465_s10 + $0x2c] sm:$0xf0] }
  0x1a   : > { %723 = vmatpush.bf16.msra.mxu1 %v1247_v13  ;;  %v1078_v43 = vor.u32 %v1228_v38, %v1075_v39  ;;  %v1231_v46 = vld [vmem:[%s1465_s10 + $0x24] sm:$0xf]  ;;  %v1083_v47 = vld [vmem:[%s1465_s10 + $0x30] sm:$0xf0]  ;;  %v1089_v48 = vld [vmem:[%s1465_s10 + $0x28] sm:$0xf]  ;;  %v1082_v52 = vor.u32 %v1233_v45, %v1081_v44 }
  0x1b   : > { %742 = vmatpush.bf16.msra.mxu2 %v1255_v14  ;;  %v1234_v49 = vld [vmem:[%s1465_s10 + $0x34] sm:$0xf0]  ;;  %v1232_v50 = vld [vmem:[%s1465_s10 + $0x2c] sm:$0xf]  ;;  %v1091_v51 = vld [vmem:[%s1465_s10 + $0x38] sm:$0xf0]  ;;  %v1086_v53 = vor.u32 %v1231_v46, %v1083_v47 }
  0x1c   : > { %761 = vmatpush.bf16.msra.mxu3 %v1263_v15  ;;  %v1090_v54 = vor.u32 %v1234_v49, %v1089_v48  ;;  %v1094_v55 = vor.u32 %v1232_v50, %v1091_v51  ;;  %v1303_v5 = vld [vmem:[%s1537_s2] ss:$0 sm:$0xff]  ;;  %s1226_s10 = sshll.u32 %s1546_s18, 4 }
  0x1d   : > { %705 = vmatpush.bf16.msra.mxu0 %v1238_v16  ;;  %s371_s13 = scalar_lea.vmem %s1538_s3, %s1226_s10  ;;  %v815_v47 = vld [vmem:[%s1505_s29] sm:$0x1] }
  0x1e   : > { %724 = vmatpush.bf16.msra.mxu1 %v1246_v17  ;;  %v827_v50 = vld [vmem:[%s1511_s7] sm:$0x1] }
  0x1f   : > { %743 = vmatpush.bf16.msra.mxu2 %v1254_v18 }
  0x20   : > { %762 = vmatpush.bf16.msra.mxu3 %v1262_v19 }
  0x21   : > { %706 = vmatpush.bf16.msra.mxu0 %v1237_v20 }
  0x22   : > { %725 = vmatpush.bf16.msra.mxu1 %v1245_v21 }
  0x23   : > { %744 = vmatpush.bf16.msra.mxu2 %v1253_v22 }
  0x24   : > { %763 = vmatpush.bf16.msra.mxu3 %v1261_v23 }
  0x25   : > { %707 = vmatpush.bf16.msra.mxu0 %v1236_v24 }
  0x26   : > { %726 = vmatpush.bf16.msra.mxu1 %v1244_v25 }
  0x27   : > { %745 = vmatpush.bf16.msra.mxu2 %v1252_v26 }
  0x28   : > { %764 = vmatpush.bf16.msra.mxu3 %v1260_v27 }
  0x29   : > { %708 = vmatpush.bf16.msra.mxu0 %v1235_v28 }
  0x2a   : > { %727 = vmatpush.bf16.msra.mxu1 %v1243_v29 }
  0x2b   : > { %746 = vmatpush.bf16.msra.mxu2 %v1251_v30 }
  0x2c   : > { %765 = vmatpush.bf16.msra.mxu3 %v1259_v31  ;;  %709 = vmatmul.bf16.vlgmr.msra.gmra.mxu0 %v1066_v40 }
  0x2d   : > { %728 = vmatmul.bf16.vlgmr.msra.gmra.mxu1 %v1070_v41 }
  0x2e   : > { %747 = vmatmul.bf16.vlgmr.msra.gmra.mxu2 %v1074_v42 }
  0x2f   : > { %766 = vmatmul.bf16.vlgmr.msra.gmra.mxu3 %v1078_v43 }
  0x3c   : > { %714 = vmatmul.bf16.gmra.mxu0 %v1082_v52 }
  0x3d   : > { %733 = vmatmul.bf16.gmra.mxu1 %v1086_v53 }
  0x3e   : > { %752 = vmatmul.bf16.gmra.mxu2 %v1090_v54 }
  0x3f   : > { %771 = vmatmul.bf16.gmra.mxu3 %v1094_v55 }
  0xa9   : > { %v710_v56 = vpop.f32.mrf.mxu0 }
  0xaa   : > { %v729_v57 = vpop.f32.mrf.mxu1 }
  0xab   : > { %v730_v61 = vadd.f32 %v729_v57, %v710_v56 }
  0xb1   : > { %v748_v59 = vpop.f32.mrf.mxu2  ;;  %v712_v62 = vpop.f32.mrf.mxu0 }
  0xb2   : > { %v767_v60 = vpop.f32.mrf.mxu3  ;;  %v731_v63 = vpop.f32.mrf.mxu1  ;;  %v749_v0 = vadd.f32 %v748_v59, %v730_v61 }
  0xb3   : > { %v732_v1 = vadd.f32 %v731_v63, %v712_v62 }
  0xb4   : > { %v768_v4 = vadd.f32 %v767_v60, %v749_v0 }
  0xb6   : > { %v803_v10 = vadd.f32 %v1303_v5, %v768_v4  ;;  %v828_v23 = vmul.f32 %v768_v4, %v768_v4 }
  0xb9   : > { %v750_v2 = vpop.f32.mrf.mxu2  ;;  %v715_v7 = vpop.f32.mrf.mxu0 }
  0xba   : > { %v769_v3 = vpop.f32.mrf.mxu3  ;;  %v751_v6 = vadd.f32 %v750_v2, %v732_v1  ;;  %v734_v8 = vpop.f32.mrf.mxu1 }
  0xbb   : > { %v735_v12 = vadd.f32 %v734_v8, %v715_v7 }
  0xbc   : > { %v770_v9 = vadd.f32 %v769_v3, %v751_v6 }
  0xbe   : > { %v804_v11 = vadd.f32 %v1303_v5, %v770_v9  ;;  %v829_v20 = vmul.f32 %v770_v9, %v770_v9  ;;  %v816_v24 = vadd.f32 %v770_v9, %v768_v4 }
  0xc0   : > { %v1270_v13 = vpack.c.bf16 %v804_v11, %v803_v10  ;;  %v832_v28 = vadd.f32 %v829_v20, %v828_v23 }
  0xc1   : > { %v753_v14 = vpop.f32.mrf.mxu2  ;;  %v717_v17 = vpop.f32.mrf.mxu0 }
  0xc2   : > { %v772_v15 = vpop.f32.mrf.mxu3  ;;  %1271 = vst [vmem:[%s371_s13] sm:$0xff] %v1270_v13   ;;  %v754_v16 = vadd.f32 %v753_v14, %v735_v12  ;;  %v736_v18 = vpop.f32.mrf.mxu1 }
  0xc3   : > { %v737_v21 = vadd.f32 %v736_v18, %v717_v17 }
  0xc4   : > { %v773_v19 = vadd.f32 %v772_v15, %v754_v16 }
  0xc6   : > { %v830_v25 = vmul.f32 %v773_v19, %v773_v19  ;;  %v817_v29 = vadd.f32 %v816_v24, %v773_v19  ;;  %v805_v31 = vadd.f32 %v1303_v5, %v773_v19 }
  0xc8   : > { %v833_v32 = vadd.f32 %v832_v28, %v830_v25 }
  0xc9   : > { %v755_v22 = vpop.f32.mrf.mxu2 }
  0xca   : > { %v756_v26 = vadd.f32 %v755_v22, %v737_v21  ;;  %v774_v27 = vpop.f32.mrf.mxu3 }
  0xcc   : > { %v775_v30 = vadd.f32 %v774_v27, %v756_v26 }
  0xce   : > { %v806_v33 = vadd.f32 %v1303_v5, %v775_v30  ;;  %v818_v34 = vadd.f32 %v817_v29, %v775_v30  ;;  %v831_v35 = vmul.f32 %v775_v30, %v775_v30 }
  0xd0   : > { %v1275_v36 = vpack.c.bf16 %v806_v33, %v805_v31  ;;  %v819_v37 = vrot.slane %v818_v34, 4  ;;  %v834_v38 = vadd.f32 %v833_v32, %v831_v35 }
  0xd2   : > { %1277 = vst [vmem:[%s371_s13 + $0x8] sm:$0xff] %v1275_v36   ;;  %v820_v39 = vadd.f32 %v819_v37, %v818_v34  ;;  %v835_v40 = vrot.slane %v834_v38, 4 }
  0xd4   : > { %v821_v41 = vrot.slane %v820_v39, 2  ;;  %v836_v42 = vadd.f32 %v835_v40, %v834_v38 }
  0xd6   : > { %v822_v43 = vadd.f32 %v821_v41, %v820_v39  ;;  %v837_v44 = vrot.slane %v836_v42, 2 }
  0xd8   : > { %v823_v45 = vrot.slane %v822_v43, 1  ;;  %v838_v46 = vadd.f32 %v837_v44, %v836_v42 }
  0xda   : > { %v824_v48 = vadd.f32 %v823_v45, %v822_v43  ;;  %v839_v49 = vrot.slane %v838_v46, 1 }
  0xdc   : > { %v825_v51 = vadd.f32 %v824_v48, %v815_v47  ;;  %v840_v52 = vadd.f32 %v839_v49, %v838_v46 }
  0xde   : > { %826 = vst [vmem:[%s1505_s29] sm:$0x1] %v825_v51  ;;  %v841_v53 = vadd.f32 %v840_v52, %v827_v50 }
  0xe0   : > { %842 = vst [vmem:[%s1511_s7] sm:$0x1] %v841_v53 }
  0xe1 PF: > { %s16_s20 = sadd.s32 1, %s1326_s20   ;;  %s1541_s18 = smov %s1322_s19 }
  0xe2   : > { %p13_p5 = scmp.ge.s32.totalorder %s16_s20, 4   ;;  %s1542_s19 = smov %s1544_s21 }
  0xe4   :  { %15 = sbr.rel (!%p13_p5) target bundleno = 2 (0x2), region = 104 }

// kernel: nlayer_discriminator_lstm_forward.15
= control target key start
LH: loop header
LB: loop body
LE: loop exit
PB: predicated region body
PF: predicated region fallthrough
CT: control target
= control target key end

     0   :  { %s2579_s1 = inlined_call_operand.vmem [shape: bf16[1024,128], index: 1, kind: input, shape index: {}]   ;;  %s2580_s0 = inlined_call_operand.vmem [shape: bf16[112,1024], index: 0, kind: input, shape index: {}]   ;;  %s2581_s2 = inlined_call_operand.vmem [shape: f32[1,128], index: 2, kind: input, shape index: {}]   ;;  %s2582_s3 = inlined_call_operand.vmem [shape: f32[112,128], index: 3, kind: output, shape index: {}]  }
   0x1   :  { %v1870_v0 = vld [vmem:[%s2579_s1 + $0x38] sm:$0xff]  ;;  %v1869_v4 = vld [vmem:[%s2579_s1 + $0x30] sm:$0xff]  ;;  %v1868_v8 = vld [vmem:[%s2579_s1 + $0x28] sm:$0xff] }
   0x2   :  { %v1878_v1 = vld [vmem:[%s2579_s1 + $0x78] sm:$0xff]  ;;  %894 = vmatpush.bf16.msra.mxu0 %v1870_v0  ;;  %v1877_v5 = vld [vmem:[%s2579_s1 + $0x70] sm:$0xff]  ;;  %v1876_v9 = vld [vmem:[%s2579_s1 + $0x68] sm:$0xff] }
   0x3   :  { %v1886_v2 = vld [vmem:[%s2579_s1 + $0xb8] sm:$0xff]  ;;  %938 = vmatpush.bf16.msra.mxu1 %v1878_v1  ;;  %v1885_v6 = vld [vmem:[%s2579_s1 + $0xb0] sm:$0xff]  ;;  %v1884_v10 = vld [vmem:[%s2579_s1 + $0xa8] sm:$0xff] }
   0x4   :  { %v1894_v3 = vld [vmem:[%s2579_s1 + $0xf8] sm:$0xff]  ;;  %982 = vmatpush.bf16.msra.mxu2 %v1886_v2  ;;  %v1893_v7 = vld [vmem:[%s2579_s1 + $0xf0] sm:$0xff]  ;;  %v1892_v11 = vld [vmem:[%s2579_s1 + $0xe8] sm:$0xff] }
   0x5   :  { %1026 = vmatpush.bf16.msra.mxu3 %v1894_v3  ;;  %v1867_v12 = vld [vmem:[%s2579_s1 + $0x20] sm:$0xff]  ;;  %v1866_v16 = vld [vmem:[%s2579_s1 + $0x18] sm:$0xff]  ;;  %v1865_v20 = vld [vmem:[%s2579_s1 + $0x10] sm:$0xff] }
   0x6   :  { %895 = vmatpush.bf16.msra.mxu0 %v1869_v4  ;;  %v1875_v13 = vld [vmem:[%s2579_s1 + $0x60] sm:$0xff]  ;;  %v1874_v17 = vld [vmem:[%s2579_s1 + $0x58] sm:$0xff]  ;;  %v1873_v21 = vld [vmem:[%s2579_s1 + $0x50] sm:$0xff] }
   0x7   :  { %939 = vmatpush.bf16.msra.mxu1 %v1877_v5  ;;  %v1883_v14 = vld [vmem:[%s2579_s1 + $0xa0] sm:$0xff]  ;;  %v1882_v18 = vld [vmem:[%s2579_s1 + $0x98] sm:$0xff]  ;;  %v1881_v22 = vld [vmem:[%s2579_s1 + $0x90] sm:$0xff] }
   0x8   :  { %983 = vmatpush.bf16.msra.mxu2 %v1885_v6  ;;  %v1891_v15 = vld [vmem:[%s2579_s1 + $0xe0] sm:$0xff]  ;;  %v1890_v19 = vld [vmem:[%s2579_s1 + $0xd8] sm:$0xff]  ;;  %v1889_v23 = vld [vmem:[%s2579_s1 + $0xd0] sm:$0xff] }
   0x9   :  { %1027 = vmatpush.bf16.msra.mxu3 %v1893_v7  ;;  %v1864_v24 = vld [vmem:[%s2579_s1 + $0x8] sm:$0xff]  ;;  %v1863_v28 = vld [vmem:[%s2579_s1] sm:$0xff]  ;;  %v1918_v40 = vld [vmem:[%s2579_s1 + $0x1b8] sm:$0xff] }
   0xa   :  { %896 = vmatpush.bf16.msra.mxu0 %v1868_v8  ;;  %v1872_v25 = vld [vmem:[%s2579_s1 + $0x48] sm:$0xff]  ;;  %v1871_v29 = vld [vmem:[%s2579_s1 + $0x40] sm:$0xff]  ;;  %v1902_v41 = vld [vmem:[%s2579_s1 + $0x138] sm:$0xff] }
   0xb   :  { %940 = vmatpush.bf16.msra.mxu1 %v1876_v9  ;;  %v1880_v26 = vld [vmem:[%s2579_s1 + $0x88] sm:$0xff]  ;;  %v1879_v30 = vld [vmem:[%s2579_s1 + $0x80] sm:$0xff]  ;;  %v1926_v46 = vld [vmem:[%s2579_s1 + $0x1f8] sm:$0xff] }
   0xc   :  { %984 = vmatpush.bf16.msra.mxu2 %v1884_v10  ;;  %v1888_v27 = vld [vmem:[%s2579_s1 + $0xc8] sm:$0xff]  ;;  %v1887_v31 = vld [vmem:[%s2579_s1 + $0xc0] sm:$0xff]  ;;  %v1910_v47 = vld [vmem:[%s2579_s1 + $0x178] sm:$0xff] }
   0xd   :  { %1028 = vmatpush.bf16.msra.mxu3 %v1892_v11  ;;  %v1329_v32 = vld [vmem:[%s2580_s0] sm:$0xf]  ;;  %v1807_v34 = vld [vmem:[%s2580_s0 + $0x4] sm:$0xf]  ;;  %v1337_v36 = vld [vmem:[%s2580_s0 + $0x8] sm:$0xf] }
   0xe   :  { %897 = vmatpush.bf16.msra.mxu0 %v1867_v12  ;;  %v1811_v33 = vld [vmem:[%s2580_s0 + $0x1c] sm:$0xf0]  ;;  %v1331_v35 = vld [vmem:[%s2580_s0 + $0x20] sm:$0xf0]  ;;  %v1812_v37 = vld [vmem:[%s2580_s0 + $0x24] sm:$0xf0] }
   0xf   :  { %941 = vmatpush.bf16.msra.mxu1 %v1875_v13  ;;  %v1808_v38 = vld [vmem:[%s2580_s0 + $0xc] sm:$0xf]  ;;  %v1330_v42 = vor.u32 %v1811_v33, %v1329_v32  ;;  %v1334_v43 = vor.u32 %v1807_v34, %v1331_v35  ;;  %v1338_v44 = vor.u32 %v1812_v37, %v1337_v36  ;;  %v1917_v48 = vld [vmem:[%s2579_s1 + $0x1b0] sm:$0xff]  ;;  %v1361_v56 = vld [vmem:[%s2580_s0 + $0x40] sm:$0xf] }
  0x10   :  { %985 = vmatpush.bf16.msra.mxu2 %v1883_v14  ;;  %v1339_v39 = vld [vmem:[%s2580_s0 + $0x28] sm:$0xf0]  ;;  %v1901_v49 = vld [vmem:[%s2579_s1 + $0x130] sm:$0xff]  ;;  %v1915_v57 = vld [vmem:[%s2579_s1 + $0x1a0] sm:$0xff] }
  0x11   :  { %1029 = vmatpush.bf16.msra.mxu3 %v1891_v15  ;;  %v1342_v45 = vor.u32 %v1808_v38, %v1339_v39  ;;  %v1925_v50 = vld [vmem:[%s2579_s1 + $0x1f0] sm:$0xff]  ;;  %v1916_v52 = vld [vmem:[%s2579_s1 + $0x1a8] sm:$0xff]  ;;  %v1899_v58 = vld [vmem:[%s2579_s1 + $0x120] sm:$0xff] }
  0x12   :  { %898 = vmatpush.bf16.msra.mxu0 %v1866_v16  ;;  %v1909_v51 = vld [vmem:[%s2579_s1 + $0x170] sm:$0xff]  ;;  %v1900_v53 = vld [vmem:[%s2579_s1 + $0x128] sm:$0xff]  ;;  %v1819_v59 = vld [vmem:[%s2580_s0 + $0x5c] sm:$0xf0] }
  0x13   :  { %942 = vmatpush.bf16.msra.mxu1 %v1874_v17  ;;  %v1924_v54 = vld [vmem:[%s2579_s1 + $0x1e8] sm:$0xff]  ;;  %v1815_v60 = vld [vmem:[%s2580_s0 + $0x44] sm:$0xf]  ;;  %v1362_v4 = vor.u32 %v1819_v59, %v1361_v56  ;;  %v1914_v8 = vld [vmem:[%s2579_s1 + $0x198] sm:$0xff] }
  0x14   :  { %986 = vmatpush.bf16.msra.mxu2 %v1882_v18  ;;  %v1908_v55 = vld [vmem:[%s2579_s1 + $0x168] sm:$0xff]  ;;  %v1363_v61 = vld [vmem:[%s2580_s0 + $0x60] sm:$0xf0]  ;;  %v1898_v9 = vld [vmem:[%s2579_s1 + $0x118] sm:$0xff] }
  0x15   :  { %1030 = vmatpush.bf16.msra.mxu3 %v1890_v19  ;;  %v1369_v62 = vld [vmem:[%s2580_s0 + $0x48] sm:$0xf]  ;;  %v1816_v0 = vld [vmem:[%s2580_s0 + $0x4c] sm:$0xf]  ;;  %v1923_v2 = vld [vmem:[%s2579_s1 + $0x1e0] sm:$0xff]  ;;  %v1366_v5 = vor.u32 %v1815_v60, %v1363_v61 }
  0x16   :  { %899 = vmatpush.bf16.msra.mxu0 %v1865_v20  ;;  %v1820_v63 = vld [vmem:[%s2580_s0 + $0x64] sm:$0xf0]  ;;  %v1371_v1 = vld [vmem:[%s2580_s0 + $0x68] sm:$0xf0]  ;;  %v1907_v3 = vld [vmem:[%s2579_s1 + $0x160] sm:$0xff] }
  0x17   :  { %943 = vmatpush.bf16.msra.mxu1 %v1873_v21  ;;  %v1370_v6 = vor.u32 %v1820_v63, %v1369_v62  ;;  %v1374_v7 = vor.u32 %v1816_v0, %v1371_v1  ;;  %v1922_v10 = vld [vmem:[%s2579_s1 + $0x1d8] sm:$0xff]  ;;  %v1393_v12 = vld [vmem:[%s2580_s0 + $0x80] sm:$0xf]  ;;  %v1823_v14 = vld [vmem:[%s2580_s0 + $0x84] sm:$0xf] }
  0x18   :  { %987 = vmatpush.bf16.msra.mxu2 %v1881_v22  ;;  %v1906_v11 = vld [vmem:[%s2579_s1 + $0x158] sm:$0xff]  ;;  %v1827_v13 = vld [vmem:[%s2580_s0 + $0x9c] sm:$0xf0]  ;;  %v1395_v15 = vld [vmem:[%s2580_s0 + $0xa0] sm:$0xf0] }
  0x19   :  { %1031 = vmatpush.bf16.msra.mxu3 %v1889_v23  ;;  %v1401_v16 = vld [vmem:[%s2580_s0 + $0x88] sm:$0xf]  ;;  %v1824_v18 = vld [vmem:[%s2580_s0 + $0x8c] sm:$0xf]  ;;  %v1394_v20 = vor.u32 %v1827_v13, %v1393_v12  ;;  %v1398_v21 = vor.u32 %v1823_v14, %v1395_v15  ;;  %v1911_v56 = vld [vmem:[%s2579_s1 + $0x180] sm:$0xff] }
  0x1a   :  { %900 = vmatpush.bf16.msra.mxu0 %v1864_v24  ;;  %v1828_v17 = vld [vmem:[%s2580_s0 + $0xa4] sm:$0xf0]  ;;  %v1403_v19 = vld [vmem:[%s2580_s0 + $0xa8] sm:$0xf0]  ;;  %v1913_v24 = vld [vmem:[%s2579_s1 + $0x190] sm:$0xff] }
  0x1b   :  { %944 = vmatpush.bf16.msra.mxu1 %v1872_v25  ;;  %v1402_v22 = vor.u32 %v1828_v17, %v1401_v16  ;;  %v1406_v23 = vor.u32 %v1824_v18, %v1403_v19  ;;  %v1897_v25 = vld [vmem:[%s2579_s1 + $0x110] sm:$0xff]  ;;  %v1433_v32 = vld [vmem:[%s2580_s0 + $0xc8] sm:$0xf]  ;;  %v1832_v34 = vld [vmem:[%s2580_s0 + $0xcc] sm:$0xf] }
  0x1c   :  { %988 = vmatpush.bf16.msra.mxu2 %v1880_v26  ;;  %v1921_v26 = vld [vmem:[%s2579_s1 + $0x1d0] sm:$0xff]  ;;  %v1836_v33 = vld [vmem:[%s2580_s0 + $0xe4] sm:$0xf0]  ;;  %v1435_v35 = vld [vmem:[%s2580_s0 + $0xe8] sm:$0xf0] }
  0x1d   :  { %1032 = vmatpush.bf16.msra.mxu3 %v1888_v27  ;;  %v1905_v27 = vld [vmem:[%s2579_s1 + $0x150] sm:$0xff]  ;;  %v1434_v38 = vor.u32 %v1836_v33, %v1433_v32  ;;  %v1438_v39 = vor.u32 %v1832_v34, %v1435_v35  ;;  %v1903_v59 = vld [vmem:[%s2579_s1 + $0x140] sm:$0xff]  ;;  %v1497_v0 = vld [vmem:[%s2580_s0 + $0x148] sm:$0xf] }
  0x1e   :  { %901 = vmatpush.bf16.msra.mxu0 %v1863_v28  ;;  %v1425_v28 = vld [vmem:[%s2580_s0 + $0xc0] sm:$0xf]  ;;  %v1847_v62 = vld [vmem:[%s2580_s0 + $0x144] sm:$0xf]  ;;  %v1852_v1 = vld [vmem:[%s2580_s0 + $0x164] sm:$0xf0] }
  0x1f   :  { %945 = vmatpush.bf16.msra.mxu1 %v1871_v29  ;;  %v1835_v29 = vld [vmem:[%s2580_s0 + $0xdc] sm:$0xf0]  ;;  %v1491_v63 = vld [vmem:[%s2580_s0 + $0x160] sm:$0xf0]  ;;  %v1529_v12 = vld [vmem:[%s2580_s0 + $0x188] sm:$0xf] }
  0x20   :  { %989 = vmatpush.bf16.msra.mxu2 %v1879_v30  ;;  %v1831_v30 = vld [vmem:[%s2580_s0 + $0xc4] sm:$0xf]  ;;  %v1426_v36 = vor.u32 %v1835_v29, %v1425_v28  ;;  %v1489_v60 = vld [vmem:[%s2580_s0 + $0x140] sm:$0xf]  ;;  %v1860_v13 = vld [vmem:[%s2580_s0 + $0x1a4] sm:$0xf0] }
  0x21   :  { %1033 = vmatpush.bf16.msra.mxu3 %v1887_v31  ;;  %902 = vmatmul.bf16.vlgmr.msra.gmra.mxu0 %v1330_v42  ;;  %v1427_v31 = vld [vmem:[%s2580_s0 + $0xe0] sm:$0xf0]  ;;  %v1920_v42 = vld [vmem:[%s2579_s1 + $0x1c8] sm:$0xff]  ;;  %v1851_v61 = vld [vmem:[%s2580_s0 + $0x15c] sm:$0xf0]  ;;  %v1530_v18 = vor.u32 %v1860_v13, %v1529_v12 }
  0x22   :  { %1070 = vmatpush.bf16.msrb.mxu0 %v1902_v41  ;;  %946 = vmatmul.bf16.vlgmr.msra.gmra.mxu1 %v1334_v43  ;;  %v1430_v37 = vor.u32 %v1831_v30, %v1427_v31  ;;  %v1896_v41 = vld [vmem:[%s2579_s1 + $0x108] sm:$0xff]  ;;  %v1377_v32 = vld [vmem:[%s2580_s0 + $0x50] sm:$0xf]  ;;  %v1817_v34 = vld [vmem:[%s2580_s0 + $0x54] sm:$0xf] }
  0x23   :  { %990 = vmatmul.bf16.vlgmr.msra.gmra.mxu2 %v1338_v44  ;;  %1114 = vmatpush.bf16.msrb.mxu1 %v1910_v47  ;;  %v1904_v43 = vld [vmem:[%s2579_s1 + $0x148] sm:$0xff]  ;;  %v1457_v44 = vld [vmem:[%s2580_s0 + $0x100] sm:$0xf]  ;;  %v1459_v47 = vld [vmem:[%s2580_s0 + $0x120] sm:$0xf0] }
  0x24   :  { %1158 = vmatpush.bf16.msrb.mxu2 %v1918_v40  ;;  %1034 = vmatmul.bf16.vlgmr.msra.gmra.mxu3 %v1342_v45  ;;  %v1912_v40 = vld [vmem:[%s2579_s1 + $0x188] sm:$0xff]  ;;  %v1843_v45 = vld [vmem:[%s2580_s0 + $0x11c] sm:$0xf0]  ;;  %v1821_v33 = vld [vmem:[%s2580_s0 + $0x6c] sm:$0xf0] }
  0x25   :  { %1202 = vmatpush.bf16.msrb.mxu3 %v1926_v46  ;;  %v1839_v46 = vld [vmem:[%s2580_s0 + $0x104] sm:$0xf]  ;;  %v1856_v14 = vld [vmem:[%s2580_s0 + $0x18c] sm:$0xf]  ;;  %v1379_v35 = vld [vmem:[%s2580_s0 + $0x70] sm:$0xf0] }
  0x26   :  { %1071 = vmatpush.bf16.msrb.mxu0 %v1901_v49  ;;  %v1844_v49 = vld [vmem:[%s2580_s0 + $0x124] sm:$0xf0]  ;;  %v1531_v15 = vld [vmem:[%s2580_s0 + $0x1a8] sm:$0xf0] }
  0x27   :  { %1115 = vmatpush.bf16.msrb.mxu1 %v1909_v51  ;;  %v1467_v51 = vld [vmem:[%s2580_s0 + $0x128] sm:$0xf0]  ;;  %v1534_v19 = vor.u32 %v1856_v14, %v1531_v15 }
  0x28   :  { %1159 = vmatpush.bf16.msrb.mxu2 %v1917_v48  ;;  %v1465_v48 = vld [vmem:[%s2580_s0 + $0x108] sm:$0xf] }
  0x29   :  { %1203 = vmatpush.bf16.msrb.mxu3 %v1925_v50  ;;  %v1840_v50 = vld [vmem:[%s2580_s0 + $0x10c] sm:$0xf] }
  0x2a   :  { %1072 = vmatpush.bf16.msrb.mxu0 %v1900_v53  ;;  %v1462_v53 = vor.u32 %v1839_v46, %v1459_v47 }
  0x2b   :  { %1116 = vmatpush.bf16.msrb.mxu1 %v1908_v55  ;;  %v1470_v55 = vor.u32 %v1840_v50, %v1467_v51 }
  0x2c   :  { %1160 = vmatpush.bf16.msrb.mxu2 %v1916_v52  ;;  %v1458_v52 = vor.u32 %v1843_v45, %v1457_v44 }
  0x2d   :  { %1204 = vmatpush.bf16.msrb.mxu3 %v1924_v54  ;;  %v1466_v54 = vor.u32 %v1844_v49, %v1465_v48 }
  0x2e   :  { %1073 = vmatpush.bf16.msrb.mxu0 %v1899_v58  ;;  %v1919_v58 = vld [vmem:[%s2579_s1 + $0x1c0] sm:$0xff] }
  0x2f   :  { %1117 = vmatpush.bf16.msrb.mxu1 %v1907_v3  ;;  %v1499_v3 = vld [vmem:[%s2580_s0 + $0x168] sm:$0xf0] }
  0x30   :  { %1161 = vmatpush.bf16.msrb.mxu2 %v1915_v57  ;;  %v1895_v57 = vld [vmem:[%s2579_s1 + $0x100] sm:$0xff] }
  0x31   :  { %1205 = vmatpush.bf16.msrb.mxu3 %v1923_v2  ;;  %907 = vmatmul.bf16.gmra.mxu0 %v1362_v4  ;;  %v1848_v2 = vld [vmem:[%s2580_s0 + $0x14c] sm:$0xf]  ;;  %v1490_v4 = vor.u32 %v1851_v61, %v1489_v60  ;;  %v1826_v60 = vld [vmem:[%s2580_s0 + $0x9c] sm:$0xf] }
  0x32   :  { %951 = vmatmul.bf16.gmra.mxu1 %v1366_v5  ;;  %1074 = vmatpush.bf16.msrb.mxu0 %v1898_v9  ;;  %v1494_v5 = vor.u32 %v1847_v62, %v1491_v63  ;;  %v1859_v9 = vld [vmem:[%s2580_s0 + $0x19c] sm:$0xf0]  ;;  %v1419_v61 = vld [vmem:[%s2580_s0 + $0xb8] sm:$0xf0] }
  0x33   :  { %995 = vmatmul.bf16.gmra.mxu2 %v1370_v6  ;;  %1118 = vmatpush.bf16.msrb.mxu1 %v1906_v11  ;;  %v1498_v6 = vor.u32 %v1852_v1, %v1497_v0  ;;  %v1523_v11 = vld [vmem:[%s2580_s0 + $0x1a0] sm:$0xf0] }
  0x34   :  { %1039 = vmatmul.bf16.gmra.mxu3 %v1374_v7  ;;  %1162 = vmatpush.bf16.msrb.mxu2 %v1914_v8  ;;  %v1502_v7 = vor.u32 %v1848_v2, %v1499_v3  ;;  %v1521_v8 = vld [vmem:[%s2580_s0 + $0x180] sm:$0xf] }
  0x35   :  { %1206 = vmatpush.bf16.msrb.mxu3 %v1922_v10  ;;  %v1855_v10 = vld [vmem:[%s2580_s0 + $0x184] sm:$0xf]  ;;  %v1522_v16 = vor.u32 %v1859_v9, %v1521_v8 }
  0x36   :  { %1075 = vmatpush.bf16.msrb.mxu0 %v1897_v25  ;;  %v1526_v17 = vor.u32 %v1855_v10, %v1523_v11  ;;  %v1814_v25 = vld [vmem:[%s2580_s0 + $0x34] sm:$0xf0] }
  0x37   :  { %1119 = vmatpush.bf16.msrb.mxu1 %v1905_v27  ;;  %v1355_v27 = vld [vmem:[%s2580_s0 + $0x38] sm:$0xf0] }
  0x38   :  { %1163 = vmatpush.bf16.msrb.mxu2 %v1913_v24  ;;  %v1353_v24 = vld [vmem:[%s2580_s0 + $0x18] sm:$0xf] }
  0x39   :  { %1207 = vmatpush.bf16.msrb.mxu3 %v1921_v26  ;;  %v1810_v26 = vld [vmem:[%s2580_s0 + $0x1c] sm:$0xf]  ;;  %v1354_v30 = vor.u32 %v1814_v25, %v1353_v24 }
  0x3a   :  { %1076 = vmatpush.bf16.msrb.mxu0 %v1896_v41  ;;  %v1358_v31 = vor.u32 %v1810_v26, %v1355_v27  ;;  %v1382_v41 = vor.u32 %v1817_v34, %v1379_v35 }
  0x3b   :  { %1120 = vmatpush.bf16.msrb.mxu1 %v1904_v43 }
  0x3c   :  { %1164 = vmatpush.bf16.msrb.mxu2 %v1912_v40  ;;  %v1378_v40 = vor.u32 %v1821_v33, %v1377_v32 }
  0x3d   :  { %1208 = vmatpush.bf16.msrb.mxu3 %v1920_v42 }
  0x3e   :  { %1077 = vmatpush.bf16.msrb.mxu0 %v1895_v57  ;;  %v1411_v57 = vld [vmem:[%s2580_s0 + $0xb0] sm:$0xf0] }
  0x3f   :  { %1121 = vmatpush.bf16.msrb.mxu1 %v1903_v59  ;;  %v1830_v59 = vld [vmem:[%s2580_s0 + $0xb4] sm:$0xf0] }
  0x40   :  { %1165 = vmatpush.bf16.msrb.mxu2 %v1911_v56  ;;  %v1825_v56 = vld [vmem:[%s2580_s0 + $0x94] sm:$0xf] }
  0x41   :  { %912 = vmatmul.bf16.gmra.mxu0 %v1394_v20  ;;  %1209 = vmatpush.bf16.msrb.mxu3 %v1919_v58  ;;  %v1345_v20 = vld [vmem:[%s2580_s0 + $0x10] sm:$0xf]  ;;  %v1417_v58 = vld [vmem:[%s2580_s0 + $0x98] sm:$0xf]  ;;  %v1414_v1 = vor.u32 %v1825_v56, %v1411_v57 }
  0x42   :  { %956 = vmatmul.bf16.gmra.mxu1 %v1398_v21  ;;  %v1813_v21 = vld [vmem:[%s2580_s0 + $0x2c] sm:$0xf0] }
  0x43   :  { %1000 = vmatmul.bf16.gmra.mxu2 %v1402_v22  ;;  %v1809_v22 = vld [vmem:[%s2580_s0 + $0x14] sm:$0xf]  ;;  %v1346_v28 = vor.u32 %v1813_v21, %v1345_v20  ;;  %v1449_v20 = vld [vmem:[%s2580_s0 + $0xd8] sm:$0xf] }
  0x44   :  { %1044 = vmatmul.bf16.gmra.mxu3 %v1406_v23  ;;  %v1347_v23 = vld [vmem:[%s2580_s0 + $0x30] sm:$0xf0]  ;;  %v1838_v21 = vld [vmem:[%s2580_s0 + $0xf4] sm:$0xf0] }
  0x45   :  { %v1350_v29 = vor.u32 %v1809_v22, %v1347_v23  ;;  %v1834_v22 = vld [vmem:[%s2580_s0 + $0xdc] sm:$0xf] }
  0x46   :  { %v1451_v23 = vld [vmem:[%s2580_s0 + $0xf8] sm:$0xf0] }
  0x47   :  { %v1454_v32 = vor.u32 %v1834_v22, %v1451_v23 }
  0x51   :  { %917 = vmatmul.bf16.gmra.mxu0 %v1426_v36  ;;  %v1385_v36 = vld [vmem:[%s2580_s0 + $0x58] sm:$0xf] }
  0x52   :  { %961 = vmatmul.bf16.gmra.mxu1 %v1430_v37  ;;  %v1822_v37 = vld [vmem:[%s2580_s0 + $0x74] sm:$0xf0] }
  0x53   :  { %1005 = vmatmul.bf16.gmra.mxu2 %v1434_v38  ;;  %v1818_v38 = vld [vmem:[%s2580_s0 + $0x5c] sm:$0xf]  ;;  %v1386_v44 = vor.u32 %v1822_v37, %v1385_v36 }
  0x54   :  { %1049 = vmatmul.bf16.gmra.mxu3 %v1438_v39  ;;  %v1387_v39 = vld [vmem:[%s2580_s0 + $0x78] sm:$0xf0] }
  0x55   :  { %v1390_v45 = vor.u32 %v1818_v38, %v1387_v39 }
  0x61   :  { %922 = vmatmul.bf16.gmra.mxu0 %v1458_v52 }
  0x62   :  { %966 = vmatmul.bf16.gmra.mxu1 %v1462_v53 }
  0x63   :  { %1010 = vmatmul.bf16.gmra.mxu2 %v1466_v54  ;;  %v1409_v54 = vld [vmem:[%s2580_s0 + $0x90] sm:$0xf] }
  0x64   :  { %1054 = vmatmul.bf16.gmra.mxu3 %v1470_v55  ;;  %v1829_v55 = vld [vmem:[%s2580_s0 + $0xac] sm:$0xf0] }
  0x65   :  { %v1410_v0 = vor.u32 %v1829_v55, %v1409_v54 }
  0x71   :  { %927 = vmatmul.bf16.gmra.mxu0 %v1490_v4 }
  0x72   :  { %971 = vmatmul.bf16.gmra.mxu1 %v1494_v5  ;;  %v1418_v5 = vor.u32 %v1830_v59, %v1417_v58 }
  0x73   :  { %1015 = vmatmul.bf16.gmra.mxu2 %v1498_v6  ;;  %v1422_v6 = vor.u32 %v1826_v60, %v1419_v61 }
  0x74   :  { %1059 = vmatmul.bf16.gmra.mxu3 %v1502_v7 }
  0x81   :  { %932 = vmatmul.bf16.gmra.mxu0 %v1522_v16  ;;  %v1441_v16 = vld [vmem:[%s2580_s0 + $0xd0] sm:$0xf] }
  0x82   :  { %976 = vmatmul.bf16.gmra.mxu1 %v1526_v17  ;;  %v1837_v17 = vld [vmem:[%s2580_s0 + $0xec] sm:$0xf0] }
  0x83   :  { %1020 = vmatmul.bf16.gmra.mxu2 %v1530_v18  ;;  %v1833_v18 = vld [vmem:[%s2580_s0 + $0xd4] sm:$0xf]  ;;  %v1442_v26 = vor.u32 %v1837_v17, %v1441_v16 }
  0x84   :  { %1064 = vmatmul.bf16.gmra.mxu3 %v1534_v19  ;;  %v1443_v19 = vld [vmem:[%s2580_s0 + $0xf0] sm:$0xf0] }
  0x85   :  { %v1446_v27 = vor.u32 %v1833_v18, %v1443_v19 }
  0x91   :  { %1078 = vmatmul.bf16.vlgmr.msrb.gmra.mxu0 %v1346_v28 }
  0x92   :  { %1122 = vmatmul.bf16.vlgmr.msrb.gmra.mxu1 %v1350_v29 }
  0x93   :  { %1166 = vmatmul.bf16.vlgmr.msrb.gmra.mxu2 %v1354_v30 }
  0x94   :  { %1210 = vmatmul.bf16.vlgmr.msrb.gmra.mxu3 %v1358_v31  ;;  %v1450_v31 = vor.u32 %v1838_v21, %v1449_v20 }
  0x9e   :  { %v903_v42 = vpop.f32.mrf.mxu0 }
  0x9f   :  { %v947_v43 = vpop.f32.mrf.mxu1 }
  0xa0   :  { %v948_v46 = vadd.f32 %v947_v43, %v903_v42  ;;  %v1473_v42 = vld [vmem:[%s2580_s0 + $0x110] sm:$0xf] }
  0xa1   :  { %1083 = vmatmul.bf16.gmra.mxu0 %v1378_v40  ;;  %v1845_v43 = vld [vmem:[%s2580_s0 + $0x12c] sm:$0xf0] }
  0xa2   :  { %1127 = vmatmul.bf16.gmra.mxu1 %v1382_v41 }
  0xa3   :  { %1171 = vmatmul.bf16.gmra.mxu2 %v1386_v44  ;;  %v1841_v44 = vld [vmem:[%s2580_s0 + $0x114] sm:$0xf] }
  0xa4   :  { %1215 = vmatmul.bf16.gmra.mxu3 %v1390_v45  ;;  %v1475_v45 = vld [vmem:[%s2580_s0 + $0x130] sm:$0xf0] }
  0xa5   :  { %v1478_v54 = vor.u32 %v1841_v44, %v1475_v45 }
  0xa6   :  { %v991_v47 = vpop.f32.mrf.mxu2  ;;  %v905_v50 = vpop.f32.mrf.mxu0 }
  0xa7   :  { %v1035_v48 = vpop.f32.mrf.mxu3  ;;  %v992_v49 = vadd.f32 %v991_v47, %v948_v46  ;;  %v949_v51 = vpop.f32.mrf.mxu1  ;;  %v1481_v46 = vld [vmem:[%s2580_s0 + $0x118] sm:$0xf] }
  0xa8   :  { %v950_v52 = vadd.f32 %v949_v51, %v905_v50  ;;  %v1846_v47 = vld [vmem:[%s2580_s0 + $0x134] sm:$0xf0] }
  0xa9   :  { %v2356_v53 = vadd.f32 %v1035_v48, %v992_v49  ;;  %v1842_v48 = vld [vmem:[%s2580_s0 + $0x11c] sm:$0xf]  ;;  %v1482_v58 = vor.u32 %v1846_v47, %v1481_v46 }
  0xaa   :  { %v1483_v49 = vld [vmem:[%s2580_s0 + $0x138] sm:$0xf0] }
  0xab   :  { %v1486_v59 = vor.u32 %v1842_v48, %v1483_v49 }
  0xae   :  { %v993_v62 = vpop.f32.mrf.mxu2  ;;  %v908_v3 = vpop.f32.mrf.mxu0 }
  0xaf   :  { %v1037_v63 = vpop.f32.mrf.mxu3  ;;  %v994_v2 = vadd.f32 %v993_v62, %v950_v52  ;;  %v952_v4 = vpop.f32.mrf.mxu1  ;;  %v1474_v52 = vor.u32 %v1845_v43, %v1473_v42  ;;  %v1547_v42 = vld [vmem:[%s2580_s0 + $0x1b8] sm:$0xf0] }
  0xb0   :  { %v953_v7 = vadd.f32 %v952_v4, %v908_v3 }
  0xb1   :  { %v2382_v8 = vadd.f32 %v1037_v63, %v994_v2  ;;  %1088 = vmatmul.bf16.gmra.mxu0 %v1410_v0 }
  0xb2   :  { %1132 = vmatmul.bf16.gmra.mxu1 %v1414_v1 }
  0xb3   :  { %1176 = vmatmul.bf16.gmra.mxu2 %v1418_v5  ;;  %v1505_v5 = vld [vmem:[%s2580_s0 + $0x150] sm:$0xf] }
  0xb4   :  { %1220 = vmatmul.bf16.gmra.mxu3 %v1422_v6  ;;  %v1853_v6 = vld [vmem:[%s2580_s0 + $0x16c] sm:$0xf0] }
  0xb5   :  { %v1506_v17 = vor.u32 %v1853_v6, %v1505_v5 }
  0xb6   :  { %v996_v9 = vpop.f32.mrf.mxu2  ;;  %v910_v12 = vpop.f32.mrf.mxu0 }
  0xb7   :  { %v1040_v10 = vpop.f32.mrf.mxu3  ;;  %v997_v11 = vadd.f32 %v996_v9, %v953_v7  ;;  %v954_v13 = vpop.f32.mrf.mxu1  ;;  %v1849_v7 = vld [vmem:[%s2580_s0 + $0x154] sm:$0xf] }
  0xb8   :  { %v955_v14 = vadd.f32 %v954_v13, %v910_v12  ;;  %v1507_v9 = vld [vmem:[%s2580_s0 + $0x170] sm:$0xf0]  ;;  %v1850_v12 = vld [vmem:[%s2580_s0 + $0x15c] sm:$0xf] }
  0xb9   :  { %v2384_v15 = vadd.f32 %v1040_v10, %v997_v11  ;;  %v1513_v10 = vld [vmem:[%s2580_s0 + $0x158] sm:$0xf]  ;;  %v1515_v13 = vld [vmem:[%s2580_s0 + $0x178] sm:$0xf0]  ;;  %v1510_v18 = vor.u32 %v1849_v7, %v1507_v9 }
  0xba   :  { %v1854_v11 = vld [vmem:[%s2580_s0 + $0x174] sm:$0xf0]  ;;  %v1518_v23 = vor.u32 %v1850_v12, %v1515_v13 }
  0xbb   :  { %v1514_v22 = vor.u32 %v1854_v11, %v1513_v10 }
  0xbe   :  { %v998_v24 = vpop.f32.mrf.mxu2  ;;  %v913_v29 = vpop.f32.mrf.mxu0 }
  0xbf   :  { %v1042_v25 = vpop.f32.mrf.mxu3  ;;  %v999_v28 = vadd.f32 %v998_v24, %v955_v14  ;;  %v957_v30 = vpop.f32.mrf.mxu1 }
  0xc0   :  { %v958_v33 = vadd.f32 %v957_v30, %v913_v29 }
  0xc1   :  { %v2410_v34 = vadd.f32 %v1042_v25, %v999_v28  ;;  %1093 = vmatmul.bf16.gmra.mxu0 %v1442_v26 }
  0xc2   :  { %1137 = vmatmul.bf16.gmra.mxu1 %v1446_v27 }
  0xc3   :  { %1181 = vmatmul.bf16.gmra.mxu2 %v1450_v31 }
  0xc4   :  { %1225 = vmatmul.bf16.gmra.mxu3 %v1454_v32 }
  0xc6   :  { %v1001_v35 = vpop.f32.mrf.mxu2  ;;  %v915_v38 = vpop.f32.mrf.mxu0 }
  0xc7   :  { %v1045_v36 = vpop.f32.mrf.mxu3  ;;  %v1002_v37 = vadd.f32 %v1001_v35, %v958_v33  ;;  %v959_v39 = vpop.f32.mrf.mxu1  ;;  %v1537_v33 = vld [vmem:[%s2580_s0 + $0x190] sm:$0xf] }
  0xc8   :  { %v960_v40 = vadd.f32 %v959_v39, %v915_v38  ;;  %v1861_v35 = vld [vmem:[%s2580_s0 + $0x1ac] sm:$0xf0]  ;;  %v1545_v38 = vld [vmem:[%s2580_s0 + $0x198] sm:$0xf] }
  0xc9   :  { %v2412_v41 = vadd.f32 %v1045_v36, %v1002_v37  ;;  %v1857_v36 = vld [vmem:[%s2580_s0 + $0x194] sm:$0xf]  ;;  %v1862_v39 = vld [vmem:[%s2580_s0 + $0x1b4] sm:$0xf0]  ;;  %v1538_v45 = vor.u32 %v1861_v35, %v1537_v33 }
  0xca   :  { %v1539_v37 = vld [vmem:[%s2580_s0 + $0x1b0] sm:$0xf0] }
  0xcb   :  { %v1542_v46 = vor.u32 %v1857_v36, %v1539_v37 }
  0xce   :  { %v1003_v50 = vpop.f32.mrf.mxu2  ;;  %v918_v56 = vpop.f32.mrf.mxu0 }
  0xcf   :  { %v1047_v51 = vpop.f32.mrf.mxu3  ;;  %v1004_v55 = vadd.f32 %v1003_v50, %v960_v40  ;;  %v962_v57 = vpop.f32.mrf.mxu1  ;;  %v1858_v40 = vld [vmem:[%s2580_s0 + $0x19c] sm:$0xf]  ;;  %v1546_v50 = vor.u32 %v1862_v39, %v1545_v38 }
  0xd0   :  { %v963_v60 = vadd.f32 %v962_v57, %v918_v56 }
  0xd1   :  { %v2438_v61 = vadd.f32 %v1047_v51, %v1004_v55  ;;  %1098 = vmatmul.bf16.gmra.mxu0 %v1474_v52  ;;  %v1550_v51 = vor.u32 %v1858_v40, %v1547_v42 }
  0xd2   :  { %1142 = vmatmul.bf16.gmra.mxu1 %v1478_v54 }
  0xd3   :  { %1186 = vmatmul.bf16.gmra.mxu2 %v1482_v58 }
  0xd4   :  { %1230 = vmatmul.bf16.gmra.mxu3 %v1486_v59 }
  0xd6   :  { %v1006_v62 = vpop.f32.mrf.mxu2  ;;  %v920_v1 = vpop.f32.mrf.mxu0 }
  0xd7   :  { %v1050_v63 = vpop.f32.mrf.mxu3  ;;  %v1007_v0 = vadd.f32 %v1006_v62, %v963_v60  ;;  %v964_v2 = vpop.f32.mrf.mxu1 }
  0xd8   :  { %v965_v3 = vadd.f32 %v964_v2, %v920_v1 }
  0xd9   :  { %v2440_v4 = vadd.f32 %v1050_v63, %v1007_v0 }
  0xde   :  { %v1008_v14 = vpop.f32.mrf.mxu2  ;;  %v923_v20 = vpop.f32.mrf.mxu0 }
  0xdf   :  { %v1052_v16 = vpop.f32.mrf.mxu3  ;;  %v1009_v19 = vadd.f32 %v1008_v14, %v965_v3  ;;  %v967_v21 = vpop.f32.mrf.mxu1 }
  0xe0   :  { %v968_v24 = vadd.f32 %v967_v21, %v923_v20 }
  0xe1   :  { %v2466_v25 = vadd.f32 %v1052_v16, %v1009_v19  ;;  %1103 = vmatmul.bf16.gmra.mxu0 %v1506_v17 }
  0xe2   :  { %1147 = vmatmul.bf16.gmra.mxu1 %v1510_v18 }
  0xe3   :  { %1191 = vmatmul.bf16.gmra.mxu2 %v1514_v22 }
  0xe4   :  { %1235 = vmatmul.bf16.gmra.mxu3 %v1518_v23 }
  0xe6   :  { %v1011_v26 = vpop.f32.mrf.mxu2  ;;  %v925_v29 = vpop.f32.mrf.mxu0 }
  0xe7   :  { %v1055_v27 = vpop.f32.mrf.mxu3  ;;  %v1012_v28 = vadd.f32 %v1011_v26, %v968_v24  ;;  %v969_v30 = vpop.f32.mrf.mxu1 }
  0xe8   :  { %v970_v31 = vadd.f32 %v969_v30, %v925_v29 }
  0xe9   :  { %v2468_v32 = vadd.f32 %v1055_v27, %v1012_v28  ;;  %v2508_v28 = vld [vmem:[%s2581_s2] ss:$0 sm:$0xff] }
  0xee   :  { %v1013_v43 = vpop.f32.mrf.mxu2  ;;  %v928_v48 = vpop.f32.mrf.mxu0 }
  0xef   :  { %v1057_v44 = vpop.f32.mrf.mxu3  ;;  %v1014_v47 = vadd.f32 %v1013_v43, %v970_v31  ;;  %v972_v49 = vpop.f32.mrf.mxu1 }
  0xf0   :  { %v973_v52 = vadd.f32 %v972_v49, %v928_v48 }
  0xf1   :  { %v2494_v54 = vadd.f32 %v1057_v44, %v1014_v47  ;;  %1108 = vmatmul.bf16.gmra.mxu0 %v1538_v45 }
  0xf2   :  { %1152 = vmatmul.bf16.gmra.mxu1 %v1542_v46 }
  0xf3   :  { %1196 = vmatmul.bf16.gmra.mxu2 %v1546_v50 }
  0xf4   :  { %1240 = vmatmul.bf16.gmra.mxu3 %v1550_v51 }
  0xf6   :  { %v1016_v55 = vpop.f32.mrf.mxu2  ;;  %v930_v58 = vpop.f32.mrf.mxu0 }
  0xf7   :  { %v1060_v56 = vpop.f32.mrf.mxu3  ;;  %v1017_v57 = vadd.f32 %v1016_v55, %v973_v52  ;;  %v974_v59 = vpop.f32.mrf.mxu1 }
  0xf8   :  { %v975_v60 = vadd.f32 %v974_v59, %v930_v58 }
  0xf9   :  { %v2496_v62 = vadd.f32 %v1060_v56, %v1017_v57 }
  0xfe   :  { %v1018_v63 = vpop.f32.mrf.mxu2  ;;  %v933_v2 = vpop.f32.mrf.mxu0 }
  0xff   :  { %v1062_v0 = vpop.f32.mrf.mxu3  ;;  %v1019_v1 = vadd.f32 %v1018_v63, %v975_v60  ;;  %v977_v3 = vpop.f32.mrf.mxu1 }
 0x100   :  { %v978_v5 = vadd.f32 %v977_v3, %v933_v2 }
 0x101   :  { %v2498_v6 = vadd.f32 %v1062_v0, %v1019_v1 }
 0x106   :  { %v1021_v7 = vpop.f32.mrf.mxu2  ;;  %v935_v11 = vpop.f32.mrf.mxu0 }
 0x107   :  { %v1065_v9 = vpop.f32.mrf.mxu3  ;;  %v1022_v10 = vadd.f32 %v1021_v7, %v978_v5  ;;  %v979_v12 = vpop.f32.mrf.mxu1 }
 0x108   :  { %v980_v13 = vadd.f32 %v979_v12, %v935_v11 }
 0x109   :  { %v2500_v14 = vadd.f32 %v1065_v9, %v1022_v10 }
 0x10e   :  { %v1023_v16 = vpop.f32.mrf.mxu2  ;;  %v1079_v19 = vpop.f32.mrf.mxu0 }
 0x10f   :  { %v1067_v17 = vpop.f32.mrf.mxu3  ;;  %v1024_v18 = vadd.f32 %v1023_v16, %v980_v13  ;;  %v1123_v20 = vpop.f32.mrf.mxu1  ;;  %v1080_v22 = vadd.f32 %v1079_v19, %v2356_v53 }
 0x111   :  { %v2502_v21 = vadd.f32 %v1067_v17, %v1024_v18  ;;  %v1124_v23 = vadd.f32 %v1123_v20, %v1080_v22 }
 0x116   :  { %v1167_v24 = vpop.f32.mrf.mxu2  ;;  %v1081_v29 = vpop.f32.mrf.mxu0 }
 0x117   :  { %v1211_v26 = vpop.f32.mrf.mxu3  ;;  %v1168_v27 = vadd.f32 %v1167_v24, %v1124_v23  ;;  %v1125_v30 = vpop.f32.mrf.mxu1  ;;  %v1082_v33 = vadd.f32 %v1081_v29, %v2382_v8 }
 0x119   :  { %v1212_v31 = vadd.f32 %v1211_v26, %v1168_v27  ;;  %v1126_v53 = vadd.f32 %v1125_v30, %v1082_v33 }
 0x11b   :  { %v1295_v35 = vadd.f32 %v2508_v28, %v1212_v31 }
 0x11d   :  { %1309 = vst [vmem:[%s2582_s3] sm:$0xff] %v1295_v35 }
 0x11e   :  { %v1169_v36 = vpop.f32.mrf.mxu2  ;;  %v1084_v39 = vpop.f32.mrf.mxu0 }
 0x11f   :  { %v1213_v37 = vpop.f32.mrf.mxu3  ;;  %v1170_v38 = vadd.f32 %v1169_v36, %v1126_v53  ;;  %v1128_v40 = vpop.f32.mrf.mxu1  ;;  %v1085_v43 = vadd.f32 %v1084_v39, %v2384_v15 }
 0x121   :  { %v1214_v42 = vadd.f32 %v1213_v37, %v1170_v38  ;;  %v1129_v8 = vadd.f32 %v1128_v40, %v1085_v43 }
 0x123   :  { %v1296_v44 = vadd.f32 %v2508_v28, %v1214_v42 }
 0x125   :  { %1310 = vst [vmem:[%s2582_s3 + $0x8] sm:$0xff] %v1296_v44 }
 0x126   :  { %v1172_v45 = vpop.f32.mrf.mxu2  ;;  %v1086_v48 = vpop.f32.mrf.mxu0 }
 0x127   :  { %v1216_v46 = vpop.f32.mrf.mxu3  ;;  %v1173_v47 = vadd.f32 %v1172_v45, %v1129_v8  ;;  %v1130_v49 = vpop.f32.mrf.mxu1  ;;  %v1087_v51 = vadd.f32 %v1086_v48, %v2410_v34 }
 0x129   :  { %v1217_v50 = vadd.f32 %v1216_v46, %v1173_v47  ;;  %v1131_v15 = vadd.f32 %v1130_v49, %v1087_v51 }
 0x12b   :  { %v1297_v52 = vadd.f32 %v2508_v28, %v1217_v50 }
 0x12d   :  { %1311 = vst [vmem:[%s2582_s3 + $0x10] sm:$0xff] %v1297_v52 }
 0x12e   :  { %v1174_v55 = vpop.f32.mrf.mxu2  ;;  %v1089_v58 = vpop.f32.mrf.mxu0 }
 0x12f   :  { %v1218_v56 = vpop.f32.mrf.mxu3  ;;  %v1175_v57 = vadd.f32 %v1174_v55, %v1131_v15  ;;  %v1133_v59 = vpop.f32.mrf.mxu1  ;;  %v1090_v63 = vadd.f32 %v1089_v58, %v2412_v41 }
 0x131   :  { %v1219_v60 = vadd.f32 %v1218_v56, %v1175_v57  ;;  %v1134_v34 = vadd.f32 %v1133_v59, %v1090_v63 }
 0x133   :  { %v1298_v0 = vadd.f32 %v2508_v28, %v1219_v60 }
 0x135   :  { %1312 = vst [vmem:[%s2582_s3 + $0x18] sm:$0xff] %v1298_v0 }
 0x136   :  { %v1177_v1 = vpop.f32.mrf.mxu2  ;;  %v1091_v5 = vpop.f32.mrf.mxu0 }
 0x137   :  { %v1221_v2 = vpop.f32.mrf.mxu3  ;;  %v1178_v3 = vadd.f32 %v1177_v1, %v1134_v34  ;;  %v1135_v7 = vpop.f32.mrf.mxu1  ;;  %v1092_v10 = vadd.f32 %v1091_v5, %v2438_v61 }
 0x139   :  { %v1222_v9 = vadd.f32 %v1221_v2, %v1178_v3  ;;  %v1136_v41 = vadd.f32 %v1135_v7, %v1092_v10 }
 0x13b   :  { %v1299_v11 = vadd.f32 %v2508_v28, %v1222_v9 }
 0x13d   :  { %1313 = vst [vmem:[%s2582_s3 + $0x20] sm:$0xff] %v1299_v11 }
 0x13e   :  { %v1179_v12 = vpop.f32.mrf.mxu2  ;;  %v1094_v17 = vpop.f32.mrf.mxu0 }
 0x13f   :  { %v1223_v13 = vpop.f32.mrf.mxu3  ;;  %v1180_v16 = vadd.f32 %v1179_v12, %v1136_v41  ;;  %v1138_v18 = vpop.f32.mrf.mxu1  ;;  %v1095_v20 = vadd.f32 %v1094_v17, %v2440_v4 }
 0x141   :  { %v1224_v19 = vadd.f32 %v1223_v13, %v1180_v16  ;;  %v1139_v61 = vadd.f32 %v1138_v18, %v1095_v20 }
 0x143   :  { %v1300_v22 = vadd.f32 %v2508_v28, %v1224_v19 }
 0x145   :  { %1314 = vst [vmem:[%s2582_s3 + $0x28] sm:$0xff] %v1300_v22 }
 0x146   :  { %v1182_v23 = vpop.f32.mrf.mxu2  ;;  %v1096_v27 = vpop.f32.mrf.mxu0 }
 0x147   :  { %v1226_v24 = vpop.f32.mrf.mxu3  ;;  %v1183_v26 = vadd.f32 %v1182_v23, %v1139_v61  ;;  %v1140_v29 = vpop.f32.mrf.mxu1  ;;  %v1097_v31 = vadd.f32 %v1096_v27, %v2466_v25 }
 0x149   :  { %v1227_v30 = vadd.f32 %v1226_v24, %v1183_v26  ;;  %v1141_v4 = vadd.f32 %v1140_v29, %v1097_v31 }
 0x14b   :  { %v1301_v33 = vadd.f32 %v2508_v28, %v1227_v30 }
 0x14d   :  { %1315 = vst [vmem:[%s2582_s3 + $0x30] sm:$0xff] %v1301_v33 }
 0x14e   :  { %v1184_v35 = vpop.f32.mrf.mxu2  ;;  %v1099_v37 = vpop.f32.mrf.mxu0 }
 0x14f   :  { %v1228_v53 = vpop.f32.mrf.mxu3  ;;  %v1185_v36 = vadd.f32 %v1184_v35, %v1141_v4  ;;  %v1143_v38 = vpop.f32.mrf.mxu1  ;;  %v1100_v40 = vadd.f32 %v1099_v37, %v2468_v32 }
 0x151   :  { %v1229_v39 = vadd.f32 %v1228_v53, %v1185_v36  ;;  %v1144_v25 = vadd.f32 %v1143_v38, %v1100_v40 }
 0x153   :  { %v1302_v42 = vadd.f32 %v2508_v28, %v1229_v39 }
 0x155   :  { %1316 = vst [vmem:[%s2582_s3 + $0x38] sm:$0xff] %v1302_v42 }
 0x156   :  { %v1187_v43 = vpop.f32.mrf.mxu2  ;;  %v1101_v45 = vpop.f32.mrf.mxu0 }
 0x157   :  { %v1231_v44 = vpop.f32.mrf.mxu3  ;;  %v1188_v8 = vadd.f32 %v1187_v43, %v1144_v25  ;;  %v1145_v46 = vpop.f32.mrf.mxu1  ;;  %v1102_v48 = vadd.f32 %v1101_v45, %v2494_v54 }
 0x159   :  { %v1232_v47 = vadd.f32 %v1231_v44, %v1188_v8  ;;  %v1146_v32 = vadd.f32 %v1145_v46, %v1102_v48 }
 0x15b   :  { %v1303_v49 = vadd.f32 %v2508_v28, %v1232_v47 }
 0x15d   :  { %1317 = vst [vmem:[%s2582_s3 + $0x40] sm:$0xff] %v1303_v49 }
 0x15e   :  { %v1189_v50 = vpop.f32.mrf.mxu2  ;;  %v1104_v15 = vpop.f32.mrf.mxu0 }
 0x15f   :  { %v1233_v51 = vpop.f32.mrf.mxu3  ;;  %v1190_v52 = vadd.f32 %v1189_v50, %v1146_v32  ;;  %v1148_v55 = vpop.f32.mrf.mxu1  ;;  %v1105_v57 = vadd.f32 %v1104_v15, %v2496_v62 }
 0x161   :  { %v1234_v56 = vadd.f32 %v1233_v51, %v1190_v52  ;;  %v1149_v54 = vadd.f32 %v1148_v55, %v1105_v57 }
 0x163   :  { %v1304_v58 = vadd.f32 %v2508_v28, %v1234_v56 }
 0x165   :  { %1318 = vst [vmem:[%s2582_s3 + $0x48] sm:$0xff] %v1304_v58 }
 0x166   :  { %v1192_v59 = vpop.f32.mrf.mxu2  ;;  %v1106_v0 = vpop.f32.mrf.mxu0 }
 0x167   :  { %v1236_v60 = vpop.f32.mrf.mxu3  ;;  %v1193_v63 = vadd.f32 %v1192_v59, %v1149_v54  ;;  %v1150_v34 = vpop.f32.mrf.mxu1  ;;  %v1107_v2 = vadd.f32 %v1106_v0, %v2498_v6 }
 0x169   :  { %v1237_v1 = vadd.f32 %v1236_v60, %v1193_v63  ;;  %v1151_v62 = vadd.f32 %v1150_v34, %v1107_v2 }
 0x16b   :  { %v1305_v3 = vadd.f32 %v2508_v28, %v1237_v1 }
 0x16d   :  { %1319 = vst [vmem:[%s2582_s3 + $0x50] sm:$0xff] %v1305_v3 }
 0x16e   :  { %v1194_v5 = vpop.f32.mrf.mxu2  ;;  %v1109_v10 = vpop.f32.mrf.mxu0 }
 0x16f   :  { %v1238_v7 = vpop.f32.mrf.mxu3  ;;  %v1195_v9 = vadd.f32 %v1194_v5, %v1151_v62  ;;  %v1110_v41 = vadd.f32 %v1109_v10, %v2500_v14  ;;  %v1153_v12 = vpop.f32.mrf.mxu1 }
 0x171   :  { %v1239_v11 = vadd.f32 %v1238_v7, %v1195_v9  ;;  %v1154_v6 = vadd.f32 %v1153_v12, %v1110_v41 }
 0x173   :  { %v1306_v13 = vadd.f32 %v2508_v28, %v1239_v11 }
 0x175   :  { %1320 = vst [vmem:[%s2582_s3 + $0x58] sm:$0xff] %v1306_v13 }
 0x176   :  { %v1197_v16 = vpop.f32.mrf.mxu2  ;;  %v1111_v19 = vpop.f32.mrf.mxu0 }
 0x177   :  { %v1241_v17 = vpop.f32.mrf.mxu3  ;;  %v1198_v18 = vadd.f32 %v1197_v16, %v1154_v6  ;;  %v1112_v22 = vadd.f32 %v1111_v19, %v2502_v21  ;;  %v1155_v23 = vpop.f32.mrf.mxu1 }
 0x179   :  { %v1242_v20 = vadd.f32 %v1241_v17, %v1198_v18  ;;  %v1156_v14 = vadd.f32 %v1155_v23, %v1112_v22 }
 0x17b   :  { %v1307_v61 = vadd.f32 %v2508_v28, %v1242_v20 }
 0x17d   :  { %1321 = vst [vmem:[%s2582_s3 + $0x60] sm:$0xff] %v1307_v61 }
 0x17e   :  { %v1199_v24 = vpop.f32.mrf.mxu2 }
 0x17f   :  { %v1200_v26 = vadd.f32 %v1199_v24, %v1156_v14  ;;  %v1243_v27 = vpop.f32.mrf.mxu3 }
 0x181   :  { %v1244_v29 = vadd.f32 %v1243_v27, %v1200_v26 }
 0x183   :  { %v1308_v30 = vadd.f32 %v2508_v28, %v1244_v29 }
 0x185   :  { %1322 = vst [vmem:[%s2582_s3 + $0x68] sm:$0xff] %v1308_v30 }

</bundles_post_ra>
